<compile_context>
chip_gen: v7x
topology: tpu7x:2x2x1
jax: 0.10.0
libtpu: 0.0.40
codegen_flags: <defaults>
</compile_context>

<pallas_src>
import jax
import jax.numpy as jnp
from jax import lax
from jax.experimental import pallas as pl
from jax.experimental.pallas import tpu as pltpu

N_EMBD = 128            # n_embd
N_HEAD = 4              # n_head
HEAD_SIZE = N_EMBD // N_HEAD
N_LAYER = 2             # n_layer
BLOCK_SIZE = 16         # block_size (max sequence length T)
VOCAB = 65              # vocabulary_size
VOCAB_PAD = 128         # lane-dense padded vocab for the lm_head / logits
EPS = 1e-5              # nn.LayerNorm default eps
NEG_INF = -1e30         # finite additive mask value
TARGET_ROWS = 128       # tokens per group (MXU M-dimension fill target)


def _layernorm(x, gamma, beta):
    """f32 LayerNorm over the last axis.  gamma/beta are (1, C)."""
    mean = jnp.mean(x, axis=-1, keepdims=True)
    var = jnp.mean((x - mean) ** 2, axis=-1, keepdims=True)
    return (x - mean) * lax.rsqrt(var + EPS) * gamma + beta


def gpt_kernel(x_ref, mask_ref,
               wqkv_ref, wo_ref, bo_ref,
               g1_ref, b1_ref,
               w1_ref, bb1_ref, w2_ref, bb2_ref,
               g2_ref, b2_ref,
               gf_ref, bf_ref, lmw_ref, lmb_ref,
               out_ref,
               x_scr):
    """Fused GPT forward.  grid = (group, layer); layer axis is sequential.

    x_scr (VMEM, f32, (Mg, C)) carries this group's activation across layers.
    """
    l = pl.program_id(1)

    # ---- layer 0 of each group: load embeddings into the resident scratch ----
    @pl.when(l == 0)
    def _():
        x_scr[...] = x_ref[...]

    # ---- one transformer block (runs at every layer step) ----
    x = x_scr[...]                                   # (Mg, C) f32
    x_bf = x.astype(jnp.bfloat16)

    # fused QKV projection: (Mg, C) @ (C, 3C) -> f32 accum; one bf16 cast total
    qkv = jnp.dot(x_bf, wqkv_ref[0], preferred_element_type=jnp.float32)
    qkv_bf = qkv.astype(jnp.bfloat16)

    mask_bias = mask_ref[...]                        # (Mg, Mg) f32, 0 / NEG_INF
    scale = HEAD_SIZE ** -0.5

    # per-head attention with direct accumulation into the output projection
    sa = jnp.zeros((x.shape[0], N_EMBD), jnp.float32)
    for h in range(N_HEAD):                          # unrolled, N_HEAD small
        lo = h * HEAD_SIZE
        q = qkv_bf[:, lo:lo + HEAD_SIZE]
        k = qkv_bf[:, N_EMBD + lo:N_EMBD + lo + HEAD_SIZE]
        v = qkv_bf[:, 2 * N_EMBD + lo:2 * N_EMBD + lo + HEAD_SIZE]
        # q @ k^T without an explicit transpose (contract on dim 1 of both)
        wei = lax.dot_general(q, k, (((1,), (1,)), ((), ())),
                              preferred_element_type=jnp.float32)
        wei = wei * scale + mask_bias                # block-diag causal bias
        wei = wei - jnp.max(wei, axis=-1, keepdims=True)
        p = jnp.exp(wei)                             # f32 softmax path
        p = p * pl.reciprocal(jnp.sum(p, axis=-1, keepdims=True), approx=True)
        # attention-dropout: identity at eval time
        head = jnp.dot(p.astype(jnp.bfloat16), v,
                       preferred_element_type=jnp.float32)      # (Mg, hs)
        # accumulate this head straight into the Wo projection (row slice of
        # Wo is sublane-aligned: HEAD_SIZE = 32 is a multiple of 8)
        sa = sa + jnp.dot(head.astype(jnp.bfloat16),
                          wo_ref[0, lo:lo + HEAD_SIZE, :],
                          preferred_element_type=jnp.float32)
    sa = sa + bo_ref[0]                              # proj bias once; dropout=id

    x1 = _layernorm(x + sa, g1_ref[0], b1_ref[0])

    # feed-forward: (Mg,C)@(C,4C) -> ReLU -> (Mg,4C)@(4C,C); dropout = identity
    h1 = jnp.dot(x1.astype(jnp.bfloat16), w1_ref[0],
                 preferred_element_type=jnp.float32) + bb1_ref[0]
    h1 = jnp.maximum(h1, 0.0)
    ff = jnp.dot(h1.astype(jnp.bfloat16), w2_ref[0],
                 preferred_element_type=jnp.float32) + bb2_ref[0]

    x2 = _layernorm(x1 + ff, g2_ref[0], b2_ref[0])
    x_scr[...] = x2

    # ---- last layer: final LayerNorm + lm_head fused (lane-dense 128 vocab) ----
    @pl.when(l == N_LAYER - 1)
    def _():
        xf = _layernorm(x2, gf_ref[...], bf_ref[...])
        out_ref[...] = (jnp.dot(xf.astype(jnp.bfloat16), lmw_ref[...],
                                preferred_element_type=jnp.float32)
                        + lmb_ref[...])


def _seqs_per_group(B, T):
    """Whole sequences per group, targeting ~TARGET_ROWS tokens per group."""
    spg = max(1, min(B, pl.cdiv(TARGET_ROWS, T)))
    while B % spg:
        spg -= 1
    return spg


def run_gpt(x_flat, params, B, T):
    """x_flat: (B*T, C) f32 embeddings.  Returns padded logits (B*T, VOCAB_PAD)."""
    M, C = x_flat.shape
    assert M == B * T and C == N_EMBD
    spg = _seqs_per_group(B, T)
    G = B // spg
    Mg = spg * T

    # additive mask bias, built ONCE from the actual T (block-diagonal
    # same-sequence + causal within a group); identical for every group.
    r = jnp.arange(Mg)
    same_seq = (r[:, None] // T) == (r[None, :] // T)
    causal = r[None, :] <= r[:, None]
    mask_bias = jnp.where(same_seq & causal, 0.0, NEG_INF).astype(jnp.float32)

    def layer_spec(p):
        # stacked per-layer slab: block = one layer, double-buffered by the pipeline
        return pl.BlockSpec((1,) + p.shape[1:], lambda g, l: (l, 0, 0))

    def const_spec(p):
        nd = p.ndim
        return pl.BlockSpec(p.shape, lambda g, l: (0,) * nd)

    layer_names = ("wqkv", "wo", "bo", "g1", "b1",
                   "w1", "bb1", "w2", "bb2", "g2", "b2")

    in_specs = [pl.BlockSpec((Mg, C), lambda g, l: (g, 0)),   # x: one group
                const_spec(mask_bias)]                        # resident mask
    args = [x_flat, mask_bias]
    for name in layer_names:
        p = params[name]
        in_specs.append(layer_spec(p))
        args.append(p)
    for name in ("gf", "bf", "lm_w", "lm_b"):
        p = params[name]
        in_specs.append(const_spec(p))
        args.append(p)

    return pl.pallas_call(
        gpt_kernel,
        out_shape=jax.ShapeDtypeStruct((M, VOCAB_PAD), jnp.float32),
        grid=(G, N_LAYER),
        in_specs=in_specs,
        out_specs=pl.BlockSpec((Mg, VOCAB_PAD), lambda g, l: (g, 0)),
        scratch_shapes=[pltpu.VMEM((Mg, C), jnp.float32)],
        compiler_params=pltpu.CompilerParams(
            # groups are independent (parallel, v7x megacore); layer axis is a
            # sequential carry over the resident activation scratch
            dimension_semantics=("parallel", "arbitrary")),
    )(*args)


def init_params(key):
    keys = iter(jax.random.split(key, 4 + N_LAYER * 4))

    def lin_w(in_f, out_f):
        # nn.init.normal_(weight, mean=0.0, std=0.02); stored bf16 for the MXU
        return (jax.random.normal(next(keys), (in_f, out_f), jnp.float32)
                * 0.02).astype(jnp.bfloat16)

    params = {
        "tok_emb": jax.random.normal(next(keys), (VOCAB, N_EMBD),
                                     jnp.float32) * 0.02,
        "pos_emb": jax.random.normal(next(keys), (BLOCK_SIZE, N_EMBD),
                                     jnp.float32) * 0.02,
    }

    wqkv, wo, w1, w2 = [], [], [], []
    for _ in range(N_LAYER):
        wqkv.append(lin_w(N_EMBD, 3 * N_EMBD))   # [Q | K | V] fused
        wo.append(lin_w(N_EMBD, N_EMBD))
        w1.append(lin_w(N_EMBD, 4 * N_EMBD))
        w2.append(lin_w(4 * N_EMBD, N_EMBD))

    params["wqkv"] = jnp.stack(wqkv)                               # (L, C, 3C)
    params["wo"] = jnp.stack(wo)                                   # (L, C, C)
    params["bo"] = jnp.zeros((N_LAYER, 1, N_EMBD), jnp.float32)
    params["g1"] = jnp.ones((N_LAYER, 1, N_EMBD), jnp.float32)
    params["b1"] = jnp.zeros((N_LAYER, 1, N_EMBD), jnp.float32)
    params["w1"] = jnp.stack(w1)                                   # (L, C, 4C)
    params["bb1"] = jnp.zeros((N_LAYER, 1, 4 * N_EMBD), jnp.float32)
    params["w2"] = jnp.stack(w2)                                   # (L, 4C, C)
    params["bb2"] = jnp.zeros((N_LAYER, 1, N_EMBD), jnp.float32)
    params["g2"] = jnp.ones((N_LAYER, 1, N_EMBD), jnp.float32)
    params["b2"] = jnp.zeros((N_LAYER, 1, N_EMBD), jnp.float32)

    params["gf"] = jnp.ones((1, N_EMBD), jnp.float32)
    params["bf"] = jnp.zeros((1, N_EMBD), jnp.float32)

    # lm_head padded to a lane-dense 128-wide output; padded columns are zero
    lm_w = (jax.random.normal(next(keys), (N_EMBD, VOCAB), jnp.float32) * 0.02)
    lm_w = jnp.pad(lm_w, ((0, 0), (0, VOCAB_PAD - VOCAB)))
    params["lm_w"] = lm_w.astype(jnp.bfloat16)                     # (C, 128)
    params["lm_b"] = jnp.zeros((1, VOCAB_PAD), jnp.float32)
    return params


def gpt_forward(params, index):
    """Equivalent of GPTLanguageModel.forward(index, targets=None)[0]."""
    B, T = index.shape
    # embedding gathers are glue (plain JAX); everything else is in the kernel
    tok_emb = jnp.take(params["tok_emb"], index, axis=0)           # (B, T, C)
    pos_emb = params["pos_emb"][:T]                                # (T, C)
    x = (tok_emb + pos_emb[None, :, :]).reshape(B * T, N_EMBD)
    logits_pad = run_gpt(x.astype(jnp.float32), params, B, T)      # (B*T, 128)
    logits = logits_pad.reshape(B, T, VOCAB_PAD)[:, :, :VOCAB]
    # TODO(synk): targets!=None cross-entropy loss and generate() multinomial
    # sampling loop are not kernelized (host-side / no clean Pallas mapping).
    return logits


if __name__ == "__main__":
    key = jax.random.PRNGKey(0)
    pkey, ikey = jax.random.split(key)
    params = init_params(pkey)
    B, T = 16, BLOCK_SIZE          # 2 groups of 8 sequences (128 tokens each)
    index = jax.random.randint(ikey, (B, T), 0, VOCAB, dtype=jnp.int32)

    logits = gpt_forward(params, index)
    logits = jax.block_until_ready(logits)

    assert logits.shape == (B, T, VOCAB), logits.shape
    assert bool(jnp.all(jnp.isfinite(logits)))
    print("KERNEL_OK")
</pallas_src>

<mosaic_0001>
module attributes {stable_mosaic.version = 11 : i64} {
  func.func @gpt_kernel(%arg0: i32, %arg1: i32, %arg2: memref<128x128xf32, #tpu.memory_space<vmem>>, %arg3: memref<128x128xf32, #tpu.memory_space<vmem>>, %arg4: memref<1x128x384xbf16, #tpu.memory_space<vmem>>, %arg5: memref<1x128x128xbf16, #tpu.memory_space<vmem>>, %arg6: memref<1x1x128xf32, #tpu.memory_space<vmem>>, %arg7: memref<1x1x128xf32, #tpu.memory_space<vmem>>, %arg8: memref<1x1x128xf32, #tpu.memory_space<vmem>>, %arg9: memref<1x128x512xbf16, #tpu.memory_space<vmem>>, %arg10: memref<1x1x512xf32, #tpu.memory_space<vmem>>, %arg11: memref<1x512x128xbf16, #tpu.memory_space<vmem>>, %arg12: memref<1x1x128xf32, #tpu.memory_space<vmem>>, %arg13: memref<1x1x128xf32, #tpu.memory_space<vmem>>, %arg14: memref<1x1x128xf32, #tpu.memory_space<vmem>>, %arg15: memref<1x128xf32, #tpu.memory_space<vmem>>, %arg16: memref<1x128xf32, #tpu.memory_space<vmem>>, %arg17: memref<128x128xbf16, #tpu.memory_space<vmem>>, %arg18: memref<1x128xf32, #tpu.memory_space<vmem>>, %arg19: memref<128x128xf32, #tpu.memory_space<vmem>>, %arg20: memref<128x128xf32, #tpu.memory_space<vmem>>) attributes {dimension_semantics = [#tpu.dimension_semantics<parallel>, #tpu.dimension_semantics<arbitrary>], iteration_bounds = array<i64: 2, 2>, scalar_prefetch = 0 : i64, scratch_operands = 1 : i64, tpu.core_type = #tpu.core_type<tc>, window_params = [{transform_indices = @transform_0, window_bounds = array<i64: 128, 128>}, {pipeline_mode = #tpu.pipeline_mode<synchronous>, transform_indices = @transform_1, window_bounds = array<i64: 128, 128>}, {transform_indices = @transform_2, window_bounds = array<i64: 1, 128, 384>}, {transform_indices = @transform_3, window_bounds = array<i64: 1, 128, 128>}, {transform_indices = @transform_4, window_bounds = array<i64: 1, 1, 128>}, {transform_indices = @transform_5, window_bounds = array<i64: 1, 1, 128>}, {transform_indices = @transform_6, window_bounds = array<i64: 1, 1, 128>}, {transform_indices = @transform_7, window_bounds = array<i64: 1, 128, 512>}, {transform_indices = @transform_8, window_bounds = array<i64: 1, 1, 512>}, {transform_indices = @transform_9, window_bounds = array<i64: 1, 512, 128>}, {transform_indices = @transform_10, window_bounds = array<i64: 1, 1, 128>}, {transform_indices = @transform_11, window_bounds = array<i64: 1, 1, 128>}, {transform_indices = @transform_12, window_bounds = array<i64: 1, 1, 128>}, {pipeline_mode = #tpu.pipeline_mode<synchronous>, transform_indices = @transform_13, window_bounds = array<i64: 1, 128>}, {pipeline_mode = #tpu.pipeline_mode<synchronous>, transform_indices = @transform_14, window_bounds = array<i64: 1, 128>}, {pipeline_mode = #tpu.pipeline_mode<synchronous>, transform_indices = @transform_15, window_bounds = array<i64: 128, 128>}, {pipeline_mode = #tpu.pipeline_mode<synchronous>, transform_indices = @transform_16, window_bounds = array<i64: 1, 128>}, {transform_indices = @transform_17, window_bounds = array<i64: 128, 128>}]} {
    %c0_i32 = arith.constant 0 : i32
    %0 = arith.cmpi eq, %arg1, %c0_i32 : i32
    %1 = arith.extui %0 : i1 to i32
    %c0_i32_0 = arith.constant 0 : i32
    %2 = arith.cmpi ne, %1, %c0_i32_0 : i32
    scf.if %2 {
      %c0_84 = arith.constant 0 : index
      %c0_85 = arith.constant 0 : index
      %187 = vector.load %arg2[%c0_84, %c0_85] : memref<128x128xf32, #tpu.memory_space<vmem>>, vector<128x128xf32>
      %c0_86 = arith.constant 0 : index
      %c0_87 = arith.constant 0 : index
      %188 = vector.load %arg20[%c0_86, %c0_87] : memref<128x128xf32, #tpu.memory_space<vmem>>, vector<128x128xf32>
      tpu.vector_store %arg20[%c0_86, %c0_87], %187 {strides = array<i32>} : memref<128x128xf32, #tpu.memory_space<vmem>>, vector<128x128xf32>,
    } else {
    }
    %c0 = arith.constant 0 : index
    %c0_1 = arith.constant 0 : index
    %3 = vector.load %arg20[%c0, %c0_1] : memref<128x128xf32, #tpu.memory_space<vmem>>, vector<128x128xf32>
    %4 = arith.truncf %3 : vector<128x128xf32> to vector<128x128xbf16>
    %c0_2 = arith.constant 0 : index
    %c0_3 = arith.constant 0 : index
    %c0_4 = arith.constant 0 : index
    %5 = vector.load %arg4[%c0_2, %c0_3, %c0_4] : memref<1x128x384xbf16, #tpu.memory_space<vmem>>, vector<1x128x384xbf16>
    %6 = vector.shape_cast %5 : vector<1x128x384xbf16> to vector<128x384xbf16>
    %cst = arith.constant dense<0.000000e+00> : vector<128x384xf32>
    %7 = tpu.matmul %4, %6, %cst {dimension_numbers = #tpu.dot_dimension_numbers<[1], [0], [0], [1], [0, 0, 1, 1], [], []>} : vector<128x128xbf16>, vector<128x384xbf16>, vector<128x384xf32> -> vector<128x384xf32>
    %8 = arith.truncf %7 : vector<128x384xf32> to vector<128x384xbf16>
    %c0_5 = arith.constant 0 : index
    %c0_6 = arith.constant 0 : index
    %9 = vector.load %arg3[%c0_5, %c0_6] : memref<128x128xf32, #tpu.memory_space<vmem>>, vector<128x128xf32>
    %cst_7 = arith.constant 0.000000e+00 : f32
    %10 = vector.broadcast %cst_7 : f32 to vector<128x128xf32>
    %11 = vector.extract_strided_slice %8 {offsets = [0, 0], sizes = [128, 32], strides = [1, 1]} : vector<128x384xbf16> to vector<128x32xbf16>
    %12 = vector.extract_strided_slice %8 {offsets = [0, 128], sizes = [128, 32], strides = [1, 1]} : vector<128x384xbf16> to vector<128x32xbf16>
    %13 = vector.extract_strided_slice %8 {offsets = [0, 256], sizes = [128, 32], strides = [1, 1]} : vector<128x384xbf16> to vector<128x32xbf16>
    %cst_8 = arith.constant dense<0.000000e+00> : vector<128x128xf32>
    %14 = tpu.matmul %11, %12, %cst_8 {dimension_numbers = #tpu.dot_dimension_numbers<[1], [1], [0], [0], [0, 0, 1, 0], [], []>} : vector<128x32xbf16>, vector<128x32xbf16>, vector<128x128xf32> -> vector<128x128xf32>
    %cst_9 = arith.constant 0.176776692 : f32
    %15 = vector.broadcast %cst_9 : f32 to vector<128x128xf32>
    %16 = arith.mulf %14, %15 : vector<128x128xf32>
    %17 = arith.addf %16, %9 : vector<128x128xf32>
    %cst_10 = arith.constant dense<0xFF800000> : vector<128xf32>
    %18 = vector.multi_reduction <maximumf>, %17, %cst_10 [1] : vector<128x128xf32> to vector<128xf32>
    %19 = vector.shape_cast %18 : vector<128xf32> to vector<128x1xf32>
    %20 = vector.broadcast %19 : vector<128x1xf32> to vector<128x128xf32>
    %21 = arith.subf %17, %20 : vector<128x128xf32>
    %22 = math.exp %21 : vector<128x128xf32>
    %cst_11 = arith.constant dense<0.000000e+00> : vector<128xf32>
    %23 = vector.multi_reduction <add>, %22, %cst_11 [1] : vector<128x128xf32> to vector<128xf32>
    %24 = vector.shape_cast %23 : vector<128xf32> to vector<128x1xf32>
    %25 = tpu.reciprocal %24 {approx = true} : vector<128x1xf32> -> vector<128x1xf32>
    %26 = vector.broadcast %25 : vector<128x1xf32> to vector<128x128xf32>
    %27 = arith.mulf %22, %26 : vector<128x128xf32>
    %28 = arith.truncf %27 : vector<128x128xf32> to vector<128x128xbf16>
    %cst_12 = arith.constant dense<0.000000e+00> : vector<128x32xf32>
    %29 = tpu.matmul %28, %13, %cst_12 {dimension_numbers = #tpu.dot_dimension_numbers<[1], [0], [0], [1], [0, 0, 1, 1], [], []>} : vector<128x128xbf16>, vector<128x32xbf16>, vector<128x32xf32> -> vector<128x32xf32>
    %30 = arith.truncf %29 : vector<128x32xf32> to vector<128x32xbf16>
    %c0_13 = arith.constant 0 : index
    %c0_14 = arith.constant 0 : index
    %c0_15 = arith.constant 0 : index
    %31 = vector.load %arg5[%c0_13, %c0_14, %c0_15] : memref<1x128x128xbf16, #tpu.memory_space<vmem>>, vector<1x32x128xbf16>
    %32 = vector.shape_cast %31 : vector<1x32x128xbf16> to vector<32x128xbf16>
    %cst_16 = arith.constant dense<0.000000e+00> : vector<128x128xf32>
    %33 = tpu.matmul %30, %32, %cst_16 {dimension_numbers = #tpu.dot_dimension_numbers<[1], [0], [0], [1], [0, 0, 1, 1], [], []>} : vector<128x32xbf16>, vector<32x128xbf16>, vector<128x128xf32> -> vector<128x128xf32>
    %34 = arith.addf %10, %33 : vector<128x128xf32>
    %35 = vector.extract_strided_slice %8 {offsets = [0, 32], sizes = [128, 32], strides = [1, 1]} : vector<128x384xbf16> to vector<128x32xbf16>
    %36 = vector.extract_strided_slice %8 {offsets = [0, 160], sizes = [128, 32], strides = [1, 1]} : vector<128x384xbf16> to vector<128x32xbf16>
    %37 = vector.extract_strided_slice %8 {offsets = [0, 288], sizes = [128, 32], strides = [1, 1]} : vector<128x384xbf16> to vector<128x32xbf16>
    %cst_17 = arith.constant dense<0.000000e+00> : vector<128x128xf32>
    %38 = tpu.matmul %35, %36, %cst_17 {dimension_numbers = #tpu.dot_dimension_numbers<[1], [1], [0], [0], [0, 0, 1, 0], [], []>} : vector<128x32xbf16>, vector<128x32xbf16>, vector<128x128xf32> -> vector<128x128xf32>
    %cst_18 = arith.constant 0.176776692 : f32
    %39 = vector.broadcast %cst_18 : f32 to vector<128x128xf32>
    %40 = arith.mulf %38, %39 : vector<128x128xf32>
    %41 = arith.addf %40, %9 : vector<128x128xf32>
    %cst_19 = arith.constant dense<0xFF800000> : vector<128xf32>
    %42 = vector.multi_reduction <maximumf>, %41, %cst_19 [1] : vector<128x128xf32> to vector<128xf32>
    %43 = vector.shape_cast %42 : vector<128xf32> to vector<128x1xf32>
    %44 = vector.broadcast %43 : vector<128x1xf32> to vector<128x128xf32>
    %45 = arith.subf %41, %44 : vector<128x128xf32>
    %46 = math.exp %45 : vector<128x128xf32>
    %cst_20 = arith.constant dense<0.000000e+00> : vector<128xf32>
    %47 = vector.multi_reduction <add>, %46, %cst_20 [1] : vector<128x128xf32> to vector<128xf32>
    %48 = vector.shape_cast %47 : vector<128xf32> to vector<128x1xf32>
    %49 = tpu.reciprocal %48 {approx = true} : vector<128x1xf32> -> vector<128x1xf32>
    %50 = vector.broadcast %49 : vector<128x1xf32> to vector<128x128xf32>
    %51 = arith.mulf %46, %50 : vector<128x128xf32>
    %52 = arith.truncf %51 : vector<128x128xf32> to vector<128x128xbf16>
    %cst_21 = arith.constant dense<0.000000e+00> : vector<128x32xf32>
    %53 = tpu.matmul %52, %37, %cst_21 {dimension_numbers = #tpu.dot_dimension_numbers<[1], [0], [0], [1], [0, 0, 1, 1], [], []>} : vector<128x128xbf16>, vector<128x32xbf16>, vector<128x32xf32> -> vector<128x32xf32>
    %54 = arith.truncf %53 : vector<128x32xf32> to vector<128x32xbf16>
    %c0_22 = arith.constant 0 : index
    %c32 = arith.constant 32 : index
    %c0_23 = arith.constant 0 : index
    %55 = vector.load %arg5[%c0_22, %c32, %c0_23] : memref<1x128x128xbf16, #tpu.memory_space<vmem>>, vector<1x32x128xbf16>
    %56 = vector.shape_cast %55 : vector<1x32x128xbf16> to vector<32x128xbf16>
    %cst_24 = arith.constant dense<0.000000e+00> : vector<128x128xf32>
    %57 = tpu.matmul %54, %56, %cst_24 {dimension_numbers = #tpu.dot_dimension_numbers<[1], [0], [0], [1], [0, 0, 1, 1], [], []>} : vector<128x32xbf16>, vector<32x128xbf16>, vector<128x128xf32> -> vector<128x128xf32>
    %58 = arith.addf %34, %57 : vector<128x128xf32>
    %59 = vector.extract_strided_slice %8 {offsets = [0, 64], sizes = [128, 32], strides = [1, 1]} : vector<128x384xbf16> to vector<128x32xbf16>
    %60 = vector.extract_strided_slice %8 {offsets = [0, 192], sizes = [128, 32], strides = [1, 1]} : vector<128x384xbf16> to vector<128x32xbf16>
    %61 = vector.extract_strided_slice %8 {offsets = [0, 320], sizes = [128, 32], strides = [1, 1]} : vector<128x384xbf16> to vector<128x32xbf16>
    %cst_25 = arith.constant dense<0.000000e+00> : vector<128x128xf32>
    %62 = tpu.matmul %59, %60, %cst_25 {dimension_numbers = #tpu.dot_dimension_numbers<[1], [1], [0], [0], [0, 0, 1, 0], [], []>} : vector<128x32xbf16>, vector<128x32xbf16>, vector<128x128xf32> -> vector<128x128xf32>
    %cst_26 = arith.constant 0.176776692 : f32
    %63 = vector.broadcast %cst_26 : f32 to vector<128x128xf32>
    %64 = arith.mulf %62, %63 : vector<128x128xf32>
    %65 = arith.addf %64, %9 : vector<128x128xf32>
    %cst_27 = arith.constant dense<0xFF800000> : vector<128xf32>
    %66 = vector.multi_reduction <maximumf>, %65, %cst_27 [1] : vector<128x128xf32> to vector<128xf32>
    %67 = vector.shape_cast %66 : vector<128xf32> to vector<128x1xf32>
    %68 = vector.broadcast %67 : vector<128x1xf32> to vector<128x128xf32>
    %69 = arith.subf %65, %68 : vector<128x128xf32>
    %70 = math.exp %69 : vector<128x128xf32>
    %cst_28 = arith.constant dense<0.000000e+00> : vector<128xf32>
    %71 = vector.multi_reduction <add>, %70, %cst_28 [1] : vector<128x128xf32> to vector<128xf32>
    %72 = vector.shape_cast %71 : vector<128xf32> to vector<128x1xf32>
    %73 = tpu.reciprocal %72 {approx = true} : vector<128x1xf32> -> vector<128x1xf32>
    %74 = vector.broadcast %73 : vector<128x1xf32> to vector<128x128xf32>
    %75 = arith.mulf %70, %74 : vector<128x128xf32>
    %76 = arith.truncf %75 : vector<128x128xf32> to vector<128x128xbf16>
    %cst_29 = arith.constant dense<0.000000e+00> : vector<128x32xf32>
    %77 = tpu.matmul %76, %61, %cst_29 {dimension_numbers = #tpu.dot_dimension_numbers<[1], [0], [0], [1], [0, 0, 1, 1], [], []>} : vector<128x128xbf16>, vector<128x32xbf16>, vector<128x32xf32> -> vector<128x32xf32>
    %78 = arith.truncf %77 : vector<128x32xf32> to vector<128x32xbf16>
    %c0_30 = arith.constant 0 : index
    %c64 = arith.constant 64 : index
    %c0_31 = arith.constant 0 : index
    %79 = vector.load %arg5[%c0_30, %c64, %c0_31] : memref<1x128x128xbf16, #tpu.memory_space<vmem>>, vector<1x32x128xbf16>
    %80 = vector.shape_cast %79 : vector<1x32x128xbf16> to vector<32x128xbf16>
    %cst_32 = arith.constant dense<0.000000e+00> : vector<128x128xf32>
    %81 = tpu.matmul %78, %80, %cst_32 {dimension_numbers = #tpu.dot_dimension_numbers<[1], [0], [0], [1], [0, 0, 1, 1], [], []>} : vector<128x32xbf16>, vector<32x128xbf16>, vector<128x128xf32> -> vector<128x128xf32>
    %82 = arith.addf %58, %81 : vector<128x128xf32>
    %83 = vector.extract_strided_slice %8 {offsets = [0, 96], sizes = [128, 32], strides = [1, 1]} : vector<128x384xbf16> to vector<128x32xbf16>
    %84 = vector.extract_strided_slice %8 {offsets = [0, 224], sizes = [128, 32], strides = [1, 1]} : vector<128x384xbf16> to vector<128x32xbf16>
    %85 = vector.extract_strided_slice %8 {offsets = [0, 352], sizes = [128, 32], strides = [1, 1]} : vector<128x384xbf16> to vector<128x32xbf16>
    %cst_33 = arith.constant dense<0.000000e+00> : vector<128x128xf32>
    %86 = tpu.matmul %83, %84, %cst_33 {dimension_numbers = #tpu.dot_dimension_numbers<[1], [1], [0], [0], [0, 0, 1, 0], [], []>} : vector<128x32xbf16>, vector<128x32xbf16>, vector<128x128xf32> -> vector<128x128xf32>
    %cst_34 = arith.constant 0.176776692 : f32
    %87 = vector.broadcast %cst_34 : f32 to vector<128x128xf32>
    %88 = arith.mulf %86, %87 : vector<128x128xf32>
    %89 = arith.addf %88, %9 : vector<128x128xf32>
    %cst_35 = arith.constant dense<0xFF800000> : vector<128xf32>
    %90 = vector.multi_reduction <maximumf>, %89, %cst_35 [1] : vector<128x128xf32> to vector<128xf32>
    %91 = vector.shape_cast %90 : vector<128xf32> to vector<128x1xf32>
    %92 = vector.broadcast %91 : vector<128x1xf32> to vector<128x128xf32>
    %93 = arith.subf %89, %92 : vector<128x128xf32>
    %94 = math.exp %93 : vector<128x128xf32>
    %cst_36 = arith.constant dense<0.000000e+00> : vector<128xf32>
    %95 = vector.multi_reduction <add>, %94, %cst_36 [1] : vector<128x128xf32> to vector<128xf32>
    %96 = vector.shape_cast %95 : vector<128xf32> to vector<128x1xf32>
    %97 = tpu.reciprocal %96 {approx = true} : vector<128x1xf32> -> vector<128x1xf32>
    %98 = vector.broadcast %97 : vector<128x1xf32> to vector<128x128xf32>
    %99 = arith.mulf %94, %98 : vector<128x128xf32>
    %100 = arith.truncf %99 : vector<128x128xf32> to vector<128x128xbf16>
    %cst_37 = arith.constant dense<0.000000e+00> : vector<128x32xf32>
    %101 = tpu.matmul %100, %85, %cst_37 {dimension_numbers = #tpu.dot_dimension_numbers<[1], [0], [0], [1], [0, 0, 1, 1], [], []>} : vector<128x128xbf16>, vector<128x32xbf16>, vector<128x32xf32> -> vector<128x32xf32>
    %102 = arith.truncf %101 : vector<128x32xf32> to vector<128x32xbf16>
    %c0_38 = arith.constant 0 : index
    %c96 = arith.constant 96 : index
    %c0_39 = arith.constant 0 : index
    %103 = vector.load %arg5[%c0_38, %c96, %c0_39] : memref<1x128x128xbf16, #tpu.memory_space<vmem>>, vector<1x32x128xbf16>
    %104 = vector.shape_cast %103 : vector<1x32x128xbf16> to vector<32x128xbf16>
    %cst_40 = arith.constant dense<0.000000e+00> : vector<128x128xf32>
    %105 = tpu.matmul %102, %104, %cst_40 {dimension_numbers = #tpu.dot_dimension_numbers<[1], [0], [0], [1], [0, 0, 1, 1], [], []>} : vector<128x32xbf16>, vector<32x128xbf16>, vector<128x128xf32> -> vector<128x128xf32>
    %106 = arith.addf %82, %105 : vector<128x128xf32>
    %c0_41 = arith.constant 0 : index
    %c0_42 = arith.constant 0 : index
    %c0_43 = arith.constant 0 : index
    %107 = vector.load %arg6[%c0_41, %c0_42, %c0_43] : memref<1x1x128xf32, #tpu.memory_space<vmem>>, vector<1x1x128xf32>
    %108 = vector.shape_cast %107 : vector<1x1x128xf32> to vector<1x128xf32>
    %109 = vector.broadcast %108 : vector<1x128xf32> to vector<128x128xf32>
    %110 = arith.addf %106, %109 : vector<128x128xf32>
    %111 = arith.addf %3, %110 : vector<128x128xf32>
    %c0_44 = arith.constant 0 : index
    %c0_45 = arith.constant 0 : index
    %c0_46 = arith.constant 0 : index
    %112 = vector.load %arg7[%c0_44, %c0_45, %c0_46] : memref<1x1x128xf32, #tpu.memory_space<vmem>>, vector<1x1x128xf32>
    %113 = vector.shape_cast %112 : vector<1x1x128xf32> to vector<1x128xf32>
    %c0_47 = arith.constant 0 : index
    %c0_48 = arith.constant 0 : index
    %c0_49 = arith.constant 0 : index
    %114 = vector.load %arg8[%c0_47, %c0_48, %c0_49] : memref<1x1x128xf32, #tpu.memory_space<vmem>>, vector<1x1x128xf32>
    %115 = vector.shape_cast %114 : vector<1x1x128xf32> to vector<1x128xf32>
    %cst_50 = arith.constant dense<0.000000e+00> : vector<128xf32>
    %116 = vector.multi_reduction <add>, %111, %cst_50 [1] : vector<128x128xf32> to vector<128xf32>
    %117 = vector.shape_cast %116 : vector<128xf32> to vector<128x1xf32>
    %cst_51 = arith.constant 1.280000e+02 : f32
    %118 = vector.broadcast %cst_51 : f32 to vector<128x1xf32>
    %119 = arith.divf %117, %118 : vector<128x1xf32>
    %120 = vector.broadcast %119 : vector<128x1xf32> to vector<128x128xf32>
    %121 = arith.subf %111, %120 : vector<128x128xf32>
    %122 = arith.mulf %121, %121 : vector<128x128xf32>
    %cst_52 = arith.constant dense<0.000000e+00> : vector<128xf32>
    %123 = vector.multi_reduction <add>, %122, %cst_52 [1] : vector<128x128xf32> to vector<128xf32>
    %124 = vector.shape_cast %123 : vector<128xf32> to vector<128x1xf32>
    %cst_53 = arith.constant 1.280000e+02 : f32
    %125 = vector.broadcast %cst_53 : f32 to vector<128x1xf32>
    %126 = arith.divf %124, %125 : vector<128x1xf32>
    %127 = vector.broadcast %119 : vector<128x1xf32> to vector<128x128xf32>
    %128 = arith.subf %111, %127 : vector<128x128xf32>
    %cst_54 = arith.constant 9.99999974E-6 : f32
    %129 = vector.broadcast %cst_54 : f32 to vector<128x1xf32>
    %130 = arith.addf %126, %129 : vector<128x1xf32>
    %131 = math.rsqrt %130 : vector<128x1xf32>
    %132 = vector.broadcast %131 : vector<128x1xf32> to vector<128x128xf32>
    %133 = arith.mulf %128, %132 : vector<128x128xf32>
    %134 = vector.broadcast %113 : vector<1x128xf32> to vector<128x128xf32>
    %135 = arith.mulf %133, %134 : vector<128x128xf32>
    %136 = vector.broadcast %115 : vector<1x128xf32> to vector<128x128xf32>
    %137 = arith.addf %135, %136 : vector<128x128xf32>
    %138 = arith.truncf %137 : vector<128x128xf32> to vector<128x128xbf16>
    %c0_55 = arith.constant 0 : index
    %c0_56 = arith.constant 0 : index
    %c0_57 = arith.constant 0 : index
    %139 = vector.load %arg9[%c0_55, %c0_56, %c0_57] : memref<1x128x512xbf16, #tpu.memory_space<vmem>>, vector<1x128x512xbf16>
    %140 = vector.shape_cast %139 : vector<1x128x512xbf16> to vector<128x512xbf16>
    %cst_58 = arith.constant dense<0.000000e+00> : vector<128x512xf32>
    %141 = tpu.matmul %138, %140, %cst_58 {dimension_numbers = #tpu.dot_dimension_numbers<[1], [0], [0], [1], [0, 0, 1, 1], [], []>} : vector<128x128xbf16>, vector<128x512xbf16>, vector<128x512xf32> -> vector<128x512xf32>
    %c0_59 = arith.constant 0 : index
    %c0_60 = arith.constant 0 : index
    %c0_61 = arith.constant 0 : index
    %142 = vector.load %arg10[%c0_59, %c0_60, %c0_61] : memref<1x1x512xf32, #tpu.memory_space<vmem>>, vector<1x1x512xf32>
    %143 = vector.shape_cast %142 : vector<1x1x512xf32> to vector<1x512xf32>
    %144 = vector.broadcast %143 : vector<1x512xf32> to vector<128x512xf32>
    %145 = arith.addf %141, %144 : vector<128x512xf32>
    %cst_62 = arith.constant 0.000000e+00 : f32
    %146 = vector.broadcast %cst_62 : f32 to vector<128x512xf32>
    %147 = arith.maximumf %145, %146 : vector<128x512xf32>
    %148 = arith.truncf %147 : vector<128x512xf32> to vector<128x512xbf16>
    %c0_63 = arith.constant 0 : index
    %c0_64 = arith.constant 0 : index
    %c0_65 = arith.constant 0 : index
    %149 = vector.load %arg11[%c0_63, %c0_64, %c0_65] : memref<1x512x128xbf16, #tpu.memory_space<vmem>>, vector<1x512x128xbf16>
    %150 = vector.shape_cast %149 : vector<1x512x128xbf16> to vector<512x128xbf16>
    %cst_66 = arith.constant dense<0.000000e+00> : vector<128x128xf32>
    %151 = tpu.matmul %148, %150, %cst_66 {dimension_numbers = #tpu.dot_dimension_numbers<[1], [0], [0], [1], [0, 0, 1, 1], [], []>} : vector<128x512xbf16>, vector<512x128xbf16>, vector<128x128xf32> -> vector<128x128xf32>
    %c0_67 = arith.constant 0 : index
    %c0_68 = arith.constant 0 : index
    %c0_69 = arith.constant 0 : index
    %152 = vector.load %arg12[%c0_67, %c0_68, %c0_69] : memref<1x1x128xf32, #tpu.memory_space<vmem>>, vector<1x1x128xf32>
    %153 = vector.shape_cast %152 : vector<1x1x128xf32> to vector<1x128xf32>
    %154 = vector.broadcast %153 : vector<1x128xf32> to vector<128x128xf32>
    %155 = arith.addf %151, %154 : vector<128x128xf32>
    %156 = arith.addf %137, %155 : vector<128x128xf32>
    %c0_70 = arith.constant 0 : index
    %c0_71 = arith.constant 0 : index
    %c0_72 = arith.constant 0 : index
    %157 = vector.load %arg13[%c0_70, %c0_71, %c0_72] : memref<1x1x128xf32, #tpu.memory_space<vmem>>, vector<1x1x128xf32>
    %158 = vector.shape_cast %157 : vector<1x1x128xf32> to vector<1x128xf32>
    %c0_73 = arith.constant 0 : index
    %c0_74 = arith.constant 0 : index
    %c0_75 = arith.constant 0 : index
    %159 = vector.load %arg14[%c0_73, %c0_74, %c0_75] : memref<1x1x128xf32, #tpu.memory_space<vmem>>, vector<1x1x128xf32>
    %160 = vector.shape_cast %159 : vector<1x1x128xf32> to vector<1x128xf32>
    %cst_76 = arith.constant dense<0.000000e+00> : vector<128xf32>
    %161 = vector.multi_reduction <add>, %156, %cst_76 [1] : vector<128x128xf32> to vector<128xf32>
    %162 = vector.shape_cast %161 : vector<128xf32> to vector<128x1xf32>
    %cst_77 = arith.constant 1.280000e+02 : f32
    %163 = vector.broadcast %cst_77 : f32 to vector<128x1xf32>
    %164 = arith.divf %162, %163 : vector<128x1xf32>
    %165 = vector.broadcast %164 : vector<128x1xf32> to vector<128x128xf32>
    %166 = arith.subf %156, %165 : vector<128x128xf32>
    %167 = arith.mulf %166, %166 : vector<128x128xf32>
    %cst_78 = arith.constant dense<0.000000e+00> : vector<128xf32>
    %168 = vector.multi_reduction <add>, %167, %cst_78 [1] : vector<128x128xf32> to vector<128xf32>
    %169 = vector.shape_cast %168 : vector<128xf32> to vector<128x1xf32>
    %cst_79 = arith.constant 1.280000e+02 : f32
    %170 = vector.broadcast %cst_79 : f32 to vector<128x1xf32>
    %171 = arith.divf %169, %170 : vector<128x1xf32>
    %172 = vector.broadcast %164 : vector<128x1xf32> to vector<128x128xf32>
    %173 = arith.subf %156, %172 : vector<128x128xf32>
    %cst_80 = arith.constant 9.99999974E-6 : f32
    %174 = vector.broadcast %cst_80 : f32 to vector<128x1xf32>
    %175 = arith.addf %171, %174 : vector<128x1xf32>
    %176 = math.rsqrt %175 : vector<128x1xf32>
    %177 = vector.broadcast %176 : vector<128x1xf32> to vector<128x128xf32>
    %178 = arith.mulf %173, %177 : vector<128x128xf32>
    %179 = vector.broadcast %158 : vector<1x128xf32> to vector<128x128xf32>
    %180 = arith.mulf %178, %179 : vector<128x128xf32>
    %181 = vector.broadcast %160 : vector<1x128xf32> to vector<128x128xf32>
    %182 = arith.addf %180, %181 : vector<128x128xf32>
    %c0_81 = arith.constant 0 : index
    %c0_82 = arith.constant 0 : index
    %183 = vector.load %arg20[%c0_81, %c0_82] : memref<128x128xf32, #tpu.memory_space<vmem>>, vector<128x128xf32>
    tpu.vector_store %arg20[%c0_81, %c0_82], %182 {strides = array<i32>} : memref<128x128xf32, #tpu.memory_space<vmem>>, vector<128x128xf32>,
    %c1_i32 = arith.constant 1 : i32
    %184 = arith.cmpi eq, %arg1, %c1_i32 : i32
    %185 = arith.extui %184 : i1 to i32
    %c0_i32_83 = arith.constant 0 : i32
    %186 = arith.cmpi ne, %185, %c0_i32_83 : i32
    scf.if %186 {
      %c0_84 = arith.constant 0 : index
      %c0_85 = arith.constant 0 : index
      %187 = vector.load %arg15[%c0_84, %c0_85] : memref<1x128xf32, #tpu.memory_space<vmem>>, vector<1x128xf32>
      %c0_86 = arith.constant 0 : index
      %c0_87 = arith.constant 0 : index
      %188 = vector.load %arg16[%c0_86, %c0_87] : memref<1x128xf32, #tpu.memory_space<vmem>>, vector<1x128xf32>
      %cst_88 = arith.constant dense<0.000000e+00> : vector<128xf32>
      %189 = vector.multi_reduction <add>, %182, %cst_88 [1] : vector<128x128xf32> to vector<128xf32>
      %190 = vector.shape_cast %189 : vector<128xf32> to vector<128x1xf32>
      %cst_89 = arith.constant 1.280000e+02 : f32
      %191 = vector.broadcast %cst_89 : f32 to vector<128x1xf32>
      %192 = arith.divf %190, %191 : vector<128x1xf32>
      %193 = vector.broadcast %192 : vector<128x1xf32> to vector<128x128xf32>
      %194 = arith.subf %182, %193 : vector<128x128xf32>
      %195 = arith.mulf %194, %194 : vector<128x128xf32>
      %cst_90 = arith.constant dense<0.000000e+00> : vector<128xf32>
      %196 = vector.multi_reduction <add>, %195, %cst_90 [1] : vector<128x128xf32> to vector<128xf32>
      %197 = vector.shape_cast %196 : vector<128xf32> to vector<128x1xf32>
      %cst_91 = arith.constant 1.280000e+02 : f32
      %198 = vector.broadcast %cst_91 : f32 to vector<128x1xf32>
      %199 = arith.divf %197, %198 : vector<128x1xf32>
      %200 = vector.broadcast %192 : vector<128x1xf32> to vector<128x128xf32>
      %201 = arith.subf %182, %200 : vector<128x128xf32>
      %cst_92 = arith.constant 9.99999974E-6 : f32
      %202 = vector.broadcast %cst_92 : f32 to vector<128x1xf32>
      %203 = arith.addf %199, %202 : vector<128x1xf32>
      %204 = math.rsqrt %203 : vector<128x1xf32>
      %205 = vector.broadcast %204 : vector<128x1xf32> to vector<128x128xf32>
      %206 = arith.mulf %201, %205 : vector<128x128xf32>
      %207 = vector.broadcast %187 : vector<1x128xf32> to vector<128x128xf32>
      %208 = arith.mulf %206, %207 : vector<128x128xf32>
      %209 = vector.broadcast %188 : vector<1x128xf32> to vector<128x128xf32>
      %210 = arith.addf %208, %209 : vector<128x128xf32>
      %211 = arith.truncf %210 : vector<128x128xf32> to vector<128x128xbf16>
      %c0_93 = arith.constant 0 : index
      %c0_94 = arith.constant 0 : index
      %212 = vector.load %arg17[%c0_93, %c0_94] : memref<128x128xbf16, #tpu.memory_space<vmem>>, vector<128x128xbf16>
      %cst_95 = arith.constant dense<0.000000e+00> : vector<128x128xf32>
      %213 = tpu.matmul %211, %212, %cst_95 {dimension_numbers = #tpu.dot_dimension_numbers<[1], [0], [0], [1], [0, 0, 1, 1], [], []>} : vector<128x128xbf16>, vector<128x128xbf16>, vector<128x128xf32> -> vector<128x128xf32>
      %c0_96 = arith.constant 0 : index
      %c0_97 = arith.constant 0 : index
      %214 = vector.load %arg18[%c0_96, %c0_97] : memref<1x128xf32, #tpu.memory_space<vmem>>, vector<1x128xf32>
      %215 = vector.broadcast %214 : vector<1x128xf32> to vector<128x128xf32>
      %216 = arith.addf %213, %215 : vector<128x128xf32>
      %c0_98 = arith.constant 0 : index
      %c0_99 = arith.constant 0 : index
      %217 = vector.load %arg19[%c0_98, %c0_99] : memref<128x128xf32, #tpu.memory_space<vmem>>, vector<128x128xf32>
      tpu.vector_store %arg19[%c0_98, %c0_99], %216 {strides = array<i32>} : memref<128x128xf32, #tpu.memory_space<vmem>>, vector<128x128xf32>,
    } else {
    }
    return
  }
  func.func @transform_0(%arg0: i32, %arg1: i32) -> (i32, i32) {
    %c0_i32 = arith.constant 0 : i32
    %c0_i32_0 = arith.constant 0 : i32
    return %arg0, %c0_i32 : i32, i32
  }
  func.func @transform_1(%arg0: i32, %arg1: i32) -> (i32, i32) {
    %c0_i32 = arith.constant 0 : i32
    %c0_i32_0 = arith.constant 0 : i32
    %c0_i32_1 = arith.constant 0 : i32
    return %c0_i32, %c0_i32_0 : i32, i32
  }
  func.func @transform_2(%arg0: i32, %arg1: i32) -> (i32, i32, i32) {
    %c0_i32 = arith.constant 0 : i32
    %c0_i32_0 = arith.constant 0 : i32
    %c0_i32_1 = arith.constant 0 : i32
    return %arg1, %c0_i32, %c0_i32_0 : i32, i32, i32
  }
  func.func @transform_3(%arg0: i32, %arg1: i32) -> (i32, i32, i32) {
    %c0_i32 = arith.constant 0 : i32
    %c0_i32_0 = arith.constant 0 : i32
    %c0_i32_1 = arith.constant 0 : i32
    return %arg1, %c0_i32, %c0_i32_0 : i32, i32, i32
  }
  func.func @transform_4(%arg0: i32, %arg1: i32) -> (i32, i32, i32) {
    %c0_i32 = arith.constant 0 : i32
    %c0_i32_0 = arith.constant 0 : i32
    %c0_i32_1 = arith.constant 0 : i32
    return %arg1, %c0_i32, %c0_i32_0 : i32, i32, i32
  }
  func.func @transform_5(%arg0: i32, %arg1: i32) -> (i32, i32, i32) {
    %c0_i32 = arith.constant 0 : i32
    %c0_i32_0 = arith.constant 0 : i32
    %c0_i32_1 = arith.constant 0 : i32
    return %arg1, %c0_i32, %c0_i32_0 : i32, i32, i32
  }
  func.func @transform_6(%arg0: i32, %arg1: i32) -> (i32, i32, i32) {
    %c0_i32 = arith.constant 0 : i32
    %c0_i32_0 = arith.constant 0 : i32
    %c0_i32_1 = arith.constant 0 : i32
    return %arg1, %c0_i32, %c0_i32_0 : i32, i32, i32
  }
  func.func @transform_7(%arg0: i32, %arg1: i32) -> (i32, i32, i32) {
    %c0_i32 = arith.constant 0 : i32
    %c0_i32_0 = arith.constant 0 : i32
    %c0_i32_1 = arith.constant 0 : i32
    return %arg1, %c0_i32, %c0_i32_0 : i32, i32, i32
  }
  func.func @transform_8(%arg0: i32, %arg1: i32) -> (i32, i32, i32) {
    %c0_i32 = arith.constant 0 : i32
    %c0_i32_0 = arith.constant 0 : i32
    %c0_i32_1 = arith.constant 0 : i32
    return %arg1, %c0_i32, %c0_i32_0 : i32, i32, i32
  }
  func.func @transform_9(%arg0: i32, %arg1: i32) -> (i32, i32, i32) {
    %c0_i32 = arith.constant 0 : i32
    %c0_i32_0 = arith.constant 0 : i32
    %c0_i32_1 = arith.constant 0 : i32
    return %arg1, %c0_i32, %c0_i32_0 : i32, i32, i32
  }
  func.func @transform_10(%arg0: i32, %arg1: i32) -> (i32, i32, i32) {
    %c0_i32 = arith.constant 0 : i32
    %c0_i32_0 = arith.constant 0 : i32
    %c0_i32_1 = arith.constant 0 : i32
    return %arg1, %c0_i32, %c0_i32_0 : i32, i32, i32
  }
  func.func @transform_11(%arg0: i32, %arg1: i32) -> (i32, i32, i32) {
    %c0_i32 = arith.constant 0 : i32
    %c0_i32_0 = arith.constant 0 : i32
    %c0_i32_1 = arith.constant 0 : i32
    return %arg1, %c0_i32, %c0_i32_0 : i32, i32, i32
  }
  func.func @transform_12(%arg0: i32, %arg1: i32) -> (i32, i32, i32) {
    %c0_i32 = arith.constant 0 : i32
    %c0_i32_0 = arith.constant 0 : i32
    %c0_i32_1 = arith.constant 0 : i32
    return %arg1, %c0_i32, %c0_i32_0 : i32, i32, i32
  }
  func.func @transform_13(%arg0: i32, %arg1: i32) -> (i32, i32) {
    %c0_i32 = arith.constant 0 : i32
    %c0_i32_0 = arith.constant 0 : i32
    %c0_i32_1 = arith.constant 0 : i32
    return %c0_i32, %c0_i32_0 : i32, i32
  }
  func.func @transform_14(%arg0: i32, %arg1: i32) -> (i32, i32) {
    %c0_i32 = arith.constant 0 : i32
    %c0_i32_0 = arith.constant 0 : i32
    %c0_i32_1 = arith.constant 0 : i32
    return %c0_i32, %c0_i32_0 : i32, i32
  }
  func.func @transform_15(%arg0: i32, %arg1: i32) -> (i32, i32) {
    %c0_i32 = arith.constant 0 : i32
    %c0_i32_0 = arith.constant 0 : i32
    %c0_i32_1 = arith.constant 0 : i32
    return %c0_i32, %c0_i32_0 : i32, i32
  }
  func.func @transform_16(%arg0: i32, %arg1: i32) -> (i32, i32) {
    %c0_i32 = arith.constant 0 : i32
    %c0_i32_0 = arith.constant 0 : i32
    %c0_i32_1 = arith.constant 0 : i32
    return %c0_i32, %c0_i32_0 : i32, i32
  }
  func.func @transform_17(%arg0: i32, %arg1: i32) -> (i32, i32) {
    %c0_i32 = arith.constant 0 : i32
    %c0_i32_0 = arith.constant 0 : i32
    return %arg0, %c0_i32 : i32, i32
  }
}

</mosaic_0001>

<bundles_post_ra>
// kernel: tpu_custom_call.1
= control target key start
LH: loop header
LB: loop body
LE: loop exit
PB: predicated region body
PF: predicated region fallthrough
CT: control target
= control target key end

     0   :  { %s10817_s0 = inlined_call_operand.hbm [shape: f32[256,128], index: 0, kind: input, shape index: {}]   ;;  %s10818_s1 = inlined_call_operand.hbm [shape: f32[128,128], index: 1, kind: input, shape index: {}]   ;;  %s10819_s2 = inlined_call_operand.hbm [shape: bf16[2,128,384], index: 2, kind: input, shape index: {}]   ;;  %s10820_s3 = inlined_call_operand.hbm [shape: bf16[2,128,128], index: 3, kind: input, shape index: {}]   ;;  %s10821_s4 = inlined_call_operand.vmem [shape: f32[2,1,128], index: 4, kind: input, shape index: {}]   ;;  %s10822_s5 = inlined_call_operand.vmem [shape: f32[2,1,128], index: 5, kind: input, shape index: {}]   ;;  %s10823_s6 = inlined_call_operand.vmem [shape: f32[2,1,128], index: 6, kind: input, shape index: {}]   ;;  %s10824_s7 = inlined_call_operand.hbm [shape: bf16[2,128,512], index: 7, kind: input, shape index: {}]   ;;  %s10825_s8 = inlined_call_operand.vmem [shape: f32[2,1,512], index: 8, kind: input, shape index: {}]   ;;  %s10826_s9 = inlined_call_operand.hbm [shape: bf16[2,512,128], index: 9, kind: input, shape index: {}]   ;;  %s10827_s10 = inlined_call_operand.vmem [shape: f32[2,1,128], index: 10, kind: input, shape index: {}]   ;;  %s10828_s11 = inlined_call_operand.vmem [shape: f32[2,1,128], index: 11, kind: input, shape index: {}]   ;;  %s10829_s12 = inlined_call_operand.vmem [shape: f32[2,1,128], index: 12, kind: input, shape index: {}]   ;;  %s10830_s13 = inlined_call_operand.vmem [shape: f32[1,128], index: 13, kind: input, shape index: {}]   ;;  %s10831_s14 = inlined_call_operand.vmem [shape: f32[1,128], index: 14, kind: input, shape index: {}]   ;;  %s10832_s15 = inlined_call_operand.hbm [shape: bf16[128,128], index: 15, kind: input, shape index: {}]   ;;  %s10833_s16 = inlined_call_operand.vmem [shape: f32[1,128], index: 16, kind: input, shape index: {}]   ;;  %s10834_s17 = inlined_call_operand.hbm [shape: f32[256,128], index: 17, kind: output, shape index: {}]  }
   0x1   :  { %10916 = sst [smem:[#allocation60_spill]] %s10817_s0 }
   0x2   :  { %10917 = sst [smem:[#allocation61_spill]] %s10818_s1 }
   0x3   :  { %10918 = sst [smem:[#allocation62_spill]] %s10819_s2 }
   0x4   :  { %10919 = sst [smem:[#allocation63_spill]] %s10820_s3 }
   0x5   :  { %10920 = sst [smem:[#allocation64_spill]] %s10821_s4 }
   0x6   :  { %10921 = sst [smem:[#allocation65_spill]] %s10822_s5 }
   0x7   :  { %10922 = sst [smem:[#allocation66_spill]] %s10823_s6 }
   0x8   :  { %10923 = sst [smem:[#allocation67_spill]] %s10824_s7 }
   0x9   :  { %10924 = sst [smem:[#allocation68_spill]] %s10825_s8 }
   0xa   :  { %10925 = sst [smem:[#allocation69_spill]] %s10826_s9 }
   0xb   :  { %10926 = sst [smem:[#allocation70_spill]] %s10827_s10 }
   0xc   :  { %10927 = sst [smem:[#allocation71_spill]] %s10828_s11 }
   0xd   :  { %10928 = sst [smem:[#allocation72_spill]] %s10829_s12 }
   0xe   :  { %10929 = sst [smem:[#allocation73_spill]] %s10830_s13 }
   0xf   :  { %10930 = sst [smem:[#allocation74_spill]] %s10831_s14 }
  0x10   :  { %10931 = sst [smem:[#allocation75_spill]] %s10832_s15 }
  0x11   :  { %10932 = sst [smem:[#allocation76_spill]] %s10833_s16 }
  0x12   :  { %10933 = sst [smem:[#allocation77_spill]] %s10834_s17 }
  0x13   :  { %22 = vsyncpa [#allocation4], 0 }
  0x14   :  { %24 = vsyncpa [#allocation4 + $0x1], 0 }
  0x15   :  { %25 = vsyncpa [#allocation7], 0 }
  0x16   :  { %26 = vsyncpa [#allocation5], 0 }
  0x17   :  { %28 = vsyncpa [#allocation5 + $0x1], 0  ;;  %s8204_s24 = smov 0   ;;  %s8206_s25 = smov 0  }
  0x18   :  { %s8208_s26 = smov 0   ;;  %s8210_s27 = smov 0  }
  0x19   :  { %s8212_s28 = smov 0   ;;  %s8214_s29 = smov 0  }
  0x1a   :  { %s8216_s0 = smov 0   ;;  %s8218_s30 = smov 0  }
  0x1b   :  { %s8220_s18 = smov 0   ;;  %s8222_s19 = smov 0  }
  0x1c   :  { %s8224_s1 = smov 0  }
  0x1d LB: > { %10934 = sst [smem:[#allocation19_spill]] %s8058_s26  ;;  %s43_s20 = sadd.s32 1, %s8082_s18  ;;  %s8090_s1 = sphi %s8224_s1, %s34_s1   ;;  %s8086_s19 = sphi %s8222_s19, %s11095_s19   ;;  %s8082_s18 = sphi %s8220_s18, %s11094_s18   ;;  %s8078_s30 = sphi %s8218_s30, %s11093_s30   ;;  %s8074_s0 = sphi %s8216_s0, %s11092_s0   ;;  %s8070_s29 = sphi %s8214_s29, %s11091_s29   ;;  %s8066_s28 = sphi %s8212_s28, %s11099_s28   ;;  %s8062_s27 = sphi %s8210_s27, %s11098_s27   ;;  %s8058_s26 = sphi %s8208_s26, %s11089_s26   ;;  %s8054_s25 = sphi %s8206_s25, %s11097_s25   ;;  %s8050_s24 = sphi %s8204_s24, %s11096_s24  }
  0x1e   : > { %10935 = sst [smem:[#allocation20_spill]] %s8062_s27  ;;  %s46_s21 = sadd.s32 1, %s8086_s19 }
  0x1f   : > { %10936 = sst [smem:[#allocation21_spill]] %s8070_s29  ;;  %p44_p0 = scmp.ge.s32.totalorder %s43_s20, 2 }
  0x20   : > { %10937 = sst [smem:[#allocation22_spill]] %s8074_s0  ;;  %s53_s22 = sadd.s32 1, %s8070_s29 }
  0x21   : > { %10938 = sst [smem:[#allocation23_spill]] %s8078_s30  ;;  %p10841_p1 = scmp.ne.s32.totalorder %s8070_s29, %s8066_s28 }
  0x22   : > { %10939 = sst [smem:[#allocation24_spill]] %s8082_s18  ;;  %p10843_p2 = scmp.eq.s32.totalorder %s8090_s1, 0 }
  0x23   : > { %10940 = sst [smem:[#allocation25_spill]] %s8086_s19  ;;  %s11101_s20 = smov (%p44_p0, %s43_s20), 0 }
  0x24   : > { %10941 = sst [smem:[#allocation26_spill]] %s8090_s1  ;;  %s11103_s21 = smov (!%p44_p0, %s46_s21), %s8086_s19 }
  0x25   : > { %10942 = sst [smem:[#allocation27_spill]] %s11101_s20  ;;  %p8273_p3 = por %p10843_p2, %p10841_p1 }
  0x26   : > { %s97_s17 = ssub.s32 %s8082_s18, %s11101_s20  ;;  %p48_p4 = scmp.ge.s32.totalorder %s11103_s21, 2 }
  0x27   : > { %p8279_p5 = scmp.eq.s32.totalorder %s97_s17, 0  ;;  %p10842_p6 = scmp.lt.s32.totalorder %s8090_s1, 4 }
  0x28   : > { %s11105_s21 = smov (%p48_p4, %s11103_s21), 0  ;;  %s542_s14 = sand.u32 1, %s8090_s1  }
  0x29   : > { %10945 = sst [smem:[#allocation28_spill]] %s11105_s21  ;;  %s50_s16 = ssub.s32 %s8086_s19, %s11105_s21 }
  0x2a   : > { %p51_p7 = scmp.eq.s32.totalorder %s50_s16, 0  ;;  %s544_s13 = sand.u32 1, %s8070_s29  }
  0x2b   : > { %s6249_s12 = sshll.u32 %s8086_s19, 11  ;;  %s6043_s10 = sshll.u32 %s544_s13, 7 }
  0x2c   : > { %s8292_s11 = scalar_select %p51_p7, %s8070_s29, %s53_s22  }
  0x2d   : > { %s10947_s20 = sld [smem:[#allocation60_spill]]  ;;  %p8303_p8 = pnand %p10842_p6, %p8273_p3 }
  0x2e   : > { %10946 = sst [smem:[#allocation29_spill]] %s8292_s11  ;;  %s546_s16 = scalar_lea.vmem [#allocation3], %s6043_s10 }
  0x2f   : > { %s553_s22 = sshll.u32 %s546_s16, 4  ;;  %s8309_s13 = scalar_lea.sflag [#allocation4], %s542_s14  ;;  %s8307_s22 = int_to_ptr.vmem [resolvable:$true] %s553_s22 }
  0x30   : > { %p7752_p10 = pneg %p8303_p8 }
  0x33   : > { %s8297_s5 = scalar_lea.hbm %s10947_s20, %s6249_s12  ;;  %s7755_s23 = scalar_lea.hbm %s10947_s20, 4096 }
  0x34   : > { %s7750_s6 = scalar_lea.hbm %s8297_s5, 2048  ;;  %p7756_p13 = scmp.lt.u32.totalorder %s8297_s5, %s10947_s20 }
  0x35   : > { %p7751_p9 = scmp.ne.s32.totalorder %s8297_s5, %s7750_s6  ;;  %p7757_p0 = scmp.lt.u32.totalorder %s7755_s23, %s7750_s6 }
  0x36   : > { %p7759_p4 = scmp.lt.u32.totalorder %s7750_s6, %s8297_s5 }
  0x37   : > { %p7753_p11 = pnand %p7752_p10, %p7751_p9  ;;  %p7758_p3 = por %p7757_p0, %p7756_p13 }
  0x39   : > { %p7754_p12 = pneg %p7753_p11  ;;  %p7760_p7 = por %p7759_p4, %p7758_p3 }
  0x3b   : > { %p7761_p1 = pnand %p7760_p7, %p7754_p12 }
  0x3d   : > { %7764 = shalt.err (!%p7761_p1)
}
  0x3e   : > { %s7765_s10 = scalar_lea.vmem %s8307_s22, 2048  ;;  %s8092_s14 = smov [#allocation3]  }
  0x3f   : > { %p7766_p9 = scmp.ne.s32.totalorder %s8307_s22, %s7765_s10  ;;  %s7770_s16 = sshll.u32 %s8092_s14, 4  ;;  %s7771_s16 = int_to_ptr.vmem [resolvable:$false] %s7770_s16 }
  0x40   : > { %s7772_s19 = scalar_lea.vmem %s7771_s16, 4096  ;;  %p7773_p2 = scmp.lt.s32.totalorder %s8307_s22, %s7771_s16 }
  0x41   : > { %p7768_p11 = pnand %p7766_p9, %p7752_p10  ;;  %p7774_p13 = scmp.lt.s32.totalorder %s7772_s19, %s7765_s10 }
  0x43   : > { %p7769_p6 = pneg %p7768_p11  ;;  %p7775_p0 = por %p7774_p13, %p7773_p2 }
  0x45   : > { %p7776_p3 = pnand %p7775_p0, %p7769_p6 }
  0x47   : > { %7779 = shalt.err (!%p7776_p3)
}
  0x48   : > { %s10844_s21 = smov 128   ;;  %s10845_s6 = smov 8  }
  0x49   : > { %7111 = dma.hbm_to_vmem [thread:$0]  (!%p8303_p8), %s8297_s5, 2048, %s8307_s22, %s8309_s13, %s10844_s21, %s10844_s21, %s10845_s6  }
  0x4a   : > { %s7079_s8 = smul.u32 3072, %s8082_s18  ;;  %s100_s12 = sadd.s32 1, %s8058_s26 }
  0x4b   : > { %p107_p1 = scmp.ne.s32.totalorder %s8058_s26, %s8054_s25  ;;  %p10950_p2 = scmp.eq.s32.totalorder %s8090_s1, 0 }
  0x4c   : > { %s8347_s23 = scalar_select %p8279_p5, %s8058_s26, %s100_s12  }
  0x4d   : > { %p109_p6 = por %p107_p1, %p10950_p2  ;;  %s8352_s10 = sand.u32 1, %s8058_s26  }
  0x4e   : > { %10949 = sst [smem:[#allocation30_spill]] %s8347_s23  ;;  %s7078_s14 = smul.u32 192, %s8352_s10 }
  0x4f   : > { %s10951_s2 = sld [smem:[#allocation62_spill]]  ;;  %p10952_p10 = scmp.lt.s32.totalorder %s8090_s1, 4 }
  0x50   : > { %s567_s30 = scalar_lea.vmem [#allocation8], %s7078_s14 }
  0x51   : > { %p8362_p8 = pnand %p10952_p10, %p109_p6  ;;  %s574_s22 = sshll.u32 %s567_s30, 4  ;;  %s8366_s22 = int_to_ptr.vmem [resolvable:$true] %s574_s22 }
  0x53   : > { %s10953_s5 = scalar_select %p8362_p8, 1, 0 }
  0x54   : > { %p8372_p12 = pneg %p8362_p8 }
  0x55   : > { %s8358_s17 = scalar_lea.hbm %s10951_s2, %s7079_s8  ;;  %s7785_s21 = scalar_lea.hbm %s10951_s2, 6144 }
  0x56   : > { %s7780_s12 = scalar_lea.hbm %s8358_s17, 3072  ;;  %p7786_p9 = scmp.lt.u32.totalorder %s8358_s17, %s10951_s2 }
  0x57   : > { %p7781_p5 = scmp.ne.s32.totalorder %s8358_s17, %s7780_s12  ;;  %p7787_p11 = scmp.lt.u32.totalorder %s7785_s21, %s7780_s12 }
  0x58   : > { %s10954_s8 = scalar_select %p8372_p12, 1, 0 }
  0x59   : > { %p7783_p4 = pnand %p8372_p12, %p7781_p5  ;;  %p7788_p13 = por %p7787_p11, %p7786_p9 }
  0x5a   : > { %p7789_p0 = scmp.lt.u32.totalorder %s7780_s12, %s8358_s17 }
  0x5b   : > { %p7784_p7 = pneg %p7783_p4 }
  0x5c   : > { %p7790_p3 = por %p7789_p0, %p7788_p13 }
  0x5e   : > { %p7791_p1 = pnand %p7790_p3, %p7784_p7 }
  0x60   : > { %7794 = shalt.err (!%p7791_p1)
}
  0x61   : > { %s7795_s30 = scalar_lea.vmem %s8366_s22, 3072  ;;  %s8095_s16 = smov [#allocation8]  }
  0x62   : > { %p7796_p2 = scmp.ne.s32.totalorder %s8366_s22, %s7795_s30  ;;  %s7800_s19 = sshll.u32 %s8095_s16, 4  ;;  %s7801_s19 = int_to_ptr.vmem [resolvable:$false] %s7800_s19 }
  0x63   : > { %s7802_s6 = scalar_lea.vmem %s7801_s19, 6144  ;;  %p7803_p5 = scmp.lt.s32.totalorder %s8366_s22, %s7801_s19 }
  0x64   : > { %p7798_p6 = pnand %p7796_p2, %p8372_p12  ;;  %p7804_p4 = scmp.lt.s32.totalorder %s7802_s6, %s7795_s30 }
  0x66   : > { %p7799_p10 = pneg %p7798_p6  ;;  %p7805_p9 = por %p7804_p4, %p7803_p5 }
  0x68   : > { %p7806_p11 = pnand %p7805_p9, %p7799_p10 }
  0x6a   : > { %7809 = shalt.err (!%p7806_p11)
}
  0x6b   : > { %s8096_s21 = smov 192   ;;  %s8097_s12 = smov 12  }
  0x6c   : > { %7114 = dma.hbm_to_vmem [thread:$0]  (!%p8362_p8), %s8358_s17, 3072, %s8366_s22, %s8309_s13, %s8096_s21, %s8096_s21, %s8097_s12  }
  0x6d   : > { %s6047_s14 = sshll.u32 %s8352_s10, 6  ;;  %s6250_s16 = sshll.u32 %s8082_s18, 10 }
  0x6e   : > { %s10955_s3 = sld [smem:[#allocation63_spill]]  ;;  %s588_s19 = scalar_lea.vmem [#allocation9], %s6047_s14 }
  0x6f   : > { %s595_s6 = sshll.u32 %s588_s19, 4  ;;  %s8403_s6 = int_to_ptr.vmem [resolvable:$true] %s595_s6 }
  0x74   : > { %s8401_s30 = scalar_lea.hbm %s10955_s3, %s6250_s16  ;;  %s7815_s21 = scalar_lea.hbm %s10955_s3, 2048 }
  0x75   : > { %s7810_s11 = scalar_lea.hbm %s8401_s30, 1024  ;;  %p7816_p3 = scmp.lt.u32.totalorder %s8401_s30, %s10955_s3 }
  0x76   : > { %p7811_p7 = scmp.ne.s32.totalorder %s8401_s30, %s7810_s11  ;;  %p7817_p1 = scmp.lt.u32.totalorder %s7815_s21, %s7810_s11 }
  0x77   : > { %p7819_p6 = scmp.lt.u32.totalorder %s7810_s11, %s8401_s30 }
  0x78   : > { %p7813_p13 = pnand %p7811_p7, %p8372_p12  ;;  %p7818_p2 = por %p7817_p1, %p7816_p3 }
  0x7a   : > { %p7814_p0 = pneg %p7813_p13  ;;  %p7820_p10 = por %p7819_p6, %p7818_p2 }
  0x7c   : > { %p7821_p5 = pnand %p7820_p10, %p7814_p0 }
  0x7e   : > { %7824 = shalt.err (!%p7821_p5)
}
  0x7f   : > { %s7825_s12 = scalar_lea.vmem %s8403_s6, 1024  ;;  %s8098_s14 = smov [#allocation9]  }
  0x80   : > { %p7826_p4 = scmp.ne.s32.totalorder %s8403_s6, %s7825_s12  ;;  %s7830_s16 = sshll.u32 %s8098_s14, 4  ;;  %s7831_s16 = int_to_ptr.vmem [resolvable:$false] %s7830_s16 }
  0x81   : > { %s7832_s19 = scalar_lea.vmem %s7831_s16, 2048  ;;  %p7833_p7 = scmp.lt.s32.totalorder %s8403_s6, %s7831_s16 }
  0x82   : > { %p7828_p9 = pnand %p7826_p4, %p8372_p12  ;;  %p7834_p13 = scmp.lt.s32.totalorder %s7832_s19, %s7825_s12 }
  0x84   : > { %p7829_p11 = pneg %p7828_p9  ;;  %p7835_p3 = por %p7834_p13, %p7833_p7 }
  0x86   : > { %p7836_p1 = pnand %p7835_p3, %p7829_p11 }
  0x88   : > { %7839 = shalt.err (!%p7836_p1)
}
  0x89   : > { %s10849_s11 = smov 64   ;;  %s10851_s17 = smov 4  }
  0x8a   : > { %7117 = dma.hbm_to_vmem [thread:$0]  (!%p8362_p8), %s8401_s30, 1024, %s8403_s6, %s8309_s13, %s10849_s11, %s10849_s11, %s10851_s17  }
  0x8b   : > { %s8431_s22 = sadd.s32 4294967295, %s8090_s1   ;;  %s6038_s21 = sadd.s32 4294967294, %s8090_s1  }
  0x8c   : > { %p66_p0 = scmp.ne.s32.totalorder %s8066_s28, %s8062_s27  ;;  %p10860_p2 = scmp.eq.s32.totalorder %s8431_s22, 0 }
  0x8d   : > { %p113_p6 = scmp.ne.s32.totalorder %s8054_s25, %s8050_s24  ;;  %p481_p10 = scmp.eq.s32.totalorder %s8431_s22, 3 }
  0x8e   : > { %p487_p5 = scmp.eq.s32.totalorder %s6038_s21, 3  ;;  %p8442_p4 = por %p10860_p2, %p66_p0 }
  0x8f   : > { %p8448_p9 = por %p113_p6, %p10860_p2  ;;  %p10959_p11 = scmp.ne.s32.totalorder %s8070_s29, %s8066_s28 }
  0x90   : > { %s10956_s2 = scalar_select %p8442_p4, 1, 0 }
  0x91   : > { %s10957_s30 = scalar_select %p8448_p9, 1, 0 }
  0x92   : > { %p8455_p7 = por %p481_p10, %p10959_p11  ;;  %p8459_p13 = por %p487_p5, %p66_p0 }
  0x93   : > { %10958 = sst [smem:[#allocation31_spill]] %s10957_s30  ;;  %p6039_p3 = scmp.ge.s32.totalorder %s8090_s1, 1 }
  0x94   : > { %s10960_s6 = scalar_select %p8455_p7, 1, 0 }
  0x95   : > { %s10962_s24 = scalar_select %p8459_p13, 1, 0 }
  0x96   : > { %10961 = sst [smem:[#allocation32_spill]] %s10960_s6  ;;  %p494_p1 = scmp.lt.s32.totalorder %s8090_s1, 5 }
  0x97   : > { %10963 = sst [smem:[#allocation33_spill]] %s10962_s24  ;;  %s8101_s12 = smov [#allocation6]  }
  0x98   : > { %p8465_p8 = pnand %p6039_p3, %p494_p1  ;;  %s506_s14 = sshll.u32 %s8101_s12, 4  ;;  %s8469_s14 = int_to_ptr.vmem [resolvable:$true] %s506_s14 }
  0x99   : > { %s10858_s16 = sshll.u32 %s8352_s10, 8  ;;  %s10864_s19 = sshll.u32 %s8082_s18, 12 }
  0x9a   : > { %s10964_s20 = scalar_select %p8465_p8, 1, 0 }
  0x9b   : > { %p7101_p6 = pneg %p8465_p8  ;;  %s627_s21 = scalar_lea.vmem [#allocation10], %s10858_s16 }
  0x9c   : > { %s634_s11 = sshll.u32 %s627_s21, 4  ;;  %s10966_s7 = sld [smem:[#allocation67_spill]]  ;;  %s8490_s11 = int_to_ptr.vmem [resolvable:$true] %s634_s11 }
  0x9d   : > { %p8479_p0 = pnand %p7101_p6, %p10860_p2  ;;  %s10967_s24 = sld [smem:[#allocation61_spill]] }
  0x9f   : > { %p10867_p5 = pneg %p8479_p0 }
  0xa2   : > { %s8488_s12 = scalar_lea.hbm %s10966_s7, %s10864_s19 }
  0xa3   : > { %s10968_s6 = smov %s10967_s24  ;;  %s7840_s16 = scalar_lea.hbm %s10967_s24, 2048 }
  0xa4   : > { %p7841_p10 = scmp.ne.s32.totalorder %s10968_s6, %s7840_s16  ;;  %p7847_p1 = scmp.lt.u32.totalorder %s7840_s16, %s10968_s6 }
  0xa6   : > { %p7843_p11 = pnand %p10867_p5, %p7841_p10 }
  0xa8   : > { %p7844_p3 = pneg %p7843_p11 }
  0xaa   : > { %p7849_p6 = pnand %p7847_p1, %p7844_p3 }
  0xac   : > { %7852 = shalt.err (!%p7849_p6)
}
  0xad   : > { %s7853_s26 = scalar_lea.vmem %s8469_s14, 2048  ;;  %p7861_p9 = scmp.lt.s32.totalorder %s8469_s14, %s8469_s14 }
  0xae   : > { %p7854_p2 = scmp.ne.s32.totalorder %s8469_s14, %s7853_s26  ;;  %p7862_p10 = scmp.lt.s32.totalorder %s7853_s26, %s7853_s26 }
  0xb0   : > { %p7856_p13 = pnand %p7854_p2, %p10867_p5  ;;  %p7863_p11 = por %p7862_p10, %p7861_p9 }
  0xb2   : > { %p7857_p7 = pneg %p7856_p13 }
  0xb4   : > { %p7864_p4 = pnand %p7863_p11, %p7857_p7 }
  0xb6   : > { %7867 = shalt.err (!%p7864_p4)
}
  0xb7   : > { %s10969_s27 = smov 8   ;;  %s10970_s23 = smov 128  }
  0xb8   : > { %7104 = dma.hbm_to_vmem [thread:$0]  (!%p8479_p0), %s10968_s6, 2048, %s8469_s14, [#allocation7], %s10970_s23, %s10970_s23, %s10969_s27  }
  0xb9   : > { %s7868_s21 = scalar_lea.hbm %s8488_s12, 4096  ;;  %s7873_s26 = scalar_lea.hbm %s10966_s7, 8192 }
  0xba   : > { %p7869_p2 = scmp.ne.s32.totalorder %s8488_s12, %s7868_s21  ;;  %p7874_p7 = scmp.lt.u32.totalorder %s8488_s12, %s10966_s7 }
  0xbb   : > { %p7875_p13 = scmp.lt.u32.totalorder %s7873_s26, %s7868_s21  ;;  %p7877_p1 = scmp.lt.u32.totalorder %s7868_s21, %s8488_s12 }
  0xbc   : > { %p7871_p9 = pnand %p7869_p2, %p8372_p12 }
  0xbd   : > { %p7876_p3 = por %p7875_p13, %p7874_p7 }
  0xbe   : > { %p7872_p4 = pneg %p7871_p9 }
  0xbf   : > { %p7878_p6 = por %p7877_p1, %p7876_p3 }
  0xc1   : > { %p7879_p10 = pnand %p7878_p6, %p7872_p4 }
  0xc3   : > { %7882 = shalt.err (!%p7879_p10)
}
  0xc4   : > { %s7883_s14 = scalar_lea.vmem %s8490_s11, 4096  ;;  %s8102_s27 = smov [#allocation10]  }
  0xc5   : > { %p7884_p11 = scmp.ne.s32.totalorder %s8490_s11, %s7883_s14  ;;  %s7888_s23 = sshll.u32 %s8102_s27, 4  ;;  %s7889_s23 = int_to_ptr.vmem [resolvable:$false] %s7888_s23 }
  0xc6   : > { %s7890_s1 = scalar_lea.vmem %s7889_s23, 8192  ;;  %p7891_p5 = scmp.lt.s32.totalorder %s8490_s11, %s7889_s23 }
  0xc7   : > { %p7886_p2 = pnand %p7884_p11, %p8372_p12  ;;  %p7892_p8 = scmp.lt.s32.totalorder %s7890_s1, %s7883_s14 }
  0xc9   : > { %p7887_p9 = pneg %p7886_p2  ;;  %p7893_p7 = por %p7892_p8, %p7891_p5 }
  0xcb   : > { %p7894_p13 = pnand %p7893_p7, %p7887_p9 }
  0xcd   : > { %7897 = shalt.err (!%p7894_p13)
}
  0xce   : > { %s8103_s19 = smov 256   ;;  %s8104_s24 = smov 16  }
  0xcf   : > { %p10971_p4 = scmp.ne.s32.totalorder %s10953_s5, 0  ;;  %s8105_s16 = smov [#allocation12]  }
  0xd0   : > { %s525_s21 = sshll.u32 %s8105_s16, 4  ;;  %s10972_s3 = sshll.u32 %s8082_s18, 12  ;;  %s526_s21 = int_to_ptr.vmem [resolvable:$true] %s525_s21 }
  0xd1   : > { %7120 = dma.hbm_to_vmem [thread:$0]  (!%p10971_p4), %s8488_s12, 4096, %s8490_s11, %s8309_s13, %s8103_s19, %s8103_s19, %s8104_s24  }
  0xd2   : > { %s10973_s9 = sld [smem:[#allocation69_spill]]  ;;  %s10974_s27 = sshll.u32 %s8352_s10, 8 }
  0xd3   : > { %s655_s23 = scalar_lea.vmem [#allocation11], %s10974_s27  ;;  %s10975_s15 = sld [smem:[#allocation75_spill]] }
  0xd4   : > { %s662_s1 = sshll.u32 %s655_s23, 4  ;;  %p10976_p5 = pneg %p8479_p0  ;;  %s8576_s1 = int_to_ptr.vmem [resolvable:$true] %s662_s1 }
  0xd8   : > { %s8549_s14 = scalar_lea.hbm %s10973_s9, %s10972_s3 }
  0xd9   : > { %s7898_s4 = scalar_lea.hbm %s10975_s15, 1024 }
  0xda   : > { %p7899_p8 = scmp.ne.s32.totalorder %s10975_s15, %s7898_s4  ;;  %p7905_p6 = scmp.lt.u32.totalorder %s7898_s4, %s10975_s15 }
  0xdc   : > { %p7901_p3 = pnand %p7899_p8, %p10976_p5 }
  0xde   : > { %p7902_p1 = pneg %p7901_p3 }
  0xe0   : > { %p7907_p10 = pnand %p7905_p6, %p7902_p1 }
  0xe2   : > { %7910 = shalt.err (!%p7907_p10)
}
  0xe3   : > { %s7911_s10 = scalar_lea.vmem %s526_s21, 1024  ;;  %p10977_p2 = pmov %p10976_p5 }
  0xe4   : > { %p7912_p11 = scmp.ne.s32.totalorder %s526_s21, %s7911_s10  ;;  %p7919_p13 = scmp.lt.s32.totalorder %s526_s21, %s526_s21 }
  0xe5   : > { %p7920_p4 = scmp.lt.s32.totalorder %s7911_s10, %s7911_s10 }
  0xe6   : > { %p7914_p9 = pnand %p7912_p11, %p10977_p2 }
  0xe7   : > { %p7921_p12 = por %p7920_p4, %p7919_p13 }
  0xe8   : > { %p7915_p7 = pneg %p7914_p9 }
  0xea   : > { %p7922_p5 = pnand %p7921_p12, %p7915_p7 }
  0xec   : > { %7925 = shalt.err (!%p7922_p5)
}
  0xed   : > { %s10978_s7 = smov 4   ;;  %s10979_s0 = smov 64  }
  0xee   : > { %7107 = dma.hbm_to_vmem [thread:$0]  (!%p8479_p0), %s10975_s15, 1024, %s526_s21, [#allocation7], %s10979_s0, %s10979_s0, %s10978_s7  }
  0xef   : > { %s7926_s6 = scalar_lea.hbm %s8549_s14, 4096  ;;  %p10980_p12 = scmp.ne.s32.totalorder %s10954_s8, 0 }
  0xf0   : > { %p7927_p4 = scmp.ne.s32.totalorder %s8549_s14, %s7926_s6  ;;  %s7931_s24 = scalar_lea.hbm %s10973_s9, 8192 }
  0xf1   : > { %p7932_p1 = scmp.lt.u32.totalorder %s8549_s14, %s10973_s9  ;;  %p7933_p6 = scmp.lt.u32.totalorder %s7931_s24, %s7926_s6 }
  0xf2   : > { %p7929_p8 = pnand %p7927_p4, %p10980_p12  ;;  %p7935_p11 = scmp.lt.u32.totalorder %s7926_s6, %s8549_s14 }
  0xf3   : > { %p7934_p10 = por %p7933_p6, %p7932_p1 }
  0xf4   : > { %p7930_p3 = pneg %p7929_p8 }
  0xf5   : > { %p7936_p2 = por %p7935_p11, %p7934_p10 }
  0xf7   : > { %p7937_p0 = pnand %p7936_p2, %p7930_p3 }
  0xf9   : > { %7940 = shalt.err (!%p7937_p0)
}
  0xfa   : > { %s7941_s21 = scalar_lea.vmem %s8576_s1, 4096  ;;  %s8106_s29 = smov [#allocation11]  }
  0xfb   : > { %p7942_p9 = scmp.ne.s32.totalorder %s8576_s1, %s7941_s21  ;;  %s7946_s26 = sshll.u32 %s8106_s29, 4  ;;  %s7947_s26 = int_to_ptr.vmem [resolvable:$false] %s7946_s26 }
  0xfc   : > { %s7948_s27 = scalar_lea.vmem %s7947_s26, 8192  ;;  %p7949_p5 = scmp.lt.s32.totalorder %s8576_s1, %s7947_s26 }
  0xfd   : > { %p7944_p7 = pnand %p7942_p9, %p10980_p12  ;;  %p7950_p4 = scmp.lt.s32.totalorder %s7948_s27, %s7941_s21 }
  0xff   : > { %p7945_p13 = pneg %p7944_p7  ;;  %p7951_p8 = por %p7950_p4, %p7949_p5 }
 0x101   : > { %p7952_p1 = pnand %p7951_p8, %p7945_p13 }
 0x103   : > { %7955 = shalt.err (!%p7952_p1)
}
 0x104   : > { %p10981_p3 = scmp.ne.s32.totalorder %s10953_s5, 0  ;;  %p10982_p12 = scmp.ne.s32.totalorder %s10964_s20, 0 }
 0x106   : > { %7123 = dma.hbm_to_vmem [thread:$0]  (!%p10981_p3), %s8549_s14, 4096, %s8576_s1, %s8309_s13, %s10979_s0, %s10979_s0, %s10978_s7  }
 0x107   : > { %692 = sbr.rel (%p10982_p12) target bundleno = 4845 (0x12ed), region = 88 }
 0x10e   : > { %s694_s8 = sand.u32 1, %s8431_s22   ;;  %s10875_s23 = sand.u32 1, %s8066_s28  }
 0x10f   : > { %s8609_s11 = sshll.u32 %s10875_s23, 7  ;;  %s695_s5 = scalar_lea.sflag [#allocation4], %s694_s8 }
 0x110   : > { %s8612_s12 = scalar_lea.vmem [#allocation3], %s8609_s11  ;;  %p10983_p6 = scmp.ne.s32.totalorder %s10956_s2, 0 }
 0x112   : > { %8029 = dma.done.wait (%p10983_p6), %s695_s5, 2048  }
 0x113   : > { %8031 = vsyncadd (%p10983_p6), %s695_s5, 4294965248  ;;  %p10984_p10 = scmp.eq.s32.totalorder %s8431_s22, 0 }
 0x115   : > { %8033 = dma.done.wait (%p10984_p10), [#allocation7], 2048   ;;  %p10985_p11 = pmov %p10984_p10 }
 0x116   : > { %s10986_s13 = sld [smem:[#allocation31_spill]]  ;;  %s709_s20 = sand.u32 1, %s8054_s25  }
 0x117   : > { %8035 = vsyncadd (%p10985_p11), [#allocation7], 4294965248  ;;  %s7080_s14 = smul.u32 192, %s709_s20 }
 0x119   : > { %s8623_s1 = scalar_lea.vmem [#allocation8], %s7080_s14 }
 0x11c   : > { %p10987_p2 = scmp.ne.s32.totalorder %s10986_s13, 0 }
 0x11e   : > { %8037 = dma.done.wait (%p10987_p2), %s695_s5, 12288  }
 0x11f   : > { %8039 = vsyncadd (%p10987_p2), %s695_s5, 4294955008  ;;  %s6059_s2 = sshll.u32 %s709_s20, 6  ;;  %s6060_s10 = sshll.u32 %s709_s20, 8 }
 0x120   : > { %s8629_s7 = scalar_lea.vmem [#allocation9], %s6059_s2  ;;  %s8631_s0 = scalar_lea.vmem [#allocation10], %s6060_s10 }
 0x121   : > { %s8633_s4 = scalar_lea.vmem [#allocation11], %s6060_s10  ;;  %p10988_p0 = pmov %p10984_p10 }
 0x123   : > { %8041 = dma.done.wait (%p10988_p0), [#allocation7], 1024   ;;  %p10989_p9 = pmov %p10988_p0 }
 0x124   : > { %s10990_s30 = sld [smem:[#allocation22_spill]]  ;;  %s10993_s8 = sld [smem:[#allocation66_spill]] }
 0x125   : > { %8043 = vsyncadd (%p10989_p9), [#allocation7], 4294966272  ;;  %s10994_s2 = sld [smem:[#allocation68_spill]]  ;;  %s10995_s23 = sld [smem:[#allocation70_spill]] }
 0x126   : > { %s10996_s16 = sld [smem:[#allocation71_spill]]  ;;  %s10997_s21 = sld [smem:[#allocation72_spill]] }
 0x127   : > { %s8674_s26 = scalar_lea.vmem [#allocation13], %s8609_s11 }
 0x12a   : > { %p836_p7 = scmp.lt.s32.totalorder %s10990_s30, 1  ;;  %p6065_p13 = scmp.ne.s32.totalorder %s10990_s30, 0 }
 0x12b   : > { %v864_v0 = vld [vmem:[%s8612_s12] sm:$0xff] (!%p6065_p13)  ;;  %v865_v1 = vld [vmem:[%s8612_s12 + $0x8] sm:$0xff] (!%p6065_p13)  ;;  %v866_v2 = vld [vmem:[%s8612_s12 + $0x10] sm:$0xff] (!%p6065_p13) }
 0x12c   : > { %s8641_s6 = scalar_select %p836_p7, %s10990_s30, 1 }
 0x12d   : > { %863 = sbr.rel (%p6065_p13) target bundleno = 309 (0x135), region = 120  ;;  %880 = vst [vmem:[#allocation2] sm:$0xff] (!%p6065_p13), %v864_v0  ;;  %881 = vst [vmem:[#allocation2 + $0x8] sm:$0xff] (!%p6065_p13), %v865_v1  ;;  %v867_v3 = vld [vmem:[%s8612_s12 + $0x18] sm:$0xff] (!%p6065_p13)  ;;  %v868_v4 = vld [vmem:[%s8612_s12 + $0x20] sm:$0xff] (!%p6065_p13) }
 0x12e   : > { %s844_s5 = scalar_lea.vmem %s10993_s8, %s8641_s6  ;;  %s6064_s13 = sshll.u32 %s8641_s6, 2  ;;  %882 = vst [vmem:[#allocation2 + $0x10] sm:$0xff] (!%p6065_p13), %v866_v2  ;;  %v869_v5 = vld [vmem:[%s8612_s12 + $0x28] sm:$0xff] (!%p6065_p13)  ;;  %883 = vst [vmem:[#allocation2 + $0x18] sm:$0xff] (!%p6065_p13), %v867_v3  ;;  %v870_v6 = vld [vmem:[%s8612_s12 + $0x30] sm:$0xff] (!%p6065_p13) }
 0x12f   : > { %s8659_s10 = scalar_lea.vmem %s10994_s2, %s6064_s13  ;;  %s851_s9 = scalar_lea.vmem %s10995_s23, %s8641_s6  ;;  %884 = vst [vmem:[#allocation2 + $0x20] sm:$0xff] (!%p6065_p13), %v868_v4  ;;  %885 = vst [vmem:[#allocation2 + $0x28] sm:$0xff] (!%p6065_p13), %v869_v5  ;;  %v871_v7 = vld [vmem:[%s8612_s12 + $0x38] sm:$0xff] (!%p6065_p13)  ;;  %v872_v8 = vld [vmem:[%s8612_s12 + $0x40] sm:$0xff] (!%p6065_p13) }
 0x130   : > { %s854_s18 = scalar_lea.vmem %s10996_s16, %s8641_s6  ;;  %s857_s29 = scalar_lea.vmem %s10997_s21, %s8641_s6  ;;  %886 = vst [vmem:[#allocation2 + $0x30] sm:$0xff] (!%p6065_p13), %v870_v6  ;;  %887 = vst [vmem:[#allocation2 + $0x38] sm:$0xff] (!%p6065_p13), %v871_v7  ;;  %v873_v9 = vld [vmem:[%s8612_s12 + $0x48] sm:$0xff] (!%p6065_p13)  ;;  %v874_v10 = vld [vmem:[%s8612_s12 + $0x50] sm:$0xff] (!%p6065_p13) }
 0x131   : > { %888 = vst [vmem:[#allocation2 + $0x40] sm:$0xff] (!%p6065_p13), %v872_v8  ;;  %v875_v11 = vld [vmem:[%s8612_s12 + $0x58] sm:$0xff] (!%p6065_p13)  ;;  %889 = vst [vmem:[#allocation2 + $0x48] sm:$0xff] (!%p6065_p13), %v873_v9  ;;  %v876_v12 = vld [vmem:[%s8612_s12 + $0x60] sm:$0xff] (!%p6065_p13) }
 0x132   : > { %890 = vst [vmem:[#allocation2 + $0x50] sm:$0xff] (!%p6065_p13), %v874_v10  ;;  %891 = vst [vmem:[#allocation2 + $0x58] sm:$0xff] (!%p6065_p13), %v875_v11  ;;  %v877_v13 = vld [vmem:[%s8612_s12 + $0x68] sm:$0xff] (!%p6065_p13)  ;;  %v878_v14 = vld [vmem:[%s8612_s12 + $0x70] sm:$0xff] (!%p6065_p13) }
 0x133   : > { %892 = vst [vmem:[#allocation2 + $0x60] sm:$0xff] (!%p6065_p13), %v876_v12  ;;  %893 = vst [vmem:[#allocation2 + $0x68] sm:$0xff] (!%p6065_p13), %v877_v13  ;;  %v879_v15 = vld [vmem:[%s8612_s12 + $0x78] sm:$0xff] (!%p6065_p13) }
 0x134   : > { %894 = vst [vmem:[#allocation2 + $0x70] sm:$0xff] %v878_v14  ;;  %895 = vst [vmem:[#allocation2 + $0x78] sm:$0xff] %v879_v15 }
 0x135 PF: > { %v7238_v16 = vld [vmem:[%s8623_s1 + $0x4] ss:$12 sps:$4 sm:$0xff]   ;;  %v7240_v17 = vld [vmem:[%s8623_s1] ss:$12 sps:$4 sm:$0xff]   ;;  %v10877_v18 = vmov 0   ;;  %vm1330_vm0 = vcmask 261120  }
 0x136   : > { %1112 = vmatprep.mubr.bf16.mxu0 %v10877_v18  ;;  %1080 = vmatprep.subr.bf16.mxu0 %v7238_v16  ;;  %v7241_v19 = vld [vmem:[%s8623_s1 + $0x1c] ss:$12 sps:$4 sm:$0xff]   ;;  %v7243_v20 = vld [vmem:[%s8623_s1 + $0x18] ss:$12 sps:$4 sm:$0xff]   ;;  %v7244_v21 = vld [vmem:[%s8623_s1 + $0x34] ss:$12 sps:$4 sm:$0xff]  }
 0x137   : > { %1081 = vmatpush1.bf16.msra.mxu0 %v7240_v17  ;;  %v7246_v22 = vld [vmem:[%s8623_s1 + $0x30] ss:$12 sps:$4 sm:$0xff]   ;;  %v7247_v23 = vld [vmem:[%s8623_s1 + $0x4c] ss:$12 sps:$4 sm:$0xff]   ;;  %v896_v24 = vld [vmem:[#allocation2] sm:$0xff]  ;;  %s8108_s15 = smov 96  }
 0x138   : > { %1082 = vmatprep.subr.bf16.mxu0 %v7241_v19  ;;  %v7249_v25 = vld [vmem:[%s8623_s1 + $0x48] ss:$12 sps:$4 sm:$0xff]   ;;  %v7250_v27 = vld [vmem:[%s8623_s1 + $0x64] ss:$12 sps:$4 sm:$0xff]   ;;  %v7252_v29 = vld [vmem:[%s8623_s1 + $0x60] ss:$12 sps:$4 sm:$0xff]  }
 0x139   : > { %v897_v26 = vld [vmem:[#allocation2 + $0x8] sm:$0xff]  ;;  %v7255_v33 = vld [vmem:[%s8623_s1 + $0x78] ss:$12 sps:$4 sm:$0xff]   ;;  %v7256_v34 = vld [vmem:[%s8623_s1 + $0x94] ss:$12 sps:$4 sm:$0xff]   ;;  %s8109_s23 = smov 64  }
 0x13a   : > { %v912_v28 = vpack.c.bf16 %v897_v26, %v896_v24  ;;  %v7253_v30 = vld [vmem:[%s8623_s1 + $0x7c] ss:$12 sps:$4 sm:$0xff]   ;;  %v7263_v32 = vld [vmem:[%s8623_s1 + $0x20] ss:$12 sps:$4 sm:$0xff]   ;;  %v7264_v35 = vld [vmem:[%s8623_s1 + $0x38] ss:$12 sps:$4 sm:$0xff]  }
 0x13b   : > { %1083 = vmatpush1.bf16.msra.mxu0 %v7243_v20  ;;  %v7262_v31 = vld [vmem:[%s8623_s1 + $0x8] ss:$12 sps:$4 sm:$0xff]   ;;  %v7258_v36 = vld [vmem:[%s8623_s1 + $0x90] ss:$12 sps:$4 sm:$0xff]   ;;  %v7259_v37 = vld [vmem:[%s8623_s1 + $0xac] ss:$12 sps:$4 sm:$0xff]  }
 0x13c   : > { %1084 = vmatprep.subr.bf16.mxu0 %v7244_v21  ;;  %6598 = vmatprep.mubr.bf16.mxu1 %v912_v28  ;;  %v7265_v38 = vld [vmem:[%s8623_s1 + $0x50] ss:$12 sps:$4 sm:$0xff]   ;;  %v7261_v39 = vld [vmem:[%s8623_s1 + $0xa8] ss:$12 sps:$4 sm:$0xff]   ;;  %v7267_v41 = vld [vmem:[%s8623_s1 + $0x80] ss:$12 sps:$4 sm:$0xff]  }
 0x13d   : > { %6582 = vmatprep.subr.bf16.mxu1 %v7262_v31  ;;  %v7266_v40 = vld [vmem:[%s8623_s1 + $0x68] ss:$12 sps:$4 sm:$0xff]   ;;  %v899_v43 = vld [vmem:[#allocation2 + $0x18] sm:$0xff]  ;;  %v900_v47 = vld [vmem:[#allocation2 + $0x20] sm:$0xff]  ;;  %s8110_s11 = smov 32   ;;  %s11069_s27 = sld [smem:[#allocation65_spill]] }
 0x13e   : > { %6583 = vmatpush3.bf16.msra.mxu1 %v7262_v31  ;;  %v898_v42 = vld [vmem:[#allocation2 + $0x10] sm:$0xff]  ;;  %v7268_v44 = vld [vmem:[%s8623_s1 + $0x98] ss:$12 sps:$4 sm:$0xff]   ;;  %v901_v48 = vld [vmem:[#allocation2 + $0x28] sm:$0xff] }
 0x13f   : > { %1085 = vmatpush1.bf16.msra.mxu0 %v7246_v22  ;;  %6584 = vmatprep.subr.bf16.mxu1 %v7263_v32  ;;  %v913_v45 = vpack.c.bf16 %v899_v43, %v898_v42  ;;  %v7269_v46 = vld [vmem:[%s8623_s1 + $0xb0] ss:$12 sps:$4 sm:$0xff]   ;;  %v914_v49 = vpack.c.bf16 %v901_v48, %v900_v47  ;;  %v904_v52 = vld [vmem:[#allocation2 + $0x40] sm:$0xff]  ;;  %v905_v53 = vld [vmem:[#allocation2 + $0x48] sm:$0xff] }
 0x140   : > { %1086 = vmatprep.subr.bf16.mxu0 %v7247_v23  ;;  %v902_v50 = vld [vmem:[#allocation2 + $0x30] sm:$0xff]  ;;  %v903_v51 = vld [vmem:[#allocation2 + $0x38] sm:$0xff]  ;;  %v916_v55 = vpack.c.bf16 %v905_v53, %v904_v52  ;;  %v908_v58 = vld [vmem:[#allocation2 + $0x60] sm:$0xff] }
 0x141   : > { %v915_v54 = vpack.c.bf16 %v903_v51, %v902_v50  ;;  %v906_v56 = vld [vmem:[#allocation2 + $0x50] sm:$0xff]  ;;  %v907_v57 = vld [vmem:[#allocation2 + $0x58] sm:$0xff]  ;;  %v909_v59 = vld [vmem:[#allocation2 + $0x68] sm:$0xff] }
 0x142   : > { %6585 = vmatpush3.bf16.msra.mxu1 %v7263_v32  ;;  %v917_v60 = vpack.c.bf16 %v907_v57, %v906_v56  ;;  %v918_v61 = vpack.c.bf16 %v909_v59, %v908_v58  ;;  %v910_v62 = vld [vmem:[#allocation2 + $0x70] sm:$0xff]  ;;  %v911_v63 = vld [vmem:[#allocation2 + $0x78] sm:$0xff] }
 0x143   : > { %1087 = vmatpush1.bf16.msra.mxu0 %v7249_v25  ;;  %6586 = vmatprep.subr.bf16.mxu1 %v7264_v35  ;;  %v919_v0 = vpack.c.bf16 %v911_v63, %v910_v62  ;;  %s11070_s8 = scalar_lea.vmem %s11069_s27, %s8641_s6 }
 0x144   : > { %1088 = vmatprep.subr.bf16.mxu0 %v7250_v27 }
 0x146   : > { %6587 = vmatpush3.bf16.msra.mxu1 %v7264_v35 }
 0x147   : > { %1089 = vmatpush1.bf16.msra.mxu0 %v7252_v29  ;;  %6588 = vmatprep.subr.bf16.mxu1 %v7265_v38 }
 0x148   : > { %1090 = vmatprep.subr.bf16.mxu0 %v7253_v30 }
 0x14a   : > { %6589 = vmatpush3.bf16.msra.mxu1 %v7265_v38 }
 0x14b   : > { %1091 = vmatpush1.bf16.msra.mxu0 %v7255_v33  ;;  %6590 = vmatprep.subr.bf16.mxu1 %v7266_v40 }
 0x14c   : > { %1092 = vmatprep.subr.bf16.mxu0 %v7256_v34 }
 0x14e   : > { %6591 = vmatpush3.bf16.msra.mxu1 %v7266_v40 }
 0x14f   : > { %1093 = vmatpush1.bf16.msra.mxu0 %v7258_v36  ;;  %6592 = vmatprep.subr.bf16.mxu1 %v7267_v41 }
 0x150   : > { %1094 = vmatprep.subr.bf16.mxu0 %v7259_v37 }
 0x152   : > { %6593 = vmatpush3.bf16.msra.mxu1 %v7267_v41 }
 0x153   : > { %1095 = vmatpush1.bf16.msra.mxu0 %v7261_v39  ;;  %6594 = vmatprep.subr.bf16.mxu1 %v7268_v44 }
 0x156   : > { %1113 = vmatmul.mubr.bf16.vlgmr.msra.gmra.mrb[0].mxu0 %v912_v28  ;;  %6595 = vmatpush3.bf16.msra.mxu1 %v7268_v44 }
 0x157   : > { %1122 = vmatprep.mubr.bf16.mxu0 %v10877_v18  ;;  %6596 = vmatprep.subr.bf16.mxu1 %v7269_v46 }
 0x15a   : > { %6597 = vmatpush3.bf16.msra.mxu1 %v7269_v46 }
 0x15d   : > { %6599 = vmatmul.mubr.bf16.vlgmr.msra.gmra.mrb[0].mxu1 %v913_v45 }
 0x15e   : > { %1123 = vmatmul.mubr.bf16.gmra.mrb[4].mxu0 %v913_v45  ;;  %6602 = vmatprep.mubr.bf16.mxu1 %v914_v49 }
 0x15f   : > { %1132 = vmatprep.mubr.bf16.mxu0 %v10877_v18 }
 0x165   : > { %6603 = vmatmul.mubr.bf16.gmra.mrb[4].mxu1 %v915_v54 }
 0x166   : > { %1133 = vmatmul.mubr.bf16.gmra.mrb[8].mxu0 %v914_v49  ;;  %6606 = vmatprep.mubr.bf16.mxu1 %v916_v55 }
 0x167   : > { %1142 = vmatprep.mubr.bf16.mxu0 %v10877_v18 }
 0x16d   : > { %6607 = vmatmul.mubr.bf16.gmra.mrb[8].mxu1 %v917_v60 }
 0x16e   : > { %1143 = vmatmul.mubr.bf16.gmra.mrb[12].mxu0 %v915_v54  ;;  %6610 = vmatprep.mubr.bf16.mxu1 %v918_v61 }
 0x16f   : > { %1152 = vmatprep.mubr.bf16.mxu0 %v10877_v18 }
 0x175   : > { %6611 = vmatmul.mubr.bf16.gmra.mrb[12].mxu1 %v919_v0 }
 0x176   : > { %1153 = vmatmul.mubr.bf16.gmra.mrb[16].mxu0 %v916_v55 }
 0x177   : > { %1162 = vmatprep.mubr.bf16.mxu0 %v10877_v18 }
 0x17e   : > { %1163 = vmatmul.mubr.bf16.gmra.mrb[20].mxu0 %v917_v60 }
 0x17f   : > { %1172 = vmatprep.mubr.bf16.mxu0 %v10877_v18 }
 0x186   : > { %1173 = vmatmul.mubr.bf16.gmra.mrb[24].mxu0 %v918_v61 }
 0x187   : > { %1182 = vmatprep.mubr.bf16.mxu0 %v10877_v18 }
 0x18e   : > { %1183 = vmatmul.mubr.bf16.gmra.mrb[28].mxu0 %v919_v0 }
 0x229   : > { %v1114_v1 = vpop.f32.mrb[0].mxu0 }
 0x22a   : > { %v1116_v2 = vpop.f32.mrb[1].mxu0 }
 0x22b   : > { %v1118_v3 = vpop.f32.mrb[2].mxu0 }
 0x22c   : > { %v8725_v4 = vpack.c.bf16 %v1118_v3, %v1114_v1  ;;  %v1120_v5 = vpop.f32.mrb[3].mxu0 }
 0x22d   : > { %v8727_v6 = vpack.c.bf16 %v1120_v5, %v1116_v2 }
 0x22e   : > { %6630 = vmatprep.mubr.msk.bf16.mxu0 %vm1330_vm0, %v8725_v4 }
 0x22f   : > { %1801 = vrot.lane.b32.xlu0 %v8727_v6, %s8108_s15  ;;  %7046 = vmatprep.subr.msk.bf16.mxu0 %vm1330_vm0, %v8727_v6  ;;  %v1356_v7 = vsel %vm1330_vm0, %v8727_v6, 0 }
 0x230   : > { %6615 = vmatpush3.bf16.xpose.msra.mxu0 %v1356_v7  ;;  %v6600_v16 = vpop.f32.mrb[0].mxu1 }
 0x231   : > { %v1124_v8 = vpop.f32.mrb[4].mxu0  ;;  %v1227_v19 = vpop.f32.mrb[1].mxu1 }
 0x232   : > { %v1126_v9 = vpop.f32.mrb[5].mxu0  ;;  %v6601_v21 = vpop.f32.mrb[2].mxu1 }
 0x233   : > { %v1128_v10 = vpop.f32.mrb[6].mxu0  ;;  %v8749_v24 = vpack.c.bf16 %v6601_v21, %v6600_v16  ;;  %v1230_v25 = vpop.f32.mrb[3].mxu1 }
 0x234   : > { %v8737_v11 = vpack.c.bf16 %v1128_v10, %v1124_v8  ;;  %v1130_v12 = vpop.f32.mrb[7].mxu0  ;;  %v8753_v27 = vpack.c.bf16 %v1230_v25, %v1227_v19 }
 0x235   : > { %v8739_v13 = vpack.c.bf16 %v1130_v12, %v1126_v9 }
 0x236   : > { %6646 = vmatprep.subr.bf16.mxu1 %v8753_v27 }
 0x237   : > { %1803 = vrot.lane.b32.xlu1 %v8739_v13, %s8108_s15  ;;  %7047 = vmatprep.subr.msk.bf16.mxu0 %vm1330_vm0, %v8739_v13  ;;  %v1359_v14 = vsel %vm1330_vm0, %v8739_v13, 0 }
 0x238   : > { %6617 = vmatpush3.bf16.xpose.msra.mxu0 %v1359_v14  ;;  %6647 = vmatpush3.bf16.msra.mxu1 %v8753_v27  ;;  %v6604_v30 = vpop.f32.mrb[4].mxu1 }
 0x239   : > { %v1134_v15 = vpop.f32.mrb[8].mxu0  ;;  %6648 = vmatprep.subr.bf16.mxu1 %v8749_v24  ;;  %v1243_v32 = vpop.f32.mrb[5].mxu1 }
 0x23a   : > { %v1136_v17 = vpop.f32.mrb[9].mxu0  ;;  %v6605_v34 = vpop.f32.mrb[6].mxu1 }
 0x23b   : > { %v1138_v20 = vpop.f32.mrb[10].mxu0  ;;  %v8764_v37 = vpack.c.bf16 %v6605_v34, %v6604_v30  ;;  %v1246_v38 = vpop.f32.mrb[7].mxu1 }
 0x23c   : > { %v8747_v22 = vpack.c.bf16 %v1138_v20, %v1134_v15  ;;  %v1140_v23 = vpop.f32.mrb[11].mxu0  ;;  %6649 = vmatpush3.bf16.msra.mxu1 %v8749_v24  ;;  %v8769_v40 = vpack.c.bf16 %v1246_v38, %v1243_v32  ;;  %v8847_v32 = vld [vmem:[#allocation6] sm:$0xff] }
 0x23d   : > { %v8751_v26 = vpack.c.bf16 %v1140_v23, %v1136_v17  ;;  %10999 = vst [vmem:[#allocation35_spill] sm:$0xff] %v8764_v37 }
 0x23e   : > { %11001 = vst [vmem:[#allocation37_spill] sm:$0xff] %v8769_v40  ;;  %6650 = vmatprep.subr.bf16.mxu1 %v8769_v40 }
 0x23f   : > { %10998 = vst [vmem:[#allocation34_spill] sm:$0xff] %v8751_v26  ;;  %7048 = vmatprep.subr.msk.bf16.mxu0 %vm1330_vm0, %v8751_v26  ;;  %v1362_v28 = vsel %vm1330_vm0, %v8751_v26, 0 }
 0x240   : > { %6619 = vmatpush3.bf16.xpose.msra.mxu0 %v1362_v28  ;;  %6651 = vmatpush3.bf16.msra.mxu1 %v8769_v40  ;;  %v6608_v43 = vpop.f32.mrb[8].mxu1 }
 0x241   : > { %v1144_v29 = vpop.f32.mrb[12].mxu0  ;;  %6652 = vmatprep.subr.bf16.mxu1 %v8764_v37  ;;  %v1259_v45 = vpop.f32.mrb[9].mxu1 }
 0x242   : > { %v1146_v31 = vpop.f32.mrb[13].mxu0  ;;  %v6609_v47 = vpop.f32.mrb[10].mxu1 }
 0x243   : > { %v1148_v33 = vpop.f32.mrb[14].mxu0  ;;  %v8780_v50 = vpack.c.bf16 %v6609_v47, %v6608_v43  ;;  %v1262_v51 = vpop.f32.mrb[11].mxu1 }
 0x244   : > { %v8762_v35 = vpack.c.bf16 %v1148_v33, %v1144_v29  ;;  %v1150_v36 = vpop.f32.mrb[15].mxu0  ;;  %6653 = vmatpush3.bf16.msra.mxu1 %v8764_v37  ;;  %v8785_v53 = vpack.c.bf16 %v1262_v51, %v1259_v45  ;;  %v8845_v29 = vld [vmem:[#allocation6 + $0x10] sm:$0xff]  ;;  %v8858_v45 = vld [vmem:[#allocation6 + $0x8] sm:$0xff] }
 0x245   : > { %v8767_v39 = vpack.c.bf16 %v1150_v36, %v1146_v31  ;;  %11002 = vst [vmem:[#allocation38_spill] sm:$0xff] %v8780_v50  ;;  %v8867_v51 = vld [vmem:[#allocation6 + $0x30] sm:$0xff] }
 0x246   : > { %11004 = vst [vmem:[#allocation40_spill] sm:$0xff] %v8785_v53  ;;  %6654 = vmatprep.subr.bf16.mxu1 %v8785_v53 }
 0x247   : > { %11000 = vst [vmem:[#allocation36_spill] sm:$0xff] %v8767_v39  ;;  %7049 = vmatprep.subr.msk.bf16.mxu0 %vm1330_vm0, %v8767_v39  ;;  %v1365_v41 = vsel %vm1330_vm0, %v8767_v39, 0 }
 0x248   : > { %6621 = vmatpush3.bf16.xpose.msra.mxu0 %v1365_v41  ;;  %6655 = vmatpush3.bf16.msra.mxu1 %v8785_v53  ;;  %v6612_v56 = vpop.f32.mrb[12].mxu1 }
 0x249   : > { %v1154_v42 = vpop.f32.mrb[16].mxu0  ;;  %6656 = vmatprep.subr.bf16.mxu1 %v8780_v50  ;;  %v1275_v58 = vpop.f32.mrb[13].mxu1 }
 0x24a   : > { %v1156_v44 = vpop.f32.mrb[17].mxu0  ;;  %v6613_v60 = vpop.f32.mrb[14].mxu1 }
 0x24b   : > { %v1158_v46 = vpop.f32.mrb[18].mxu0  ;;  %v8796_v63 = vpack.c.bf16 %v6613_v60, %v6612_v56  ;;  %v1278_v0 = vpop.f32.mrb[15].mxu1 }
 0x24c   : > { %v8778_v48 = vpack.c.bf16 %v1158_v46, %v1154_v42  ;;  %v1160_v49 = vpop.f32.mrb[19].mxu0  ;;  %6657 = vmatpush3.bf16.msra.mxu1 %v8780_v50  ;;  %v8801_v2 = vpack.c.bf16 %v1278_v0, %v1275_v58 }
 0x24d   : > { %v8783_v52 = vpack.c.bf16 %v1160_v49, %v1156_v44  ;;  %11005 = vst [vmem:[#allocation41_spill] sm:$0xff] %v8796_v63  ;;  %v8855_v44 = vld [vmem:[#allocation6 + $0x18] sm:$0xff] }
 0x24e   : > { %11007 = vst [vmem:[#allocation43_spill] sm:$0xff] %v8801_v2  ;;  %6658 = vmatprep.subr.bf16.mxu1 %v8801_v2 }
 0x24f   : > { %11003 = vst [vmem:[#allocation39_spill] sm:$0xff] %v8783_v52  ;;  %7050 = vmatprep.subr.msk.bf16.mxu0 %vm1330_vm0, %v8783_v52  ;;  %v1368_v54 = vsel %vm1330_vm0, %v8783_v52, 0 }
 0x250   : > { %6623 = vmatpush3.bf16.xpose.msra.mxu0 %v1368_v54  ;;  %6659 = vmatpush3.bf16.msra.mxu1 %v8801_v2 }
 0x251   : > { %v1164_v55 = vpop.f32.mrb[20].mxu0  ;;  %6660 = vmatprep.subr.bf16.mxu1 %v8796_v63 }
 0x252   : > { %v1166_v57 = vpop.f32.mrb[21].mxu0 }
 0x253   : > { %v1168_v59 = vpop.f32.mrb[22].mxu0 }
 0x254   : > { %v8794_v61 = vpack.c.bf16 %v1168_v59, %v1164_v55  ;;  %v1170_v62 = vpop.f32.mrb[23].mxu0  ;;  %6661 = vmatpush3.bf16.msra.mxu1 %v8796_v63 }
 0x255   : > { %v8799_v1 = vpack.c.bf16 %v1170_v62, %v1166_v57  ;;  %v8871_v57 = vld [vmem:[#allocation6 + $0x38] sm:$0xff] }
 0x257   : > { %11006 = vst [vmem:[#allocation42_spill] sm:$0xff] %v8799_v1  ;;  %7051 = vmatprep.subr.msk.bf16.mxu0 %vm1330_vm0, %v8799_v1  ;;  %v1371_v3 = vsel %vm1330_vm0, %v8799_v1, 0 }
 0x258   : > { %6625 = vmatpush3.bf16.xpose.msra.mxu0 %v1371_v3 }
 0x259   : > { %v1174_v5 = vpop.f32.mrb[24].mxu0 }
 0x25a   : > { %v1176_v7 = vpop.f32.mrb[25].mxu0 }
 0x25b   : > { %v1178_v8 = vpop.f32.mrb[26].mxu0 }
 0x25c   : > { %v8810_v9 = vpack.c.bf16 %v1178_v8, %v1174_v5  ;;  %v1180_v10 = vpop.f32.mrb[27].mxu0  ;;  %v8879_v5 = vld [vmem:[#allocation6 + $0x20] sm:$0xff] }
 0x25d   : > { %v8813_v12 = vpack.c.bf16 %v1180_v10, %v1176_v7  ;;  %11008 = vst [vmem:[#allocation44_spill] sm:$0xff] %v8879_v5  ;;  %v8882_v7 = vld [vmem:[#allocation6 + $0x28] sm:$0xff] }
 0x25f   : > { %7052 = vmatprep.subr.msk.bf16.mxu0 %vm1330_vm0, %v8813_v12  ;;  %v1374_v14 = vsel %vm1330_vm0, %v8813_v12, 0 }
 0x260   : > { %6627 = vmatpush3.bf16.xpose.msra.mxu0 %v1374_v14  ;;  %v8888_v14 = vld [vmem:[#allocation6 + $0x50] sm:$0xff] }
 0x261   : > { %v1184_v15 = vpop.f32.mrb[28].mxu0  ;;  %11009 = vst [vmem:[#allocation45_spill] sm:$0xff] %v8888_v14 }
 0x262   : > { %v1186_v16 = vpop.f32.mrb[29].mxu0 }
 0x263   : > { %v1188_v17 = vpop.f32.mrb[30].mxu0 }
 0x264   : > { %v8819_v19 = vpack.c.bf16 %v1188_v17, %v1184_v15  ;;  %v1190_v20 = vpop.f32.mrb[31].mxu0 }
 0x265   : > { %v8821_v21 = vpack.c.bf16 %v1190_v20, %v1186_v16 }
 0x267   : > { %7053 = vmatprep.subr.msk.bf16.mxu0 %vm1330_vm0, %v8821_v21  ;;  %v1377_v23 = vsel %vm1330_vm0, %v8821_v21, 0 }
 0x268   : > { %6629 = vmatpush3.bf16.xpose.msra.mxu0 %v1377_v23  ;;  %v8894_v23 = vld [vmem:[#allocation6 + $0x58] sm:$0xff] }
 0x269   : > { %11010 = vst [vmem:[#allocation46_spill] sm:$0xff] %v8894_v23 }
 0x26f   : > { %6631 = vmatmul.mubr.msk.bf16.vlgmr.msra.gmra.mrb[32].mxu0 %vm1330_vm0, %v8737_v11 }
 0x270   : > { %6634 = vmatprep.mubr.msk.bf16.mxu0 %vm1330_vm0, %v8747_v22 }
 0x277   : > { %6635 = vmatmul.mubr.msk.bf16.gmra.mrb[36].mxu0 %vm1330_vm0, %v8762_v35 }
 0x278   : > { %6638 = vmatprep.mubr.msk.bf16.mxu0 %vm1330_vm0, %v8778_v48 }
 0x27f   : > { %6639 = vmatmul.mubr.msk.bf16.gmra.mrb[40].mxu0 %vm1330_vm0, %v8794_v61 }
 0x280   : > { %6642 = vmatprep.mubr.msk.bf16.mxu0 %vm1330_vm0, %v8810_v9 }
 0x287   : > { %6643 = vmatmul.mubr.msk.bf16.gmra.mrb[44].mxu0 %vm1330_vm0, %v8819_v19 }
 0x2a1   : > { %v8841_v25 = vpop.permute.xlu0 %1801 }
 0x2a2   : > { %7054 = vmatprep.subr.msk.bf16.mxu1 %vm1330_vm0, %v8841_v25 }
 0x342   : > { %v6632_v28 = vpop.f32.mrb[32].mxu0 }
 0x343   : > { %v1478_v30 = vmul.f32 0.17677669, %v6632_v28  ;;  %v1413_v31 = vpop.f32.mrb[33].mxu0 }
 0x344   : > { %v1476_v33 = vmul.f32 0.17677669, %v1413_v31  ;;  %v6633_v34 = vpop.f32.mrb[34].mxu0 }
 0x345   : > { %v1479_v36 = vmul.f32 0.17677669, %v6633_v34  ;;  %v1416_v38 = vpop.f32.mrb[35].mxu0  ;;  %v8850_v41 = vadd.f32 %v1478_v30, %v8845_v29 }
 0x346   : > { %v1477_v42 = vmul.f32 0.17677669, %v1416_v38  ;;  %v8853_v43 = vadd.f32 %v1476_v33, %v8847_v32  ;;  %v8903_v38 = vld [vmem:[#allocation6 + $0x40] sm:$0xff] }
 0x347   : > { %1512 = vmax.xlane.f32.xlu1 %v8850_v41  ;;  %v8862_v46 = vadd.f32 %v1479_v36, %v8855_v44  ;;  %11011 = vst [vmem:[#allocation47_spill] sm:$0xff] %v8903_v38 }
 0x348   : > { %1508 = vmax.xlane.f32.xlu0 %v8853_v43  ;;  %v8865_v49 = vadd.f32 %v1477_v42, %v8858_v45  ;;  %v8906_v42 = vld [vmem:[#allocation6 + $0x48] sm:$0xff] }
 0x349   : > { %11012 = vst [vmem:[#allocation48_spill] sm:$0xff] %v8906_v42 }
 0x34a   : > { %v6636_v47 = vpop.f32.mrb[36].mxu0 }
 0x34b   : > { %v1482_v54 = vmul.f32 0.17677669, %v6636_v47  ;;  %1514 = vmax.xlane.f32.xlu1 %v8862_v46  ;;  %v1429_v55 = vpop.f32.mrb[37].mxu0 }
 0x34c   : > { %1510 = vmax.xlane.f32.xlu0 %v8865_v49  ;;  %v6637_v56 = vpop.f32.mrb[38].mxu0  ;;  %v1480_v62 = vmul.f32 0.17677669, %v1429_v55  ;;  %v8912_v55 = vld [vmem:[#allocation6 + $0x70] sm:$0xff] }
 0x34d   : > { %v1483_v58 = vmul.f32 0.17677669, %v6637_v56  ;;  %v1432_v59 = vpop.f32.mrb[39].mxu0  ;;  %v8874_v60 = vadd.f32 %v1482_v54, %v8867_v51  ;;  %11013 = vst [vmem:[#allocation49_spill] sm:$0xff] %v8912_v55 }
 0x34e   : > { %v1481_v0 = vmul.f32 0.17677669, %v1432_v59  ;;  %v8886_v10 = vadd.f32 %v1480_v62, %v8879_v5 }
 0x34f   : > { %v8877_v3 = vadd.f32 %v1483_v58, %v8871_v57 }
 0x350   : > { %1520 = vmax.xlane.f32.xlu0 %v8874_v60  ;;  %v8891_v17 = vadd.f32 %v1481_v0, %v8882_v7 }
 0x351   : > { %1522 = vmax.xlane.f32.xlu1 %v8877_v3 }
 0x352   : > { %v6640_v8 = vpop.f32.mrb[40].mxu0 }
 0x353   : > { %v1486_v15 = vmul.f32 0.17677669, %v6640_v8  ;;  %v1445_v16 = vpop.f32.mrb[41].mxu0 }
 0x354   : > { %1516 = vmax.xlane.f32.xlu0 %v8886_v10  ;;  %v6641_v20 = vpop.f32.mrb[42].mxu0  ;;  %v1484_v33 = vmul.f32 0.17677669, %v1445_v16  ;;  %v8922_v16 = vld [vmem:[#allocation6 + $0x60] sm:$0xff] }
 0x355   : > { %v1487_v28 = vmul.f32 0.17677669, %v6641_v20  ;;  %1518 = vmax.xlane.f32.xlu1 %v8891_v17  ;;  %v1448_v30 = vpop.f32.mrb[43].mxu0  ;;  %v8898_v31 = vadd.f32 %v1486_v15, %v8888_v14  ;;  %11014 = vst [vmem:[#allocation50_spill] sm:$0xff] %v8922_v16 }
 0x356   : > { %v1485_v34 = vmul.f32 0.17677669, %v1448_v30  ;;  %v8910_v54 = vadd.f32 %v1484_v33, %v8903_v38  ;;  %v8933_v30 = vld [vmem:[#allocation6 + $0x78] sm:$0xff] }
 0x357   : > { %v8901_v36 = vadd.f32 %v1487_v28, %v8894_v23  ;;  %11015 = vst [vmem:[#allocation51_spill] sm:$0xff] %v8933_v30 }
 0x358   : > { %1528 = vmax.xlane.f32.xlu0 %v8898_v31  ;;  %v8915_v59 = vadd.f32 %v1485_v34, %v8906_v42 }
 0x359   : > { %1530 = vmax.xlane.f32.xlu1 %v8901_v36 }
 0x35a   : > { %v6644_v47 = vpop.f32.mrb[44].mxu0 }
 0x35b   : > { %v1490_v56 = vmul.f32 0.17677669, %v6644_v47  ;;  %v1461_v58 = vpop.f32.mrb[45].mxu0  ;;  %v8938_v47 = vld [vmem:[#allocation6 + $0x68] sm:$0xff] }
 0x35c   : > { %1524 = vmax.xlane.f32.xlu0 %v8910_v54  ;;  %v6645_v62 = vpop.f32.mrb[46].mxu0  ;;  %v1488_v15 = vmul.f32 0.17677669, %v1461_v58  ;;  %11016 = vst [vmem:[#allocation52_spill] sm:$0xff] %v8938_v47  ;;  %v8945_v58 = vpop.permute.xlu1 %1803 }
 0x35d   : > { %1526 = vmax.xlane.f32.xlu1 %v8915_v59  ;;  %v1464_v0 = vpop.f32.mrb[47].mxu0  ;;  %v8920_v8 = vadd.f32 %v1490_v56, %v8912_v55  ;;  %v1491_v28 = vmul.f32 0.17677669, %v6645_v62 }
 0x35e   : > { %v8926_v20 = vadd.f32 %v1488_v15, %v8922_v16  ;;  %v1489_v33 = vmul.f32 0.17677669, %v1464_v0 }
 0x35f   : > { %v8936_v34 = vadd.f32 %v1491_v28, %v8933_v30 }
 0x360   : > { %1536 = vmax.xlane.f32.xlu0 %v8920_v8  ;;  %v8942_v56 = vadd.f32 %v1489_v33, %v8938_v47 }
 0x364   : > { %1532 = vmax.xlane.f32.xlu0 %v8926_v20 }
 0x36e   : > { %1807 = vrot.lane.b32.xlu1 %v8767_v39, %s8108_s15 }
 0x37a   : > { %1805 = vrot.lane.b32.xlu0 %v8751_v26, %s8108_s15 }
 0x392   : > { %1538 = vmax.xlane.f32.xlu1 %v8936_v34 }
 0x396   : > { %1534 = vmax.xlane.f32.xlu1 %v8942_v56 }
 0x3d4   : > { %v1513_v15 = vpop.xlane.xlu1 %1512 }
 0x3d5   : > { %v1542_v62 = vsub.f32 %v8850_v41, %v1513_v15  ;;  %v1509_v18 = vpop.xlane.xlu0 %1508 }
 0x3d6   : > { %v1540_v0 = vsub.f32 %v8853_v43, %v1509_v18 }
 0x3d7   : > { %v1560_v26 = vmul.f32 1.442695, %v1542_v62 }
 0x3d8   : > { %v1556_v28 = vmul.f32 1.442695, %v1540_v0  ;;  %v1515_v30 = vpop.xlane.xlu1 %1514 }
 0x3d9   : > { %7358 = vpow2.f32 %v1560_v26  ;;  %v1543_v39 = vsub.f32 %v8862_v46, %v1515_v30  ;;  %v1511_v16 = vpop.xlane.xlu0 %1510 }
 0x3da   : > { %v1541_v33 = vsub.f32 %v8865_v49, %v1511_v16  ;;  %7360 = vpow2.f32 %v1556_v28 }
 0x3db   : > { %v1562_v47 = vmul.f32 1.442695, %v1543_v39 }
 0x3dc   : > { %v1558_v55 = vmul.f32 1.442695, %v1541_v33 }
 0x3dd   : > { %7362 = vpow2.f32 %v1562_v47  ;;  %v1521_v39 = vpop.xlane.xlu0 %1520 }
 0x3de   : > { %7364 = vpow2.f32 %v1558_v55  ;;  %v1523_v49 = vpop.xlane.xlu1 %1522  ;;  %v1546_v30 = vsub.f32 %v8874_v60, %v1521_v39 }
 0x3df   : > { %v1547_v33 = vsub.f32 %v8877_v3, %v1523_v49 }
 0x3e0   : > { %v1568_v62 = vmul.f32 1.442695, %v1546_v30 }
 0x3e1   : > { %v1517_v43 = vpop.xlane.xlu0 %1516  ;;  %v1570_v23 = vmul.f32 1.442695, %v1547_v33 }
 0x3e2   : > { %v1519_v16 = vpop.xlane.xlu1 %1518  ;;  %v1544_v47 = vsub.f32 %v8886_v10, %v1517_v43  ;;  %7366 = vpow2.f32 %v1568_v62 }
 0x3e3   : > { %v8951_v38 = vpop.eup %7358  ;;  %v1545_v0 = vsub.f32 %v8891_v17, %v1519_v16 }
 0x3e4   : > { %1592 = vadd.xlane.f32.xlu0 %v8951_v38  ;;  %v8954_v41 = vpop.eup %7360  ;;  %v1564_v42 = vmul.f32 1.442695, %v1544_v47 }
 0x3e5   : > { %v1529_v46 = vpop.xlane.xlu0 %1528 }
 0x3e6   : > { %v1531_v28 = vpop.xlane.xlu1 %1530  ;;  %7368 = vpow2.f32 %v1564_v42  ;;  %v1550_v5 = vsub.f32 %v8898_v31, %v1529_v46 }
 0x3e7   : > { %v8956_v18 = vpop.eup %7362  ;;  %v1551_v31 = vsub.f32 %v8901_v36, %v1531_v28 }
 0x3e8   : > { %1588 = vadd.xlane.f32.xlu0 %v8954_v41  ;;  %1594 = vadd.xlane.f32.xlu1 %v8956_v18  ;;  %v8960_v26 = vpop.eup %7364  ;;  %v1576_v17 = vmul.f32 1.442695, %v1550_v5 }
 0x3e9   : > { %v1525_v55 = vpop.xlane.xlu0 %1524 }
 0x3ea   : > { %v1527_v60 = vpop.xlane.xlu1 %1526  ;;  %v1548_v43 = vsub.f32 %v8910_v54, %v1525_v55 }
 0x3eb   : > { %v1549_v54 = vsub.f32 %v8915_v59, %v1527_v60 }
 0x3ec   : > { %1590 = vadd.xlane.f32.xlu1 %v8960_v26  ;;  %v8977_v16 = vpop.eup %7366  ;;  %v1572_v42 = vmul.f32 1.442695, %v1548_v43 }
 0x3ed   : > { %v1537_v15 = vpop.xlane.xlu0 %1536 }
 0x3ee   : > { %v8975_v49 = vpop.permute.xlu1 %1807 }
 0x3f1   : > { %v1533_v14 = vpop.xlane.xlu0 %1532 }
 0x3f2   : > { %v1552_v39 = vsub.f32 %v8926_v20, %v1533_v14 }
 0x3f4   : > { %v1580_v3 = vmul.f32 1.442695, %v1552_v39 }
 0x3f5   : > { %v1806_v33 = vpop.permute.xlu0 %1805 }
 0x3fd   : > { %1811 = vrot.lane.b32.xlu1 %v8799_v1, %s8108_s15  ;;  %v1566_v1 = vmul.f32 1.442695, %v1545_v0 }
 0x3fe   : > { %1809 = vrot.lane.b32.xlu0 %v8783_v52, %s8108_s15  ;;  %v1554_v52 = vsub.f32 %v8920_v8, %v1537_v15 }
 0x3ff   : > { %7370 = vpow2.f32 %v1566_v1 }
 0x400   : > { %v1584_v10 = vmul.f32 1.442695, %v1554_v52  ;;  %7372 = vpow2.f32 %v1570_v23  ;;  %v8981_v52 = vpop.eup %7368  ;;  %v1578_v23 = vmul.f32 1.442695, %v1551_v31 }
 0x402   : > { %7374 = vpow2.f32 %v1584_v10 }
 0x403   : > { %7376 = vpow2.f32 %v1576_v17 }
 0x404   : > { %7378 = vpow2.f32 %v1580_v3 }
 0x405   : > { %7380 = vpow2.f32 %v1572_v42 }
 0x409   : > { %v8983_v14 = vpop.eup %7370 }
 0x40a   : > { %v8989_v20 = vpop.eup %7372 }
 0x40c   : > { %v8991_v46 = vpop.eup %7374 }
 0x40d   : > { %v8996_v30 = vpop.eup %7376 }
 0x40e   : > { %v8998_v47 = vpop.eup %7378 }
 0x40f   : > { %v9002_v15 = vpop.eup %7380 }
 0x41d   : > { %1600 = vadd.xlane.f32.xlu0 %v8977_v16 }
 0x41f   : > { %v1539_v1 = vpop.xlane.xlu1 %1538 }
 0x420   : > { %v1555_v5 = vsub.f32 %v8936_v34, %v1539_v1  ;;  %v1574_v34 = vmul.f32 1.442695, %v1549_v54 }
 0x421   : > { %1598 = vadd.xlane.f32.xlu0 %v8983_v14  ;;  %1596 = vadd.xlane.f32.xlu1 %v8981_v52 }
 0x422   : > { %v1586_v8 = vmul.f32 1.442695, %v1555_v5 }
 0x423   : > { %v1535_v36 = vpop.xlane.xlu1 %1534 }
 0x424   : > { %7382 = vpow2.f32 %v1586_v8  ;;  %v1553_v55 = vsub.f32 %v8942_v56, %v1535_v36 }
 0x425   : > { %1616 = vadd.xlane.f32.xlu0 %v8991_v46  ;;  %1602 = vadd.xlane.f32.xlu1 %v8989_v20  ;;  %7384 = vpow2.f32 %v1578_v23 }
 0x426   : > { %7386 = vpow2.f32 %v1574_v34  ;;  %v1582_v59 = vmul.f32 1.442695, %v1553_v55  ;;  %v1842_v34 = vsel %vm1330_vm0, %v8841_v25, 0 }
 0x428   : > { %7388 = vpow2.f32 %v1582_v59 }
 0x429   : > { %1612 = vadd.xlane.f32.xlu0 %v8998_v47  ;;  %1608 = vadd.xlane.f32.xlu1 %v8996_v30 }
 0x42d   : > { %1604 = vadd.xlane.f32.xlu1 %v9002_v15 }
 0x42e   : > { %v9005_v62 = vpop.eup %7382 }
 0x42f   : > { %1618 = vadd.xlane.f32.xlu0 %v9005_v62  ;;  %v9008_v56 = vpop.eup %7384 }
 0x430   : > { %v9011_v0 = vpop.eup %7386 }
 0x431   : > { %1610 = vadd.xlane.f32.xlu1 %v9008_v56 }
 0x432   : > { %v9014_v28 = vpop.eup %7388 }
 0x435   : > { %1606 = vadd.xlane.f32.xlu1 %v9011_v0 }
 0x439   : > { %1614 = vadd.xlane.f32.xlu1 %v9014_v28 }
 0x445   : > { %1813 = vrot.lane.b32.xlu0 %v8813_v12, %s8108_s15 }
 0x449   : > { %1777 = vrot.lane.b32.xlu0 %v8725_v4, %s8108_s15 }
 0x44a   : > { %1815 = vrot.lane.b32.xlu1 %v8821_v21, %s8108_s15 }
 0x44d   : > { %1781 = vrot.lane.b32.xlu0 %v8747_v22, %s8108_s15 }
 0x44e   : > { %1779 = vrot.lane.b32.xlu1 %v8737_v11, %s8108_s15 }
 0x451   : > { %1785 = vrot.lane.b32.xlu0 %v8778_v48, %s8108_s15 }
 0x452   : > { %1783 = vrot.lane.b32.xlu1 %v8762_v35, %s8108_s15 }
 0x455   : > { %1789 = vrot.lane.b32.xlu0 %v8810_v9, %s8108_s15 }
 0x456   : > { %1787 = vrot.lane.b32.xlu1 %v8794_v61, %s8108_s15 }
 0x459   : > { %2154 = vrot.lane.b32.xlu0 %v8753_v27, %s8108_s15 }
 0x45a   : > { %1791 = vrot.lane.b32.xlu1 %v8819_v19, %s8108_s15 }
 0x45d   : > { %2158 = vrot.lane.b32.xlu0 %v8769_v40, %s8108_s15 }
 0x45e   : > { %2156 = vrot.lane.b32.xlu1 %v8749_v24, %s8108_s15 }
 0x461   : > { %2162 = vrot.lane.b32.xlu0 %v8785_v53, %s8108_s15 }
 0x462   : > { %2160 = vrot.lane.b32.xlu1 %v8764_v37, %s8108_s15 }
 0x465   : > { %2166 = vrot.lane.b32.xlu0 %v8801_v2, %s8108_s15 }
 0x466   : > { %2164 = vrot.lane.b32.xlu1 %v8780_v50, %s8108_s15 }
 0x469   : > { %2569 = vrot.lane.b32.xlu0 %v8727_v6, %s8109_s23 }
 0x46a   : > { %2168 = vrot.lane.b32.xlu1 %v8796_v63, %s8108_s15 }
 0x46e   : > { %2571 = vrot.lane.b32.xlu1 %v8739_v13, %s8109_s23 }
 0x471   : > { %v1593_v60 = vpop.xlane.xlu0 %1592 }
 0x475   : > { %v1589_v10 = vpop.xlane.xlu0 %1588  ;;  %v1595_v39 = vpop.xlane.xlu1 %1594 }
 0x476   : > { %7390 = vrcp.f32 %v1595_v39 }
 0x477   : > { %7392 = vrcp.f32 %v1589_v10 }
 0x478   : > { %7394 = vrcp.f32 %v1593_v60 }
 0x479   : > { %v1591_v17 = vpop.xlane.xlu1 %1590  ;;  %v1810_v25 = vpop.permute.xlu0 %1809 }
 0x47a   : > { %7396 = vrcp.f32 %v1591_v17 }
 0x480   : > { %v7391_v43 = vpop.eup %7390 }
 0x481   : > { %v7393_v3 = vpop.eup %7392  ;;  %v1639_v1 = vmul.f32 %v7391_v43, %v8956_v18  ;;  %v1845_v18 = vsel %vm1330_vm0, %v8945_v58, 0 }
 0x482   : > { %v7395_v31 = vpop.eup %7394  ;;  %v1636_v5 = vmul.f32 %v7393_v3, %v8954_v41  ;;  %v1848_v41 = vsel %vm1330_vm0, %v1806_v33, 0 }
 0x483   : > { %v1638_v54 = vmul.f32 %v7395_v31, %v8951_v38  ;;  %v1851_v38 = vsel %vm1330_vm0, %v8975_v49, 0 }
 0x484   : > { %v7397_v42 = vpop.eup %7396 }
 0x485   : > { %v1637_v23 = vmul.f32 %v7397_v42, %v8960_v26  ;;  %v1653_v36 = vpack.c.bf16 %v1639_v1, %v1638_v54  ;;  %v1812_v26 = vpop.permute.xlu1 %1811 }
 0x486   : > { %v1857_v10 = vsel %vm1330_vm0, %v1812_v26, 0 }
 0x487   : > { %v1652_v8 = vpack.c.bf16 %v1637_v23, %v1636_v5 }
 0x489   : > { %6662 = vmatprep.mubr.bf16.mxu1 %v1652_v8 }
 0x48a   : > { %6663 = vmatmul.mubr.bf16.vlgmr.msra.gmra.mrb[16].mxu1 %v1653_v36 }
 0x48b   : > { %6679 = vmatpush3.bf16.xpose.msra.mxu1 %v1842_v34 }
 0x48c   : > { %7055 = vmatprep.subr.msk.bf16.mxu1 %vm1330_vm0, %v8945_v58  ;;  %v1854_v58 = vsel %vm1330_vm0, %v1810_v25, 0 }
 0x493   : > { %6681 = vmatpush3.bf16.xpose.msra.mxu1 %v1845_v18 }
 0x494   : > { %7056 = vmatprep.subr.msk.bf16.mxu1 %vm1330_vm0, %v1806_v33 }
 0x49b   : > { %6683 = vmatpush3.bf16.xpose.msra.mxu1 %v1848_v41 }
 0x49c   : > { %7057 = vmatprep.subr.msk.bf16.mxu1 %vm1330_vm0, %v8975_v49 }
 0x4a3   : > { %6685 = vmatpush3.bf16.xpose.msra.mxu1 %v1851_v38 }
 0x4a4   : > { %7058 = vmatprep.subr.msk.bf16.mxu1 %vm1330_vm0, %v1810_v25 }
 0x4aa   : > { %v1601_v55 = vpop.xlane.xlu0 %1600 }
 0x4ab   : > { %6687 = vmatpush3.bf16.xpose.msra.mxu1 %v1854_v58 }
 0x4ac   : > { %7059 = vmatprep.subr.msk.bf16.mxu1 %vm1330_vm0, %v1812_v26 }
 0x4ae   : > { %v1599_v59 = vpop.xlane.xlu0 %1598  ;;  %v1597_v33 = vpop.xlane.xlu1 %1596 }
 0x4af   : > { %7398 = vrcp.f32 %v1599_v59 }
 0x4b0   : > { %7400 = vrcp.f32 %v1597_v33 }
 0x4b1   : > { %7402 = vrcp.f32 %v1601_v55 }
 0x4b2   : > { %v1617_v60 = vpop.xlane.xlu0 %1616  ;;  %v1603_v49 = vpop.xlane.xlu1 %1602 }
 0x4b3   : > { %6689 = vmatpush3.bf16.xpose.msra.mxu1 %v1857_v10  ;;  %7404 = vrcp.f32 %v1603_v49 }
 0x4b6   : > { %v1609_v39 = vpop.xlane.xlu1 %1608  ;;  %v1613_v17 = vpop.xlane.xlu0 %1612 }
 0x4b9   : > { %v7399_v43 = vpop.eup %7398 }
 0x4ba   : > { %v7401_v3 = vpop.eup %7400  ;;  %v1605_v31 = vpop.xlane.xlu1 %1604  ;;  %v1641_v42 = vmul.f32 %v7399_v43, %v8983_v14 }
 0x4bb   : > { %v1640_v1 = vmul.f32 %v7401_v3, %v8981_v52  ;;  %v7403_v5 = vpop.eup %7402 }
 0x4bc   : > { %v1619_v23 = vpop.xlane.xlu0 %1618  ;;  %v1642_v34 = vmul.f32 %v7403_v5, %v8977_v16 }
 0x4bd   : > { %v1654_v54 = vpack.c.bf16 %v1641_v42, %v1640_v1  ;;  %v7405_v8 = vpop.eup %7404 }
 0x4be   : > { %v1611_v36 = vpop.xlane.xlu1 %1610  ;;  %v1643_v18 = vmul.f32 %v7405_v8, %v8989_v20 }
 0x4bf   : > { %6666 = vmatprep.mubr.bf16.mxu1 %v1654_v54  ;;  %7406 = vrcp.f32 %v1611_v36 }
 0x4c0   : > { %v1814_v41 = vpop.permute.xlu0 %1813  ;;  %7408 = vrcp.f32 %v1605_v31  ;;  %v1655_v38 = vpack.c.bf16 %v1643_v18, %v1642_v34 }
 0x4c1   : > { %7060 = vmatprep.subr.msk.bf16.mxu1 %vm1330_vm0, %v1814_v41  ;;  %v1860_v14 = vsel %vm1330_vm0, %v1814_v41, 0  ;;  %7410 = vrcp.f32 %v1609_v39 }
 0x4c2   : > { %6691 = vmatpush3.bf16.xpose.msra.mxu1 %v1860_v14  ;;  %v1607_v52 = vpop.xlane.xlu1 %1606 }
 0x4c3   : > { %6667 = vmatmul.mubr.bf16.gmra.mrb[20].mxu1 %v1655_v38  ;;  %7412 = vrcp.f32 %v1607_v52 }
 0x4c4   : > { %v1778_v25 = vpop.permute.xlu0 %1777  ;;  %7414 = vrcp.f32 %v1613_v17 }
 0x4c6   : > { %v1615_v26 = vpop.xlane.xlu1 %1614 }
 0x4c7   : > { %7416 = vrcp.f32 %v1615_v26 }
 0x4c8   : > { %7418 = vrcp.f32 %v1619_v23  ;;  %v1782_v16 = vpop.permute.xlu0 %1781 }
 0x4c9   : > { %v7407_v20 = vpop.eup %7406  ;;  %7420 = vrcp.f32 %v1617_v60 }
 0x4ca   : > { %v1816_v55 = vpop.permute.xlu1 %1815  ;;  %v7409_v58 = vpop.eup %7408  ;;  %v1647_v39 = vmul.f32 %v7407_v20, %v9008_v56 }
 0x4cb   : > { %7061 = vmatprep.subr.msk.bf16.mxu1 %vm1330_vm0, %v1816_v55  ;;  %v1863_v59 = vsel %vm1330_vm0, %v1816_v55, 0  ;;  %v7411_v33 = vpop.eup %7410  ;;  %v1644_v17 = vmul.f32 %v7409_v58, %v9002_v15 }
 0x4cc   : > { %v1786_v10 = vpop.permute.xlu0 %1785  ;;  %6693 = vmatpush3.bf16.xpose.msra.mxu1 %v1863_v59  ;;  %v1646_v60 = vmul.f32 %v7411_v33, %v8996_v30 }
 0x4cd   : > { %v7413_v49 = vpop.eup %7412 }
 0x4ce   : > { %v1780_v43 = vpop.permute.xlu1 %1779  ;;  %v1645_v3 = vmul.f32 %v7413_v49, %v9011_v0  ;;  %v7415_v31 = vpop.eup %7414  ;;  %v1657_v23 = vpack.c.bf16 %v1647_v39, %v1646_v60 }
 0x4cf   : > { %v1648_v36 = vmul.f32 %v7415_v31, %v8998_v47  ;;  %v11030_v31 = vld [vmem:[#allocation50_spill] sm:$0xff] }
 0x4d0   : > { %v1790_v42 = vpop.permute.xlu0 %1789  ;;  %v1656_v1 = vpack.c.bf16 %v1645_v3, %v1644_v17 }
 0x4d1   : > { %v7417_v5 = vpop.eup %7416 }
 0x4d2   : > { %v7419_v54 = vpop.eup %7418  ;;  %6670 = vmatprep.mubr.bf16.mxu1 %v1656_v1  ;;  %v1784_v8 = vpop.permute.xlu1 %1783  ;;  %v1649_v34 = vmul.f32 %v7417_v5, %v9014_v28 }
 0x4d3   : > { %6671 = vmatmul.mubr.bf16.gmra.mrb[24].mxu1 %v1657_v23  ;;  %v7421_v56 = vpop.eup %7420  ;;  %v1651_v0 = vmul.f32 %v7419_v54, %v9005_v62  ;;  %v11027_v54 = vld [vmem:[#allocation48_spill] sm:$0xff] }
 0x4d4   : > { %v2155_v18 = vpop.permute.xlu0 %2154  ;;  %v1658_v15 = vpack.c.bf16 %v1649_v34, %v1648_v36  ;;  %v1650_v30 = vmul.f32 %v7421_v56, %v8991_v46 }
 0x4d5   : > { %6710 = vmatprep.subr.bf16.mxu1 %v2155_v18 }
 0x4d6   : > { %6674 = vmatprep.mubr.bf16.mxu1 %v1658_v15  ;;  %v1788_v41 = vpop.permute.xlu1 %1787  ;;  %v1659_v38 = vpack.c.bf16 %v1651_v0, %v1650_v30 }
 0x4d8   : > { %v2159_v28 = vpop.permute.xlu0 %2158 }
 0x4da   : > { %v1792_v14 = vpop.permute.xlu1 %1791 }
 0x4db   : > { %6675 = vmatmul.mubr.bf16.gmra.mrb[28].mxu1 %v1659_v38 }
 0x4dc   : > { %6694 = vmatprep.mubr.msk.bf16.mxu1 %vm1330_vm0, %v1778_v25  ;;  %v2163_v46 = vpop.permute.xlu0 %2162 }
 0x4de   : > { %v2157_v47 = vpop.permute.xlu1 %2156 }
 0x4e0   : > { %v2167_v25 = vpop.permute.xlu0 %2166 }
 0x4e2   : > { %v2161_v62 = vpop.permute.xlu1 %2160 }
 0x4e3   : > { %6695 = vmatmul.mubr.msk.bf16.vlgmr.msra.gmra.mrb[32].mxu1 %vm1330_vm0, %v1780_v43 }
 0x4e4   : > { %6711 = vmatpush3.bf16.msra.mxu1 %v2155_v18  ;;  %6698 = vmatprep.mubr.msk.bf16.mxu1 %vm1330_vm0, %v1782_v16  ;;  %v9101_v16 = vpop.permute.xlu0 %2569 }
 0x4e5   : > { %6712 = vmatprep.subr.bf16.mxu1 %v2157_v47 }
 0x4e6   : > { %v2165_v52 = vpop.permute.xlu1 %2164 }
 0x4e8   : > { %6713 = vmatpush3.bf16.msra.mxu1 %v2157_v47 }
 0x4e9   : > { %6714 = vmatprep.subr.bf16.mxu1 %v2159_v28 }
 0x4ea   : > { %v2169_v26 = vpop.permute.xlu1 %2168 }
 0x4eb   : > { %6699 = vmatmul.mubr.msk.bf16.gmra.mrb[36].mxu1 %vm1330_vm0, %v1784_v8 }
 0x4ec   : > { %6715 = vmatpush3.bf16.msra.mxu1 %v2159_v28  ;;  %6702 = vmatprep.mubr.msk.bf16.mxu1 %vm1330_vm0, %v1786_v10 }
 0x4ed   : > { %6716 = vmatprep.subr.bf16.mxu1 %v2161_v62 }
 0x4f0   : > { %6717 = vmatpush3.bf16.msra.mxu1 %v2161_v62 }
 0x4f1   : > { %6718 = vmatprep.subr.bf16.mxu1 %v2163_v46 }
 0x4f3   : > { %6703 = vmatmul.mubr.msk.bf16.gmra.mrb[40].mxu1 %vm1330_vm0, %v1788_v41 }
 0x4f4   : > { %6719 = vmatpush3.bf16.msra.mxu1 %v2163_v46  ;;  %6706 = vmatprep.mubr.msk.bf16.mxu1 %vm1330_vm0, %v1790_v42 }
 0x4f5   : > { %6720 = vmatprep.subr.bf16.mxu1 %v2165_v52 }
 0x4f8   : > { %6721 = vmatpush3.bf16.msra.mxu1 %v2165_v52 }
 0x4f9   : > { %6722 = vmatprep.subr.bf16.mxu1 %v2167_v25 }
 0x4fb   : > { %6707 = vmatmul.mubr.msk.bf16.gmra.mrb[44].mxu1 %vm1330_vm0, %v1792_v14 }
 0x4fc   : > { %6723 = vmatpush3.bf16.msra.mxu1 %v2167_v25 }
 0x4fd   : > { %6724 = vmatprep.subr.bf16.mxu1 %v2169_v26 }
 0x500   : > { %6725 = vmatpush3.bf16.msra.mxu1 %v2169_v26 }
 0x501   : > { %7062 = vmatprep.subr.msk.bf16.mxu1 %vm1330_vm0, %v9101_v16 }
 0x55d   : > { %v9105_v20 = vpop.f32.mrb[16].mxu1 }
 0x55e   : > { %v9107_v55 = vpop.f32.mrb[17].mxu1 }
 0x55f   : > { %v9109_v58 = vpop.f32.mrb[18].mxu1 }
 0x560   : > { %v9113_v33 = vpop.f32.mrb[19].mxu1 }
 0x596   : > { %v9117_v49 = vpop.f32.mrb[20].mxu1 }
 0x597   : > { %v9119_v39 = vpop.f32.mrb[21].mxu1 }
 0x598   : > { %v9121_v43 = vpop.f32.mrb[22].mxu1 }
 0x599   : > { %v9125_v3 = vpop.f32.mrb[23].mxu1 }
 0x5a6   : > { %v9129_v60 = vpop.f32.mrb[24].mxu1 }
 0x5a7   : > { %11017 = vst [vmem:[#allocation53_spill] sm:$0xff] %v9129_v60  ;;  %v9131_v42 = vpop.f32.mrb[25].mxu1 }
 0x5a8   : > { %11018 = vst [vmem:[#allocation54_spill] sm:$0xff] %v9131_v42  ;;  %v9133_v1 = vpop.f32.mrb[26].mxu1 }
 0x5a9   : > { %11019 = vst [vmem:[#allocation55_spill] sm:$0xff] %v9133_v1  ;;  %v9137_v23 = vpop.f32.mrb[27].mxu1 }
 0x5ae   : > { %v9141_v8 = vpop.f32.mrb[28].mxu1 }
 0x5af   : > { %11020 = vst [vmem:[#allocation56_spill] sm:$0xff] %v9141_v8  ;;  %v9143_v36 = vpop.f32.mrb[29].mxu1 }
 0x5b0   : > { %11021 = vst [vmem:[#allocation57_spill] sm:$0xff] %v9143_v36  ;;  %v9145_v34 = vpop.f32.mrb[30].mxu1 }
 0x5b1   : > { %11022 = vst [vmem:[#allocation58_spill] sm:$0xff] %v9145_v34  ;;  %v9149_v18 = vpop.f32.mrb[31].mxu1 }
 0x5b2   : > { %11023 = vst [vmem:[#allocation59_spill] sm:$0xff] %v9149_v18 }
 0x5b6   : > { %v6696_v0 = vpop.f32.mrb[32].mxu1 }
 0x5b7   : > { %v1964_v30 = vmul.f32 0.17677669, %v6696_v0  ;;  %v1899_v41 = vpop.f32.mrb[33].mxu1 }
 0x5b8   : > { %v6697_v38 = vpop.f32.mrb[34].mxu1  ;;  %v1962_v14 = vmul.f32 0.17677669, %v1899_v41 }
 0x5b9   : > { %v1902_v47 = vpop.f32.mrb[35].mxu1  ;;  %v9154_v28 = vadd.f32 %v1964_v30, %v8845_v29  ;;  %v1965_v52 = vmul.f32 0.17677669, %v6697_v38 }
 0x5ba   : > { %v1963_v62 = vmul.f32 0.17677669, %v1902_v47  ;;  %v9161_v25 = vadd.f32 %v1962_v14, %v8847_v32 }
 0x5bb   : > { %1998 = vmax.xlane.f32.xlu0 %v9154_v28  ;;  %v1981_v47 = vadd.f32 %v1965_v52, %v8855_v44 }
 0x5bc   : > { %v9158_v46 = vadd.f32 %v1963_v62, %v8858_v45 }
 0x5be   : > { %1996 = vmax.xlane.f32.xlu1 %v9158_v46  ;;  %v6700_v26 = vpop.f32.mrb[36].mxu1 }
 0x5bf   : > { %1994 = vmax.xlane.f32.xlu0 %v9161_v25  ;;  %v1915_v0 = vpop.f32.mrb[37].mxu1  ;;  %v1968_v56 = vmul.f32 0.17677669, %v6700_v26 }
 0x5c0   : > { %v6701_v41 = vpop.f32.mrb[38].mxu1  ;;  %v1966_v38 = vmul.f32 0.17677669, %v1915_v0 }
 0x5c1   : > { %v1969_v29 = vmul.f32 0.17677669, %v6701_v41  ;;  %v1918_v30 = vpop.f32.mrb[39].mxu1  ;;  %v9171_v32 = vadd.f32 %v1968_v56, %v8867_v51  ;;  %v11025_v51 = vld [vmem:[#allocation46_spill] sm:$0xff] }
 0x5c2   : > { %v1967_v15 = vmul.f32 0.17677669, %v1918_v30 }
 0x5c3   : > { %2000 = vmax.xlane.f32.xlu0 %v1981_v47  ;;  %v9167_v45 = vadd.f32 %v1969_v29, %v8871_v57  ;;  %v11024_v29 = vld [vmem:[#allocation44_spill] sm:$0xff] }
 0x5c4   : > { %v9175_v26 = vadd.f32 %v1967_v15, %v8882_v7  ;;  %v9179_v0 = vadd.f32 %v1966_v38, %v11024_v29  ;;  %v11026_v7 = vld [vmem:[#allocation45_spill] sm:$0xff] }
 0x5c5   : > { %2008 = vmax.xlane.f32.xlu1 %v9167_v45 }
 0x5c6   : > { %v6704_v14 = vpop.f32.mrb[40].mxu1 }
 0x5c7   : > { %2006 = vmax.xlane.f32.xlu0 %v9171_v32  ;;  %v1931_v62 = vpop.f32.mrb[41].mxu1  ;;  %v1972_v44 = vmul.f32 0.17677669, %v6704_v14 }
 0x5c8   : > { %v6705_v41 = vpop.f32.mrb[42].mxu1  ;;  %v1970_v5 = vmul.f32 0.17677669, %v1931_v62 }
 0x5c9   : > { %v1973_v52 = vmul.f32 0.17677669, %v6705_v41  ;;  %2004 = vmax.xlane.f32.xlu1 %v9175_v26  ;;  %v1934_v57 = vpop.f32.mrb[43].mxu1  ;;  %v9187_v15 = vadd.f32 %v1972_v44, %v11026_v7  ;;  %v11029_v44 = vld [vmem:[#allocation49_spill] sm:$0xff] }
 0x5ca   : > { %v1971_v30 = vmul.f32 0.17677669, %v1934_v57 }
 0x5cb   : > { %2002 = vmax.xlane.f32.xlu0 %v9179_v0  ;;  %v9183_v56 = vadd.f32 %v1973_v52, %v11025_v51  ;;  %v11028_v52 = vld [vmem:[#allocation47_spill] sm:$0xff] }
 0x5cc   : > { %v9191_v17 = vadd.f32 %v1971_v30, %v11027_v54  ;;  %v9195_v51 = vadd.f32 %v1970_v5, %v11028_v52  ;;  %v11031_v54 = vld [vmem:[#allocation36_spill] sm:$0xff]  ;;  %v11032_v30 = vld [vmem:[#allocation34_spill] sm:$0xff]  ;;  %v11033_v52 = vld [vmem:[#allocation51_spill] sm:$0xff] }
 0x5cd   : > { %2016 = vmax.xlane.f32.xlu1 %v9183_v56 }
 0x5ce   : > { %v6708_v14 = vpop.f32.mrb[44].mxu1 }
 0x5cf   : > { %2014 = vmax.xlane.f32.xlu0 %v9187_v15  ;;  %v1947_v41 = vpop.f32.mrb[45].mxu1  ;;  %v1976_v57 = vmul.f32 0.17677669, %v6708_v14 }
 0x5d0   : > { %v6709_v38 = vpop.f32.mrb[46].mxu1  ;;  %v1974_v62 = vmul.f32 0.17677669, %v1947_v41 }
 0x5d1   : > { %2012 = vmax.xlane.f32.xlu1 %v9191_v17  ;;  %v1950_v29 = vpop.f32.mrb[47].mxu1  ;;  %v9199_v7 = vadd.f32 %v1976_v57, %v11029_v44  ;;  %v1977_v5 = vmul.f32 0.17677669, %v6709_v38  ;;  %v11034_v57 = vld [vmem:[#allocation52_spill] sm:$0xff] }
 0x5d2   : > { %v9203_v59 = vadd.f32 %v1974_v62, %v11030_v31  ;;  %v1975_v14 = vmul.f32 0.17677669, %v1950_v29  ;;  %v9218_v31 = vpop.permute.xlu1 %2571 }
 0x5d3   : > { %2010 = vmax.xlane.f32.xlu0 %v9195_v51  ;;  %v9211_v41 = vadd.f32 %v1977_v5, %v11033_v52 }
 0x5d4   : > { %v9215_v44 = vadd.f32 %v1975_v14, %v11034_v57 }
 0x5d7   : > { %2022 = vmax.xlane.f32.xlu0 %v9199_v7 }
 0x5db   : > { %2018 = vmax.xlane.f32.xlu0 %v9203_v59 }
 0x5e2   : > { %2575 = vrot.lane.b32.xlu1 %v11031_v54, %s8109_s23 }
 0x5f1   : > { %2573 = vrot.lane.b32.xlu0 %v11032_v30, %s8109_s23 }
 0x606   : > { %2024 = vmax.xlane.f32.xlu1 %v9211_v41 }
 0x60a   : > { %2020 = vmax.xlane.f32.xlu1 %v9215_v44 }
 0x648   : > { %v1999_v62 = vpop.xlane.xlu0 %1998 }
 0x649   : > { %v2028_v10 = vsub.f32 %v9154_v28, %v1999_v62 }
 0x64b   : > { %v2046_v2 = vmul.f32 1.442695, %v2028_v10  ;;  %v1997_v63 = vpop.xlane.xlu1 %1996 }
 0x64c   : > { %v2027_v38 = vsub.f32 %v9158_v46, %v1997_v63  ;;  %v1995_v29 = vpop.xlane.xlu0 %1994 }
 0x64d   : > { %7422 = vpow2.f32 %v2046_v2  ;;  %v2026_v5 = vsub.f32 %v9161_v25, %v1995_v29  ;;  %v11035_v2 = vld [vmem:[#allocation42_spill] sm:$0xff] }
 0x64e   : > { %v2044_v52 = vmul.f32 1.442695, %v2027_v38 }
 0x64f   : > { %v2042_v37 = vmul.f32 1.442695, %v2026_v5 }
 0x650   : > { %7424 = vpow2.f32 %v2044_v52  ;;  %v2001_v14 = vpop.xlane.xlu0 %2000 }
 0x651   : > { %7426 = vpow2.f32 %v2042_v37  ;;  %v2029_v57 = vsub.f32 %v1981_v47, %v2001_v14 }
 0x652   : > { %v2009_v25 = vpop.xlane.xlu1 %2008 }
 0x653   : > { %v2048_v50 = vmul.f32 1.442695, %v2029_v57  ;;  %v2033_v34 = vsub.f32 %v9167_v45, %v2009_v25 }
 0x654   : > { %v2007_v37 = vpop.xlane.xlu0 %2006 }
 0x655   : > { %7428 = vpow2.f32 %v2048_v50  ;;  %v11036_v50 = vld [vmem:[#allocation39_spill] sm:$0xff]  ;;  %v2032_v62 = vsub.f32 %v9171_v32, %v2007_v37  ;;  %v2056_v1 = vmul.f32 1.442695, %v2033_v34 }
 0x656   : > { %v2005_v38 = vpop.xlane.xlu1 %2004 }
 0x657   : > { %v9223_v53 = vpop.eup %7422  ;;  %v2054_v5 = vmul.f32 1.442695, %v2032_v62  ;;  %v2031_v14 = vsub.f32 %v9175_v26, %v2005_v38 }
 0x658   : > { %2078 = vadd.xlane.f32.xlu1 %v9223_v53  ;;  %v2003_v46 = vpop.xlane.xlu0 %2002 }
 0x659   : > { %v2030_v52 = vsub.f32 %v9179_v0, %v2003_v46  ;;  %7430 = vpow2.f32 %v2054_v5  ;;  %v2052_v18 = vmul.f32 1.442695, %v2031_v14 }
 0x65a   : > { %v9226_v10 = vpop.eup %7424  ;;  %v2017_v57 = vpop.xlane.xlu1 %2016 }
 0x65b   : > { %v9228_v28 = vpop.eup %7426  ;;  %2076 = vadd.xlane.f32.xlu0 %v9226_v10  ;;  %v2050_v36 = vmul.f32 1.442695, %v2030_v52  ;;  %v2037_v45 = vsub.f32 %v9183_v56, %v2017_v57 }
 0x65c   : > { %2074 = vadd.xlane.f32.xlu1 %v9228_v28  ;;  %v2015_v47 = vpop.xlane.xlu0 %2014 }
 0x65d   : > { %v2036_v60 = vsub.f32 %v9187_v15, %v2015_v47  ;;  %7432 = vpow2.f32 %v2050_v36 }
 0x65e   : > { %v2013_v42 = vpop.xlane.xlu1 %2012  ;;  %7434 = vpow2.f32 %v2052_v18 }
 0x65f   : > { %v9232_v63 = vpop.eup %7428  ;;  %v2062_v37 = vmul.f32 1.442695, %v2036_v60  ;;  %7436 = vpow2.f32 %v2056_v1  ;;  %v2064_v60 = vmul.f32 1.442695, %v2037_v45  ;;  %v2035_v36 = vsub.f32 %v9191_v17, %v2013_v42 }
 0x660   : > { %2080 = vadd.xlane.f32.xlu1 %v9232_v63  ;;  %v2011_v29 = vpop.xlane.xlu0 %2010 }
 0x661   : > { %v2034_v0 = vsub.f32 %v9195_v51, %v2011_v29  ;;  %7438 = vpow2.f32 %v2062_v37  ;;  %v2060_v15 = vmul.f32 1.442695, %v2035_v36 }
 0x662   : > { %v9250_v34 = vpop.permute.xlu1 %2575 }
 0x663   : > { %v2058_v25 = vmul.f32 1.442695, %v2034_v0  ;;  %v9248_v38 = vpop.eup %7430 }
 0x664   : > { %v2023_v8 = vpop.xlane.xlu0 %2022 }
 0x665   : > { %v2040_v32 = vsub.f32 %v9199_v7, %v2023_v8 }
 0x667   : > { %v2070_v26 = vmul.f32 1.442695, %v2040_v32  ;;  %v9254_v1 = vpop.eup %7432 }
 0x668   : > { %v2019_v46 = vpop.xlane.xlu0 %2018 }
 0x669   : > { %v2038_v62 = vsub.f32 %v9203_v59, %v2019_v46  ;;  %7440 = vpow2.f32 %v2070_v26  ;;  %v9256_v59 = vpop.eup %7434 }
 0x66a   : > { %7442 = vpow2.f32 %v2058_v25  ;;  %v9261_v7 = vpop.eup %7436 }
 0x66b   : > { %v2066_v8 = vmul.f32 1.442695, %v2038_v62  ;;  %v9263_v17 = vpop.eup %7438 }
 0x66d   : > { %7444 = vpow2.f32 %v2066_v8  ;;  %v7270_v8 = vld [vmem:[%s8629_s7 + $0x10] sm:$0xff]  }
 0x66e   : > { %7446 = vpow2.f32 %v2064_v60  ;;  %6742 = vmatprep.subr.bf16.mxu0 %v7270_v8 }
 0x66f   : > { %6743 = vmatpush3.bf16.msra.mxu0 %v7270_v8 }
 0x671   : > { %2579 = vrot.lane.b32.xlu1 %v11035_v2, %s8109_s23  ;;  %2577 = vrot.lane.b32.xlu0 %v11036_v50, %s8109_s23 }
 0x673   : > { %v9268_v29 = vpop.eup %7440 }
 0x674   : > { %v9270_v5 = vpop.eup %7442 }
 0x677   : > { %v9274_v52 = vpop.eup %7444 }
 0x678   : > { %v9276_v14 = vpop.eup %7446 }
 0x690   : > { %2086 = vadd.xlane.f32.xlu0 %v9248_v38 }
 0x693   : > { %v2025_v18 = vpop.xlane.xlu1 %2024 }
 0x694   : > { %v2041_v56 = vsub.f32 %v9211_v41, %v2025_v18  ;;  %2082 = vadd.xlane.f32.xlu0 %v9254_v1 }
 0x695   : > { %2084 = vadd.xlane.f32.xlu1 %v9256_v59 }
 0x696   : > { %v2072_v51 = vmul.f32 1.442695, %v2041_v56 }
 0x697   : > { %v2021_v47 = vpop.xlane.xlu1 %2020 }
 0x698   : > { %7448 = vpow2.f32 %v2072_v51  ;;  %v2039_v42 = vsub.f32 %v9215_v44, %v2021_v47  ;;  %2088 = vadd.xlane.f32.xlu0 %v9261_v7 }
 0x699   : > { %2094 = vadd.xlane.f32.xlu1 %v9263_v17  ;;  %7450 = vpow2.f32 %v2060_v15 }
 0x69a   : > { %v2068_v41 = vmul.f32 1.442695, %v2039_v42 }
 0x69c   : > { %2102 = vadd.xlane.f32.xlu0 %v9268_v29  ;;  %7452 = vpow2.f32 %v2068_v41 }
 0x69d   : > { %2090 = vadd.xlane.f32.xlu1 %v9270_v5 }
 0x6a0   : > { %2098 = vadd.xlane.f32.xlu0 %v9274_v52 }
 0x6a1   : > { %2096 = vadd.xlane.f32.xlu1 %v9276_v14 }
 0x6a2   : > { %v9280_v44 = vpop.eup %7448 }
 0x6a3   : > { %v9282_v57 = vpop.eup %7450 }
 0x6a4   : > { %2104 = vadd.xlane.f32.xlu0 %v9280_v44 }
 0x6a5   : > { %2092 = vadd.xlane.f32.xlu1 %v9282_v57 }
 0x6a6   : > { %v9286_v32 = vpop.eup %7452 }
 0x6a9   : > { %2100 = vadd.xlane.f32.xlu1 %v9286_v32 }
 0x6ba   : > { %2581 = vrot.lane.b32.xlu0 %v8813_v12, %s8109_s23  ;;  %2583 = vrot.lane.b32.xlu1 %v8821_v21, %s8109_s23 }
 0x6be   : > { %2553 = vrot.lane.b32.xlu0 %v8725_v4, %s8109_s23  ;;  %2555 = vrot.lane.b32.xlu1 %v8737_v11, %s8109_s23 }
 0x6c2   : > { %2557 = vrot.lane.b32.xlu0 %v8747_v22, %s8109_s23  ;;  %2559 = vrot.lane.b32.xlu1 %v8762_v35, %s8109_s23 }
 0x6c6   : > { %2561 = vrot.lane.b32.xlu0 %v8778_v48, %s8109_s23  ;;  %2563 = vrot.lane.b32.xlu1 %v8794_v61, %s8109_s23 }
 0x6ca   : > { %2565 = vrot.lane.b32.xlu0 %v8810_v9, %s8109_s23  ;;  %2567 = vrot.lane.b32.xlu1 %v8819_v19, %s8109_s23 }
 0x6ce   : > { %3212 = vrot.lane.b32.xlu0 %v8727_v6, %s8110_s11  ;;  %3214 = vrot.lane.b32.xlu1 %v8739_v13, %s8110_s11  ;;  %v2574_v6 = vpop.permute.xlu0 %2573 }
 0x6d2   : > { %3216 = vrot.lane.b32.xlu0 %v11032_v30, %s8110_s11  ;;  %3218 = vrot.lane.b32.xlu1 %v11031_v54, %s8110_s11 }
 0x6d6   : > { %3220 = vrot.lane.b32.xlu0 %v11036_v50, %s8110_s11  ;;  %3222 = vrot.lane.b32.xlu1 %v11035_v2, %s8110_s11  ;;  %v2610_v50 = vsel %vm1330_vm0, %v9101_v16, 0 }
 0x6da   : > { %3224 = vrot.lane.b32.xlu0 %v8813_v12, %s8110_s11  ;;  %3226 = vrot.lane.b32.xlu1 %v8821_v21, %s8110_s11 }
 0x6de   : > { %3196 = vrot.lane.b32.xlu0 %v8725_v4, %s8110_s11  ;;  %3198 = vrot.lane.b32.xlu1 %v8737_v11, %s8110_s11 }
 0x6e2   : > { %3200 = vrot.lane.b32.xlu0 %v8747_v22, %s8110_s11  ;;  %3202 = vrot.lane.b32.xlu1 %v8762_v35, %s8110_s11 }
 0x6e5   : > { %v2079_v13 = vpop.xlane.xlu1 %2078 }
 0x6e6   : > { %3204 = vrot.lane.b32.xlu0 %v8778_v48, %s8110_s11  ;;  %3206 = vrot.lane.b32.xlu1 %v8794_v61, %s8110_s11 }
 0x6e8   : > { %v2077_v12 = vpop.xlane.xlu0 %2076 }
 0x6e9   : > { %7454 = vrcp.f32 %v2077_v12  ;;  %v2075_v4 = vpop.xlane.xlu1 %2074 }
 0x6ea   : > { %7456 = vrcp.f32 %v2075_v4  ;;  %3208 = vrot.lane.b32.xlu0 %v8810_v9, %s8110_s11  ;;  %3210 = vrot.lane.b32.xlu1 %v8819_v19, %s8110_s11 }
 0x6eb   : > { %7458 = vrcp.f32 %v2079_v13 }
 0x6ec   : > { %v2578_v16 = vpop.permute.xlu0 %2577 }
 0x6ed   : > { %v2081_v11 = vpop.xlane.xlu1 %2080  ;;  %v2622_v37 = vsel %vm1330_vm0, %v2578_v16, 0 }
 0x6ee   : > { %7460 = vrcp.f32 %v2081_v11  ;;  %2914 = vrot.lane.b32.xlu0 %v8753_v27, %s8109_s23  ;;  %2916 = vrot.lane.b32.xlu1 %v8749_v24, %s8109_s23 }
 0x6f2   : > { %2918 = vrot.lane.b32.xlu0 %v8769_v40, %s8109_s23 }
 0x6f3   : > { %v7455_v22 = vpop.eup %7454 }
 0x6f4   : > { %v7457_v35 = vpop.eup %7456  ;;  %v2123_v48 = vmul.f32 %v7455_v22, %v9226_v10  ;;  %v2613_v10 = vsel %vm1330_vm0, %v9218_v31, 0 }
 0x6f5   : > { %v2122_v61 = vmul.f32 %v7457_v35, %v9228_v28  ;;  %v7459_v9 = vpop.eup %7458  ;;  %v2619_v28 = vsel %vm1330_vm0, %v9250_v34, 0 }
 0x6f6   : > { %v2124_v54 = vmul.f32 %v7459_v9, %v9223_v53  ;;  %v2616_v53 = vsel %vm1330_vm0, %v2574_v6, 0 }
 0x6f7   : > { %v2138_v19 = vpack.c.bf16 %v2123_v48, %v2122_v61 }
 0x6f8   : > { %v7461_v21 = vpop.eup %7460 }
 0x6f9   : > { %v2125_v30 = vmul.f32 %v7461_v21, %v9232_v63  ;;  %6726 = vmatprep.mubr.bf16.mxu1 %v2138_v19 }
 0x6fb   : > { %v2139_v2 = vpack.c.bf16 %v2125_v30, %v2124_v54 }
 0x6fd   : > { %6727 = vmatmul.mubr.bf16.vlgmr.msra.gmra.mrb[48].mxu1 %v2139_v2 }
 0x6fe   : > { %6783 = vmatpush3.bf16.xpose.msra.mxu1 %v2610_v50 }
 0x6ff   : > { %7063 = vmatprep.subr.msk.bf16.mxu1 %vm1330_vm0, %v9218_v31  ;;  %v2580_v31 = vpop.permute.xlu1 %2579 }
 0x700   : > { %v2625_v62 = vsel %vm1330_vm0, %v2580_v31, 0 }
 0x706   : > { %6785 = vmatpush3.bf16.xpose.msra.mxu1 %v2613_v10 }
 0x707   : > { %7064 = vmatprep.subr.msk.bf16.mxu1 %vm1330_vm0, %v2574_v6 }
 0x70e   : > { %6787 = vmatpush3.bf16.xpose.msra.mxu1 %v2616_v53 }
 0x70f   : > { %7065 = vmatprep.subr.msk.bf16.mxu1 %vm1330_vm0, %v9250_v34 }
 0x716   : > { %6789 = vmatpush3.bf16.xpose.msra.mxu1 %v2619_v28 }
 0x717   : > { %7066 = vmatprep.subr.msk.bf16.mxu1 %vm1330_vm0, %v2578_v16 }
 0x71d   : > { %v2087_v63 = vpop.xlane.xlu0 %2086 }
 0x71e   : > { %6791 = vmatpush3.bf16.xpose.msra.mxu1 %v2622_v37 }
 0x71f   : > { %7067 = vmatprep.subr.msk.bf16.mxu1 %vm1330_vm0, %v2580_v31 }
 0x721   : > { %v2083_v0 = vpop.xlane.xlu0 %2082 }
 0x722   : > { %7462 = vrcp.f32 %v2083_v0  ;;  %v2085_v46 = vpop.xlane.xlu1 %2084 }
 0x723   : > { %7464 = vrcp.f32 %v2085_v46 }
 0x724   : > { %7466 = vrcp.f32 %v2087_v63 }
 0x725   : > { %v2089_v26 = vpop.xlane.xlu0 %2088 }
 0x726   : > { %7468 = vrcp.f32 %v2089_v26  ;;  %6793 = vmatpush3.bf16.xpose.msra.mxu1 %v2625_v62  ;;  %v2095_v45 = vpop.xlane.xlu1 %2094 }
 0x729   : > { %v2103_v25 = vpop.xlane.xlu0 %2102 }
 0x72a   : > { %v2091_v34 = vpop.xlane.xlu1 %2090 }
 0x72c   : > { %v7463_v60 = vpop.eup %7462 }
 0x72d   : > { %v7465_v36 = vpop.eup %7464  ;;  %v2099_v18 = vpop.xlane.xlu0 %2098  ;;  %v2126_v56 = vmul.f32 %v7463_v60, %v9254_v1 }
 0x72e   : > { %v7467_v15 = vpop.eup %7466  ;;  %v2097_v51 = vpop.xlane.xlu1 %2096  ;;  %v2127_v47 = vmul.f32 %v7465_v36, %v9256_v59 }
 0x72f   : > { %7470 = vrcp.f32 %v2097_v51  ;;  %v2128_v13 = vmul.f32 %v7467_v15, %v9248_v38 }
 0x730   : > { %v7469_v42 = vpop.eup %7468  ;;  %v2140_v41 = vpack.c.bf16 %v2127_v47, %v2126_v56  ;;  %7472 = vrcp.f32 %v2091_v34 }
 0x731   : > { %v2105_v6 = vpop.xlane.xlu0 %2104  ;;  %v2129_v12 = vmul.f32 %v7469_v42, %v9261_v7  ;;  %7474 = vrcp.f32 %v2095_v45 }
 0x732   : > { %6730 = vmatprep.mubr.bf16.mxu1 %v2140_v41  ;;  %v2093_v4 = vpop.xlane.xlu1 %2092 }
 0x733   : > { %7476 = vrcp.f32 %v2093_v4  ;;  %v2141_v1 = vpack.c.bf16 %v2129_v12, %v2128_v13 }
 0x734   : > { %7478 = vrcp.f32 %v2099_v18 }
 0x735   : > { %v2582_v11 = vpop.permute.xlu0 %2581  ;;  %6731 = vmatmul.mubr.bf16.gmra.mrb[52].mxu1 %v2141_v1 }
 0x736   : > { %7068 = vmatprep.subr.msk.bf16.mxu1 %vm1330_vm0, %v2582_v11  ;;  %v2101_v59 = vpop.xlane.xlu1 %2100  ;;  %v2628_v22 = vsel %vm1330_vm0, %v2582_v11, 0 }
 0x737   : > { %7480 = vrcp.f32 %v2101_v59  ;;  %6795 = vmatpush3.bf16.xpose.msra.mxu1 %v2628_v22 }
 0x738   : > { %7482 = vrcp.f32 %v2105_v6 }
 0x739   : > { %v2554_v35 = vpop.permute.xlu0 %2553  ;;  %v7471_v38 = vpop.eup %7470  ;;  %7484 = vrcp.f32 %v2103_v25 }
 0x73a   : > { %v2584_v7 = vpop.permute.xlu1 %2583  ;;  %v7473_v48 = vpop.eup %7472  ;;  %v2133_v21 = vmul.f32 %v7471_v38, %v9276_v14 }
 0x73b   : > { %7069 = vmatprep.subr.msk.bf16.mxu1 %vm1330_vm0, %v2584_v7  ;;  %v7475_v61 = vpop.eup %7474  ;;  %v2631_v30 = vsel %vm1330_vm0, %v2584_v7, 0  ;;  %v2130_v2 = vmul.f32 %v7473_v48, %v9270_v5 }
 0x73c   : > { %v2132_v53 = vmul.f32 %v7475_v61, %v9263_v17  ;;  %v11037_v61 = vmov 0  }
 0x73d   : > { %v7477_v9 = vpop.eup %7476  ;;  %v2558_v19 = vpop.permute.xlu0 %2557 }
 0x73e   : > { %v2556_v54 = vpop.permute.xlu1 %2555  ;;  %v2131_v50 = vmul.f32 %v7477_v9, %v9282_v57  ;;  %v7479_v10 = vpop.eup %7478  ;;  %v2143_v37 = vpack.c.bf16 %v2133_v21, %v2132_v53 }
 0x73f   : > { %6797 = vmatpush3.bf16.xpose.msra.mxu1 %v2631_v30  ;;  %v2134_v14 = vmul.f32 %v7479_v10, %v9274_v52 }
 0x740   : > { %v2142_v28 = vpack.c.bf16 %v2131_v50, %v2130_v2  ;;  %v7273_v50 = vld [vmem:[%s8629_s7 + $0x8] sm:$0xff]  }
 0x741   : > { %v7481_v16 = vpop.eup %7480  ;;  %v2562_v63 = vpop.permute.xlu0 %2561 }
 0x742   : > { %v7483_v31 = vpop.eup %7482  ;;  %6734 = vmatprep.mubr.bf16.mxu1 %v2142_v28  ;;  %v2560_v0 = vpop.permute.xlu1 %2559  ;;  %v2135_v46 = vmul.f32 %v7481_v16, %v9286_v32  ;;  %v7271_v32 = vld [vmem:[%s8629_s7 + $0x18] sm:$0xff]  }
 0x743   : > { %6735 = vmatmul.mubr.bf16.gmra.mrb[56].mxu1 %v2143_v37  ;;  %v7485_v5 = vpop.eup %7484  ;;  %v2137_v62 = vmul.f32 %v7483_v31, %v9280_v44  ;;  %6744 = vmatprep.subr.bf16.mxu0 %v7271_v32 }
 0x744   : > { %v2144_v26 = vpack.c.bf16 %v2135_v46, %v2134_v14  ;;  %v2136_v17 = vmul.f32 %v7485_v5, %v9268_v29  ;;  %6745 = vmatpush3.bf16.msra.mxu0 %v7271_v32  ;;  %v7272_v29 = vld [vmem:[%s8629_s7] sm:$0xff]   ;;  %v11038_v32 = vpack.c.bf16 %v9113_v33, %v9107_v55  ;;  %v11039_v33 = vpack.c.bf16 %v9109_v58, %v9105_v20 }
 0x745   : > { %v2566_v57 = vpop.permute.xlu0 %2565  ;;  %6762 = vmatprep.subr.bf16.mxu0 %v7272_v29 }
 0x746   : > { %6738 = vmatprep.mubr.bf16.mxu1 %v2144_v26  ;;  %v2564_v45 = vpop.permute.xlu1 %2563  ;;  %v2145_v34 = vpack.c.bf16 %v2137_v62, %v2136_v17 }
 0x749   : > { %v3213_v25 = vpop.permute.xlu0 %3212 }
 0x74a   : > { %7070 = vmatprep.subr.msk.bf16.mxu1 %vm1330_vm0, %v3213_v25  ;;  %v2568_v52 = vpop.permute.xlu1 %2567  ;;  %v3253_v8 = vsel %vm1330_vm0, %v3213_v25, 0 }
 0x74b   : > { %6739 = vmatmul.mubr.bf16.gmra.mrb[60].mxu1 %v2145_v34 }
 0x74c   : > { %6798 = vmatprep.mubr.msk.bf16.mxu1 %vm1330_vm0, %v2554_v35 }
 0x74d   : > { %v3217_v60 = vpop.permute.xlu0 %3216 }
 0x74e   : > { %v3215_v44 = vpop.permute.xlu1 %3214  ;;  %v3259_v56 = vsel %vm1330_vm0, %v3217_v60, 0 }
 0x74f   : > { %v3256_v36 = vsel %vm1330_vm0, %v3215_v44, 0 }
 0x751   : > { %v3221_v18 = vpop.permute.xlu0 %3220 }
 0x752   : > { %v3219_v15 = vpop.permute.xlu1 %3218  ;;  %v3265_v41 = vsel %vm1330_vm0, %v3221_v18, 0 }
 0x753   : > { %6799 = vmatmul.mubr.msk.bf16.vlgmr.msra.gmra.mrb[64].mxu1 %vm1330_vm0, %v2556_v54  ;;  %v3262_v42 = vsel %vm1330_vm0, %v3219_v15, 0 }
 0x754   : > { %6867 = vmatpush3.bf16.xpose.msra.mxu1 %v3253_v8  ;;  %6802 = vmatprep.mubr.msk.bf16.mxu1 %vm1330_vm0, %v2558_v19 }
 0x755   : > { %7071 = vmatprep.subr.msk.bf16.mxu1 %vm1330_vm0, %v3215_v44  ;;  %v3225_v51 = vpop.permute.xlu0 %3224 }
 0x756   : > { %v3223_v6 = vpop.permute.xlu1 %3222  ;;  %v3271_v12 = vsel %vm1330_vm0, %v3225_v51, 0 }
 0x757   : > { %v3268_v13 = vsel %vm1330_vm0, %v3223_v6, 0 }
 0x759   : > { %v3197_v47 = vpop.permute.xlu0 %3196 }
 0x75a   : > { %v3227_v4 = vpop.permute.xlu1 %3226 }
 0x75b   : > { %6803 = vmatmul.mubr.msk.bf16.gmra.mrb[68].mxu1 %vm1330_vm0, %v2560_v0  ;;  %v3274_v1 = vsel %vm1330_vm0, %v3227_v4, 0 }
 0x75c   : > { %6869 = vmatpush3.bf16.xpose.msra.mxu1 %v3256_v36  ;;  %6806 = vmatprep.mubr.msk.bf16.mxu1 %vm1330_vm0, %v2562_v63  ;;  %v9432_v36 = vld [vmem:[#allocation6 + $0x10] sm:$0xff] }
 0x75d   : > { %7072 = vmatprep.subr.msk.bf16.mxu1 %vm1330_vm0, %v3217_v60  ;;  %v3201_v59 = vpop.permute.xlu0 %3200 }
 0x75e   : > { %v3199_v11 = vpop.permute.xlu1 %3198 }
 0x761   : > { %v3205_v35 = vpop.permute.xlu0 %3204 }
 0x762   : > { %v3203_v22 = vpop.permute.xlu1 %3202 }
 0x763   : > { %6807 = vmatmul.mubr.msk.bf16.gmra.mrb[72].mxu1 %vm1330_vm0, %v2564_v45 }
 0x764   : > { %6871 = vmatpush3.bf16.xpose.msra.mxu1 %v3259_v56  ;;  %6810 = vmatprep.mubr.msk.bf16.mxu1 %vm1330_vm0, %v2566_v57 }
 0x765   : > { %7073 = vmatprep.subr.msk.bf16.mxu1 %vm1330_vm0, %v3219_v15  ;;  %v3209_v7 = vpop.permute.xlu0 %3208 }
 0x766   : > { %v3207_v38 = vpop.permute.xlu1 %3206 }
 0x769   : > { %v2915_v10 = vpop.permute.xlu0 %2914 }
 0x76a   : > { %v3211_v48 = vpop.permute.xlu1 %3210 }
 0x76b   : > { %6811 = vmatmul.mubr.msk.bf16.gmra.mrb[76].mxu1 %vm1330_vm0, %v2568_v52 }
 0x76c   : > { %6873 = vmatpush3.bf16.xpose.msra.mxu1 %v3262_v42  ;;  %6882 = vmatprep.mubr.msk.bf16.mxu1 %vm1330_vm0, %v3197_v47  ;;  %v9438_v47 = vld [vmem:[#allocation6 + $0x8] sm:$0xff] }
 0x76d   : > { %7074 = vmatprep.subr.msk.bf16.mxu1 %vm1330_vm0, %v3221_v18 }
 0x76e   : > { %v2917_v42 = vpop.permute.xlu1 %2916 }
 0x774   : > { %6875 = vmatpush3.bf16.xpose.msra.mxu1 %v3265_v41  ;;  %v9447_v41 = vld [vmem:[#allocation6] sm:$0xff] }
 0x775   : > { %7075 = vmatprep.subr.msk.bf16.mxu1 %vm1330_vm0, %v3223_v6 }
 0x77c   : > { %6877 = vmatpush3.bf16.xpose.msra.mxu1 %v3268_v13 }
 0x77d   : > { %7076 = vmatprep.subr.msk.bf16.mxu1 %vm1330_vm0, %v3225_v51 }
 0x784   : > { %6879 = vmatpush3.bf16.xpose.msra.mxu1 %v3271_v12  ;;  %v11040_v12 = vpack.c.bf16 %v9125_v3, %v9119_v39  ;;  %v9463_v39 = vld [vmem:[#allocation6 + $0x20] sm:$0xff] }
 0x785   : > { %7077 = vmatprep.subr.msk.bf16.mxu1 %vm1330_vm0, %v3227_v4 }
 0x78c   : > { %6881 = vmatpush3.bf16.xpose.msra.mxu1 %v3274_v1 }
 0x793   : > { %6883 = vmatmul.mubr.msk.bf16.vlgmr.msra.gmra.mrb[80].mxu1 %vm1330_vm0, %v3199_v11 }
 0x794   : > { %6886 = vmatprep.mubr.msk.bf16.mxu1 %vm1330_vm0, %v3201_v59  ;;  %v2919_v59 = vpop.permute.xlu0 %2918 }
 0x79b   : > { %6887 = vmatmul.mubr.msk.bf16.gmra.mrb[84].mxu1 %vm1330_vm0, %v3203_v22  ;;  %v9458_v22 = vld [vmem:[#allocation6 + $0x18] sm:$0xff] }
 0x79c   : > { %6890 = vmatprep.mubr.msk.bf16.mxu1 %vm1330_vm0, %v3205_v35 }
 0x7a3   : > { %6891 = vmatmul.mubr.msk.bf16.gmra.mrb[88].mxu1 %vm1330_vm0, %v3207_v38 }
 0x7a4   : > { %6894 = vmatprep.mubr.msk.bf16.mxu1 %vm1330_vm0, %v3209_v7 }
 0x7ab   : > { %6895 = vmatmul.mubr.msk.bf16.gmra.mrb[92].mxu1 %vm1330_vm0, %v3211_v48  ;;  %v11041_v48 = vpack.c.bf16 %v9121_v43, %v9117_v49 }
 0x7ac   : > { %4355 = vmatprep.mubr.bf16.mxu1 %v11037_v61 }
 0x7d0   : > { %v6728_v9 = vpop.f32.mrb[48].mxu1 }
 0x7d1   : > { %v2212_v19 = vpop.f32.mrb[49].mxu1 }
 0x7d2   : > { %v6729_v21 = vpop.f32.mrb[50].mxu1 }
 0x7d3   : > { %v2276_v54 = vpack.c.bf16 %v6729_v21, %v6728_v9  ;;  %v2215_v30 = vpop.f32.mrb[51].mxu1  ;;  %v9474_v9 = vld [vmem:[#allocation6 + $0x30] sm:$0xff]  ;;  %v9479_v21 = vld [vmem:[#allocation6 + $0x38] sm:$0xff] }
 0x7d4   : > { %v2275_v2 = vpack.c.bf16 %v2215_v30, %v2212_v19 }
 0x7d6   : > { %6746 = vmatprep.mubr.msk.bf16.mxu0 %vm1330_vm0, %v2275_v2  ;;  %v11042_v2 = vld [vmem:[#allocation54_spill] sm:$0xff] }
 0x7d7   : > { %6747 = vmatmul.mubr.msk.bf16.vlgmr.msra.gmra.mrb[48].mxu0 %vm1330_vm0, %v2276_v54 }
 0x7d8   : > { %6763 = vmatpush3.bf16.msra.mxu0 %v7272_v29 }
 0x7d9   : > { %6764 = vmatprep.subr.bf16.mxu0 %v7273_v50 }
 0x7dc   : > { %6765 = vmatpush3.bf16.msra.mxu0 %v7273_v50  ;;  %v11043_v50 = vpack.c.bf16 %v9137_v23, %v11042_v2  ;;  %v11056_v2 = vld [vmem:[#allocation38_spill] sm:$0xff] }
 0x7dd   : > { %6814 = vmatprep.subr.bf16.mxu0 %v2915_v10 }
 0x808   : > { %v6732_v53 = vpop.f32.mrb[52].mxu1 }
 0x809   : > { %v2228_v28 = vpop.f32.mrb[53].mxu1 }
 0x80a   : > { %v6733_v16 = vpop.f32.mrb[54].mxu1 }
 0x80b   : > { %v2278_v63 = vpack.c.bf16 %v6733_v16, %v6732_v53  ;;  %v2231_v37 = vpop.f32.mrb[55].mxu1  ;;  %v9490_v16 = vld [vmem:[#allocation6 + $0x28] sm:$0xff] }
 0x80c   : > { %v2277_v31 = vpack.c.bf16 %v2231_v37, %v2228_v28 }
 0x80e   : > { %6750 = vmatprep.mubr.msk.bf16.mxu0 %vm1330_vm0, %v2277_v31  ;;  %v9495_v31 = vld [vmem:[#allocation6 + $0x58] sm:$0xff] }
 0x80f   : > { %6751 = vmatmul.mubr.msk.bf16.gmra.mrb[52].mxu0 %vm1330_vm0, %v2278_v63 }
 0x816   : > { %v6736_v0 = vpop.f32.mrb[56].mxu1 }
 0x817   : > { %v2244_v14 = vpop.f32.mrb[57].mxu1 }
 0x818   : > { %v6737_v46 = vpop.f32.mrb[58].mxu1 }
 0x819   : > { %v2280_v5 = vpack.c.bf16 %v6737_v46, %v6736_v0  ;;  %v2247_v26 = vpop.f32.mrb[59].mxu1  ;;  %v11045_v46 = vld [vmem:[#allocation53_spill] sm:$0xff] }
 0x81a   : > { %v2279_v57 = vpack.c.bf16 %v2247_v26, %v2244_v14  ;;  %v11044_v14 = vld [vmem:[#allocation55_spill] sm:$0xff]  ;;  %v9506_v26 = vld [vmem:[#allocation6 + $0x50] sm:$0xff] }
 0x81c   : > { %6754 = vmatprep.mubr.msk.bf16.mxu0 %vm1330_vm0, %v2279_v57 }
 0x81d   : > { %6755 = vmatmul.mubr.msk.bf16.gmra.mrb[56].mxu0 %vm1330_vm0, %v2280_v5  ;;  %v11046_v5 = vpack.c.bf16 %v11044_v14, %v11045_v46 }
 0x81e   : > { %v6740_v62 = vpop.f32.mrb[60].mxu1 }
 0x81f   : > { %v2260_v17 = vpop.f32.mrb[61].mxu1 }
 0x820   : > { %v6741_v45 = vpop.f32.mrb[62].mxu1 }
 0x821   : > { %v2282_v25 = vpack.c.bf16 %v6741_v45, %v6740_v62  ;;  %v2263_v34 = vpop.f32.mrb[63].mxu1  ;;  %v11048_v45 = vld [vmem:[#allocation57_spill] sm:$0xff] }
 0x822   : > { %v2281_v52 = vpack.c.bf16 %v2263_v34, %v2260_v17  ;;  %v11047_v17 = vld [vmem:[#allocation59_spill] sm:$0xff] }
 0x824   : > { %6758 = vmatprep.mubr.msk.bf16.mxu0 %vm1330_vm0, %v2281_v52  ;;  %v9515_v52 = vld [vmem:[#allocation6 + $0x48] sm:$0xff] }
 0x825   : > { %6759 = vmatmul.mubr.msk.bf16.gmra.mrb[60].mxu0 %vm1330_vm0, %v2282_v25  ;;  %v11049_v25 = vpack.c.bf16 %v11047_v17, %v11048_v45 }
 0x826   : > { %6766 = vmatprep.mubr.msk.bf16.mxu0 %vm1330_vm0, %v11038_v32  ;;  %v6800_v8 = vpop.f32.mrb[64].mxu1 }
 0x827   : > { %v2732_v44 = vmul.f32 0.17677669, %v6800_v8  ;;  %v2667_v29 = vpop.f32.mrb[65].mxu1 }
 0x828   : > { %v6801_v60 = vpop.f32.mrb[66].mxu1  ;;  %v2730_v15 = vmul.f32 0.17677669, %v2667_v29 }
 0x829   : > { %v9435_v18 = vadd.f32 %v9432_v36, %v2732_v44  ;;  %v2670_v56 = vpop.f32.mrb[67].mxu1  ;;  %v2733_v13 = vmul.f32 0.17677669, %v6801_v60 }
 0x82a   : > { %v2731_v51 = vmul.f32 0.17677669, %v2670_v56  ;;  %v9450_v6 = vadd.f32 %v9447_v41, %v2730_v15  ;;  %v9522_v56 = vld [vmem:[#allocation6 + $0x40] sm:$0xff] }
 0x82b   : > { %2766 = vmax.xlane.f32.xlu0 %v9435_v18  ;;  %v9461_v35 = vadd.f32 %v9458_v22, %v2733_v13 }
 0x82c   : > { %v9441_v55 = vadd.f32 %v9438_v47, %v2731_v51 }
 0x82d   : > { %6767 = vmatmul.mubr.msk.bf16.vlgmr.msra.gmra.mrb[48].mxu0 %vm1330_vm0, %v11039_v33  ;;  %v9527_v33 = vld [vmem:[#allocation6 + $0x60] sm:$0xff] }
 0x82e   : > { %6815 = vmatpush3.bf16.msra.mxu0 %v2915_v10  ;;  %6770 = vmatprep.mubr.msk.bf16.mxu0 %vm1330_vm0, %v11040_v12  ;;  %v6804_v4 = vpop.f32.mrb[68].mxu1  ;;  %v11050_v12 = vld [vmem:[#allocation58_spill] sm:$0xff] }
 0x82f   : > { %2764 = vmax.xlane.f32.xlu1 %v9441_v55  ;;  %6816 = vmatprep.subr.bf16.mxu0 %v2917_v42  ;;  %v2683_v20 = vpop.f32.mrb[69].mxu1  ;;  %v2736_v38 = vmul.f32 0.17677669, %v6804_v4  ;;  %v11051_v4 = vld [vmem:[#allocation56_spill] sm:$0xff] }
 0x830   : > { %2762 = vmax.xlane.f32.xlu0 %v9450_v6  ;;  %v2734_v58 = vmul.f32 0.17677669, %v2683_v20  ;;  %v6805_v1 = vpop.f32.mrb[70].mxu1  ;;  %v11052_v20 = vpack.c.bf16 %v11050_v12, %v11051_v4 }
 0x831   : > { %v2686_v11 = vpop.f32.mrb[71].mxu1  ;;  %v2737_v7 = vmul.f32 0.17677669, %v6805_v1  ;;  %v9477_v19 = vadd.f32 %v9474_v9, %v2736_v38 }
 0x832   : > { %v9466_v3 = vadd.f32 %v9463_v39, %v2734_v58  ;;  %6817 = vmatpush3.bf16.msra.mxu0 %v2917_v42  ;;  %v2735_v30 = vmul.f32 0.17677669, %v2686_v11  ;;  %v9538_v58 = vld [vmem:[#allocation6 + $0x70] sm:$0xff] }
 0x833   : > { %6818 = vmatprep.subr.bf16.mxu0 %v2919_v59  ;;  %v9482_v54 = vadd.f32 %v9479_v21, %v2737_v7  ;;  %v9550_v7 = vld [vmem:[#allocation6 + $0x68] sm:$0xff] }
 0x834   : > { %2768 = vmax.xlane.f32.xlu0 %v9461_v35  ;;  %2770 = vmax.xlane.f32.xlu1 %v9466_v3  ;;  %v9493_v63 = vadd.f32 %v9490_v16, %v2735_v30  ;;  %11054 = vst [vmem:[#allocation46_spill] sm:$0xff] %v9550_v7  ;;  %v11055_v30 = vld [vmem:[#allocation40_spill] sm:$0xff] }
 0x835   : > { %6771 = vmatmul.mubr.msk.bf16.gmra.mrb[52].mxu0 %vm1330_vm0, %v11041_v48 }
 0x836   : > { %6819 = vmatpush3.bf16.msra.mxu0 %v2919_v59  ;;  %6774 = vmatprep.mubr.msk.bf16.mxu0 %vm1330_vm0, %v11043_v50  ;;  %v6808_v49 = vpop.f32.mrb[72].mxu1  ;;  %v9543_v59 = vld [vmem:[#allocation6 + $0x78] sm:$0xff]  ;;  %v11057_v50 = vld [vmem:[#allocation35_spill] sm:$0xff] }
 0x837   : > { %v2699_v43 = vpop.f32.mrb[73].mxu1  ;;  %v2740_v37 = vmul.f32 0.17677669, %v6808_v49  ;;  %11053 = vst [vmem:[#allocation44_spill] sm:$0xff] %v9543_v59 }
 0x838   : > { %2774 = vmax.xlane.f32.xlu0 %v9477_v19  ;;  %2776 = vmax.xlane.f32.xlu1 %v9482_v54  ;;  %v6809_v10 = vpop.f32.mrb[74].mxu1  ;;  %v2738_v62 = vmul.f32 0.17677669, %v2699_v43 }
 0x839   : > { %v2741_v53 = vmul.f32 0.17677669, %v6809_v10  ;;  %v2702_v28 = vpop.f32.mrb[75].mxu1  ;;  %v9509_v57 = vadd.f32 %v9506_v26, %v2740_v37 }
 0x83a   : > { %v2739_v0 = vmul.f32 0.17677669, %v2702_v28  ;;  %v9525_v15 = vadd.f32 %v9522_v56, %v2738_v62 }
 0x83b   : > { %v9498_v23 = vadd.f32 %v9495_v31, %v2741_v53 }
 0x83c   : > { %2772 = vmax.xlane.f32.xlu0 %v9493_v63  ;;  %v9518_v32 = vadd.f32 %v9515_v52, %v2739_v0 }
 0x83d   : > { %6775 = vmatmul.mubr.msk.bf16.gmra.mrb[56].mxu0 %vm1330_vm0, %v11046_v5  ;;  %2784 = vmax.xlane.f32.xlu1 %v9498_v23 }
 0x83e   : > { %6778 = vmatprep.mubr.msk.bf16.mxu0 %vm1330_vm0, %v11049_v25  ;;  %v6812_v34 = vpop.f32.mrb[76].mxu1 }
 0x83f   : > { %v2715_v8 = vpop.f32.mrb[77].mxu1  ;;  %v2744_v51 = vmul.f32 0.17677669, %v6812_v34 }
 0x840   : > { %2782 = vmax.xlane.f32.xlu0 %v9509_v57  ;;  %v2742_v44 = vmul.f32 0.17677669, %v2715_v8  ;;  %v6813_v29 = vpop.f32.mrb[78].mxu1 }
 0x841   : > { %2780 = vmax.xlane.f32.xlu1 %v9518_v32  ;;  %v2718_v60 = vpop.f32.mrb[79].mxu1  ;;  %v2745_v13 = vmul.f32 0.17677669, %v6813_v29  ;;  %v9541_v1 = vadd.f32 %v9538_v58, %v2744_v51 }
 0x842   : > { %v9530_v42 = vadd.f32 %v9527_v33, %v2742_v44  ;;  %v2743_v11 = vmul.f32 0.17677669, %v2718_v60 }
 0x843   : > { %v9546_v38 = vadd.f32 %v9543_v59, %v2745_v13 }
 0x844   : > { %2778 = vmax.xlane.f32.xlu0 %v9525_v15  ;;  %v9553_v48 = vadd.f32 %v9550_v7, %v2743_v11 }
 0x845   : > { %6779 = vmatmul.mubr.msk.bf16.gmra.mrb[60].mxu0 %vm1330_vm0, %v11052_v20  ;;  %2786 = vmax.xlane.f32.xlu1 %v9530_v42 }
 0x848   : > { %2790 = vmax.xlane.f32.xlu0 %v9541_v1 }
 0x849   : > { %2792 = vmax.xlane.f32.xlu1 %v9546_v38 }
 0x84c   : > { %2788 = vmax.xlane.f32.xlu0 %v9553_v48 }
 0x85a   : > { %2922 = vrot.lane.b32.xlu1 %v11055_v30, %s8109_s23 }
 0x85e   : > { %2924 = vrot.lane.b32.xlu1 %v11056_v2, %s8109_s23 }
 0x862   : > { %2920 = vrot.lane.b32.xlu0 %v11057_v50, %s8109_s23 }
 0x866   : > { %v9562_v49 = vpop.f32.mrb[80].mxu1 }
 0x867   : > { %v9564_v43 = vpop.f32.mrb[81].mxu1 }
 0x868   : > { %v9566_v10 = vpop.f32.mrb[82].mxu1 }
 0x869   : > { %v9568_v53 = vpop.f32.mrb[83].mxu1 }
 0x86e   : > { %v9570_v28 = vpop.f32.mrb[84].mxu1 }
 0x86f   : > { %v9572_v37 = vpop.f32.mrb[85].mxu1 }
 0x870   : > { %v9574_v0 = vpop.f32.mrb[86].mxu1 }
 0x871   : > { %v9576_v14 = vpop.f32.mrb[87].mxu1 }
 0x876   : > { %v9578_v46 = vpop.f32.mrb[88].mxu1 }
 0x877   : > { %v9580_v5 = vpop.f32.mrb[89].mxu1 }
 0x878   : > { %v9582_v62 = vpop.f32.mrb[90].mxu1 }
 0x879   : > { %v9584_v17 = vpop.f32.mrb[91].mxu1 }
 0x87e   : > { %v9586_v45 = vpop.f32.mrb[92].mxu1 }
 0x87f   : > { %v9588_v25 = vpop.f32.mrb[93].mxu1 }
 0x880   : > { %v9590_v34 = vpop.f32.mrb[94].mxu1 }
 0x881   : > { %11058 = vst [vmem:[#allocation45_spill] sm:$0xff] %v9590_v34  ;;  %v9592_v8 = vpop.f32.mrb[95].mxu1 }
 0x8b8   : > { %v2767_v44 = vpop.xlane.xlu0 %2766 }
 0x8b9   : > { %v2796_v29 = vsub.f32 %v9435_v18, %v2767_v44 }
 0x8bb   : > { %v2814_v60 = vmul.f32 1.442695, %v2796_v29 }
 0x8bc   : > { %v2765_v51 = vpop.xlane.xlu1 %2764 }
 0x8bd   : > { %7486 = vpow2.f32 %v2814_v60  ;;  %v2763_v13 = vpop.xlane.xlu0 %2762  ;;  %v2795_v20 = vsub.f32 %v9441_v55, %v2765_v51 }
 0x8be   : > { %v2794_v12 = vsub.f32 %v9450_v6, %v2763_v13 }
 0x8bf   : > { %v2812_v59 = vmul.f32 1.442695, %v2795_v20 }
 0x8c0   : > { %v2810_v4 = vmul.f32 1.442695, %v2794_v12 }
 0x8c1   : > { %v2769_v11 = vpop.xlane.xlu0 %2768  ;;  %v2771_v61 = vpop.xlane.xlu1 %2770 }
 0x8c2   : > { %7488 = vpow2.f32 %v2810_v4  ;;  %v2797_v2 = vsub.f32 %v9461_v35, %v2769_v11  ;;  %v2798_v7 = vsub.f32 %v9466_v3, %v2771_v61 }
 0x8c4   : > { %v2816_v40 = vmul.f32 1.442695, %v2797_v2  ;;  %v2818_v55 = vmul.f32 1.442695, %v2798_v7 }
 0x8c5   : > { %v2775_v34 = vpop.xlane.xlu0 %2774  ;;  %v2777_v18 = vpop.xlane.xlu1 %2776 }
 0x8c6   : > { %7490 = vpow2.f32 %v2816_v40  ;;  %v2800_v44 = vsub.f32 %v9477_v19, %v2775_v34  ;;  %v2801_v35 = vsub.f32 %v9482_v54, %v2777_v18 }
 0x8c7   : > { %v9600_v29 = vpop.eup %7486  ;;  %7492 = vpow2.f32 %v2812_v59 }
 0x8c8   : > { %v2822_v6 = vmul.f32 1.442695, %v2800_v44  ;;  %2846 = vadd.xlane.f32.xlu1 %v9600_v29  ;;  %v2824_v19 = vmul.f32 1.442695, %v2801_v35 }
 0x8c9   : > { %v2773_v60 = vpop.xlane.xlu0 %2772 }
 0x8ca   : > { %7494 = vpow2.f32 %v2822_v6  ;;  %v2799_v2 = vsub.f32 %v9493_v63, %v2773_v60  ;;  %v2785_v51 = vpop.xlane.xlu1 %2784 }
 0x8cb   : > { %7496 = vpow2.f32 %v2818_v55  ;;  %v2805_v13 = vsub.f32 %v9498_v23, %v2785_v51 }
 0x8cc   : > { %v9605_v61 = vpop.eup %7488  ;;  %v2820_v3 = vmul.f32 1.442695, %v2799_v2 }
 0x8cd   : > { %v2783_v40 = vpop.xlane.xlu0 %2782  ;;  %2842 = vadd.xlane.f32.xlu1 %v9605_v61  ;;  %v2832_v44 = vmul.f32 1.442695, %v2805_v13 }
 0x8ce   : > { %7498 = vpow2.f32 %v2820_v3  ;;  %v2804_v34 = vsub.f32 %v9509_v57, %v2783_v40  ;;  %v2781_v59 = vpop.xlane.xlu1 %2780 }
 0x8cf   : > { %7500 = vpow2.f32 %v2824_v19  ;;  %v2803_v57 = vsub.f32 %v9518_v32, %v2781_v59 }
 0x8d0   : > { %v9609_v7 = vpop.eup %7490  ;;  %v2830_v54 = vmul.f32 1.442695, %v2804_v34 }
 0x8d1   : > { %v2779_v12 = vpop.xlane.xlu0 %2778  ;;  %2848 = vadd.xlane.f32.xlu1 %v9609_v7  ;;  %v9614_v20 = vpop.eup %7492  ;;  %v2828_v51 = vmul.f32 1.442695, %v2803_v57 }
 0x8d2   : > { %v2802_v63 = vsub.f32 %v9525_v15, %v2779_v12  ;;  %v2787_v4 = vpop.xlane.xlu1 %2786  ;;  %7502 = vpow2.f32 %v2830_v54 }
 0x8d3   : > { %v2806_v23 = vsub.f32 %v9530_v42, %v2787_v4  ;;  %v11059_v4 = vld [vmem:[#allocation41_spill] sm:$0xff] }
 0x8d4   : > { %v9616_v11 = vpop.eup %7494  ;;  %v2826_v18 = vmul.f32 1.442695, %v2802_v63 }
 0x8d5   : > { %v2791_v6 = vpop.xlane.xlu0 %2790  ;;  %2854 = vadd.xlane.f32.xlu0 %v9616_v11  ;;  %2844 = vadd.xlane.f32.xlu1 %v9614_v20  ;;  %v9623_v55 = vpop.eup %7496  ;;  %v2834_v32 = vmul.f32 1.442695, %v2806_v23 }
 0x8d6   : > { %7504 = vpow2.f32 %v2826_v18  ;;  %v2808_v15 = vsub.f32 %v9541_v1, %v2791_v6  ;;  %v2793_v60 = vpop.xlane.xlu1 %2792  ;;  %v11060_v18 = vld [vmem:[#allocation43_spill] sm:$0xff] }
 0x8d7   : > { %7506 = vpow2.f32 %v2832_v44  ;;  %v2809_v57 = vsub.f32 %v9546_v38, %v2793_v60 }
 0x8d8   : > { %v9625_v35 = vpop.eup %7498  ;;  %v2838_v2 = vmul.f32 1.442695, %v2808_v15  ;;  %v3377_v15 = vmul.f32 0.17677669, %v9572_v37  ;;  %v3374_v37 = vmul.f32 0.17677669, %v9568_v53 }
 0x8d9   : > { %v2789_v3 = vpop.xlane.xlu0 %2788  ;;  %2852 = vadd.xlane.f32.xlu1 %v9625_v35  ;;  %2850 = vadd.xlane.f32.xlu0 %v9623_v55  ;;  %v9629_v40 = vpop.eup %7500  ;;  %v2840_v23 = vmul.f32 1.442695, %v2809_v57  ;;  %v3378_v53 = vmul.f32 0.17677669, %v9576_v14 }
 0x8da   : > { %7508 = vpow2.f32 %v2838_v2  ;;  %v2923_v42 = vpop.permute.xlu1 %2922  ;;  %v2807_v44 = vsub.f32 %v9553_v48, %v2789_v3  ;;  %v9658_v2 = vadd.f32 %v9463_v39, %v3377_v15  ;;  %v3373_v48 = vmul.f32 0.17677669, %v9564_v43 }
 0x8db   : > { %7510 = vpow2.f32 %v2828_v51  ;;  %v3387_v51 = vmul.f32 0.17677669, %v9586_v45  ;;  %v3375_v45 = vmul.f32 0.17677669, %v9562_v49  ;;  %v9680_v43 = vadd.f32 %v9438_v47, %v3374_v37  ;;  %v11064_v37 = vld [vmem:[#allocation37_spill] sm:$0xff] }
 0x8dc   : > { %7512 = vpow2.f32 %v2834_v32  ;;  %v9632_v19 = vpop.eup %7502  ;;  %v2836_v6 = vmul.f32 1.442695, %v2807_v44  ;;  %v9674_v39 = vadd.f32 %v9447_v41, %v3373_v48  ;;  %v3376_v3 = vmul.f32 0.17677669, %v9566_v10 }
 0x8dd   : > { %v2921_v1 = vpop.permute.xlu0 %2920  ;;  %2856 = vadd.xlane.f32.xlu0 %v9629_v40  ;;  %v9667_v38 = vadd.f32 %v9538_v58, %v3387_v51  ;;  %v9684_v58 = vadd.f32 %v9432_v36, %v3375_v45  ;;  %v3379_v47 = vmul.f32 0.17677669, %v9570_v28  ;;  %v9697_v49 = vadd.f32 %v9490_v16, %v3378_v53 }
 0x8de   : > { %6820 = vmatprep.subr.bf16.mxu0 %v2921_v1  ;;  %v2925_v13 = vpop.permute.xlu1 %2924  ;;  %7514 = vpow2.f32 %v2836_v6  ;;  %v9689_v41 = vadd.f32 %v9458_v22, %v3376_v3  ;;  %v3380_v22 = vmul.f32 0.17677669, %v9574_v0  ;;  %v3381_v16 = vmul.f32 0.17677669, %v9580_v5 }
 0x8df   : > { %6821 = vmatpush3.bf16.msra.mxu0 %v2921_v1  ;;  %7516 = vpow2.f32 %v2840_v23  ;;  %v9703_v36 = vadd.f32 %v9474_v9, %v3379_v47  ;;  %v3382_v9 = vmul.f32 0.17677669, %v9584_v17  ;;  %v3383_v10 = vmul.f32 0.17677669, %v9578_v46  ;;  %v11062_v46 = vld [vmem:[#allocation46_spill] sm:$0xff] }
 0x8e0   : > { %v9634_v34 = vpop.eup %7504  ;;  %6822 = vmatprep.subr.bf16.mxu0 %v2923_v42  ;;  %v3384_v28 = vmul.f32 0.17677669, %v9582_v62 }
 0x8e1   : > { %2858 = vadd.xlane.f32.xlu1 %v9634_v34  ;;  %2862 = vadd.xlane.f32.xlu0 %v9632_v19  ;;  %v9638_v59 = vpop.eup %7506 }
 0x8e3   : > { %6823 = vmatpush3.bf16.msra.mxu0 %v2923_v42 }
 0x8e4   : > { %v9640_v54 = vpop.eup %7508  ;;  %6824 = vmatprep.subr.bf16.mxu0 %v2925_v13 }
 0x8e5   : > { %2870 = vadd.xlane.f32.xlu1 %v9640_v54  ;;  %2864 = vadd.xlane.f32.xlu0 %v9638_v59  ;;  %v9644_v12 = vpop.eup %7510 }
 0x8e6   : > { %v9646_v63 = vpop.eup %7512 }
 0x8e7   : > { %6825 = vmatpush3.bf16.msra.mxu0 %v2925_v13 }
 0x8e8   : > { %v9661_v32 = vpop.eup %7514 }
 0x8e9   : > { %2860 = vadd.xlane.f32.xlu0 %v9644_v12  ;;  %2866 = vadd.xlane.f32.xlu1 %v9646_v63  ;;  %v9669_v60 = vpop.eup %7516 }
 0x8fa   : > { %2928 = vrot.lane.b32.xlu1 %v11059_v4, %s8109_s23 }
 0x8ff   : > { %2926 = vrot.lane.b32.xlu0 %v11060_v18, %s8109_s23 }
 0x91e   : > { %2868 = vadd.xlane.f32.xlu0 %v9661_v32  ;;  %3413 = vmax.xlane.f32.xlu1 %v9658_v2 }
 0x922   : > { %3433 = vmax.xlane.f32.xlu1 %v9667_v38  ;;  %2872 = vadd.xlane.f32.xlu0 %v9669_v60 }
 0x926   : > { %3405 = vmax.xlane.f32.xlu0 %v9674_v39 }
 0x92a   : > { %3407 = vmax.xlane.f32.xlu0 %v9680_v43 }
 0x92e   : > { %3409 = vmax.xlane.f32.xlu0 %v9684_v58 }
 0x932   : > { %3411 = vmax.xlane.f32.xlu0 %v9689_v41 }
 0x933   : > { %3557 = vrot.lane.b32.xlu1 %v8753_v27, %s8110_s11  ;;  %v9710_v27 = vadd.f32 %v9479_v21, %v3380_v22  ;;  %v9727_v21 = vadd.f32 %v9506_v26, %v3383_v10  ;;  %v11061_v26 = vld [vmem:[#allocation45_spill] sm:$0xff] }
 0x934   : > { %v3388_v14 = vmul.f32 0.17677669, %v11061_v26 }
 0x936   : > { %3415 = vmax.xlane.f32.xlu0 %v9697_v49 }
 0x937   : > { %3559 = vrot.lane.b32.xlu1 %v8749_v24, %s8110_s11  ;;  %v9717_v24 = vadd.f32 %v9522_v56, %v3381_v16  ;;  %v9732_v56 = vadd.f32 %v9495_v31, %v3384_v28  ;;  %v11063_v31 = vld [vmem:[#allocation44_spill] sm:$0xff] }
 0x938   : > { %v9747_v17 = vadd.f32 %v11063_v31, %v3388_v14  ;;  %v7275_v31 = vld [vmem:[%s8629_s7 + $0x28] sm:$0xff]  }
 0x93a   : > { %3417 = vmax.xlane.f32.xlu0 %v9703_v36 }
 0x93b   : > { %3563 = vrot.lane.b32.xlu1 %v11057_v50, %s8110_s11  ;;  %v9723_v50 = vadd.f32 %v9515_v52, %v3382_v9  ;;  %v3386_v52 = vmul.f32 0.17677669, %v9592_v8 }
 0x93d   : > { %v9743_v5 = vadd.f32 %v11062_v46, %v3386_v52  ;;  %v7274_v52 = vld [vmem:[%s8629_s7 + $0x20] sm:$0xff]  }
 0x93e   : > { %3419 = vmax.xlane.f32.xlu0 %v9710_v27 }
 0x93f   : > { %3565 = vrot.lane.b32.xlu1 %v11055_v30, %s8110_s11  ;;  %v3385_v30 = vmul.f32 0.17677669, %v9588_v25 }
 0x941   : > { %v9737_v0 = vadd.f32 %v9527_v33, %v3385_v30 }
 0x942   : > { %3421 = vmax.xlane.f32.xlu0 %v9717_v24 }
 0x946   : > { %3423 = vmax.xlane.f32.xlu0 %v9723_v50 }
 0x94a   : > { %3425 = vmax.xlane.f32.xlu0 %v9727_v21 }
 0x94e   : > { %3427 = vmax.xlane.f32.xlu0 %v9732_v56 }
 0x952   : > { %3429 = vmax.xlane.f32.xlu0 %v9737_v0 }
 0x955   : > { %v2847_v62 = vpop.xlane.xlu1 %2846 }
 0x956   : > { %3431 = vmax.xlane.f32.xlu0 %v9743_v5 }
 0x95a   : > { %3435 = vmax.xlane.f32.xlu0 %v9747_v17  ;;  %v2843_v25 = vpop.xlane.xlu1 %2842 }
 0x95b   : > { %7518 = vrcp.f32 %v2843_v25 }
 0x95e   : > { %v2849_v33 = vpop.xlane.xlu1 %2848 }
 0x962   : > { %v2855_v42 = vpop.xlane.xlu0 %2854  ;;  %v2845_v8 = vpop.xlane.xlu1 %2844 }
 0x963   : > { %7520 = vrcp.f32 %v2845_v8 }
 0x964   : > { %7522 = vrcp.f32 %v2849_v33 }
 0x965   : > { %v7519_v57 = vpop.eup %7518 }
 0x966   : > { %v2851_v1 = vpop.xlane.xlu0 %2850  ;;  %v2853_v13 = vpop.xlane.xlu1 %2852  ;;  %v2890_v51 = vmul.f32 %v7519_v57, %v9605_v61 }
 0x967   : > { %7524 = vrcp.f32 %v2851_v1 }
 0x968   : > { %7526 = vrcp.f32 %v2853_v13 }
 0x969   : > { %7528 = vrcp.f32 %v2847_v62 }
 0x96a   : > { %v2857_v44 = vpop.xlane.xlu0 %2856 }
 0x96b   : > { %7530 = vrcp.f32 %v2857_v44 }
 0x96d   : > { %v7521_v6 = vpop.eup %7520 }
 0x96e   : > { %v2863_v23 = vpop.xlane.xlu0 %2862  ;;  %v2859_v15 = vpop.xlane.xlu1 %2858  ;;  %v2891_v48 = vmul.f32 %v7521_v6, %v9614_v20 }
 0x96f   : > { %v7523_v16 = vpop.eup %7522 }
 0x970   : > { %3561 = vrot.lane.b32.xlu0 %v11064_v37, %s8110_s11  ;;  %v2906_v45 = vpack.c.bf16 %v2891_v48, %v2890_v51  ;;  %v2893_v30 = vmul.f32 %v7523_v16, %v9609_v7 }
 0x971   : > { %v7525_v9 = vpop.eup %7524 }
 0x972   : > { %v2865_v3 = vpop.xlane.xlu0 %2864  ;;  %v2871_v53 = vpop.xlane.xlu1 %2870  ;;  %6830 = vmatprep.mubr.bf16.mxu0 %v2906_v45  ;;  %v2894_v26 = vmul.f32 %v7525_v9, %v9623_v55 }
 0x973   : > { %v7527_v20 = vpop.eup %7526 }
 0x974   : > { %v7529_v10 = vpop.eup %7528  ;;  %v2895_v14 = vmul.f32 %v7527_v20, %v9625_v35 }
 0x975   : > { %v2892_v46 = vmul.f32 %v7529_v10, %v9600_v29  ;;  %v7531_v25 = vpop.eup %7530 }
 0x976   : > { %v2861_v47 = vpop.xlane.xlu0 %2860  ;;  %v2867_v22 = vpop.xlane.xlu1 %2866  ;;  %v2908_v33 = vpack.c.bf16 %v2895_v14, %v2894_v26  ;;  %v2897_v55 = vmul.f32 %v7531_v25, %v9629_v40 }
 0x977   : > { %7532 = vrcp.f32 %v2861_v47  ;;  %v2907_v62 = vpack.c.bf16 %v2893_v30, %v2892_v46 }
 0x978   : > { %7534 = vrcp.f32 %v2855_v42 }
 0x979   : > { %7536 = vrcp.f32 %v2859_v15 }
 0x97a   : > { %v2927_v61 = vpop.permute.xlu0 %2926  ;;  %v2929_v28 = vpop.permute.xlu1 %2928  ;;  %7538 = vrcp.f32 %v2865_v3 }
 0x97b   : > { %6826 = vmatprep.subr.bf16.mxu0 %v2927_v61  ;;  %7540 = vrcp.f32 %v2863_v23 }
 0x97c   : > { %6827 = vmatpush3.bf16.msra.mxu0 %v2927_v61  ;;  %7542 = vrcp.f32 %v2867_v22 }
 0x97d   : > { %6828 = vmatprep.subr.bf16.mxu0 %v2929_v28 }
 0x980   : > { %6829 = vmatpush3.bf16.msra.mxu0 %v2929_v28 }
 0x981   : > { %6846 = vmatprep.subr.bf16.mxu0 %v7274_v52  ;;  %v7533_v42 = vpop.eup %7532 }
 0x982   : > { %v7535_v8 = vpop.eup %7534  ;;  %v2899_v35 = vmul.f32 %v7533_v42, %v9644_v12 }
 0x983   : > { %6831 = vmatmul.mubr.bf16.vlgmr.msra.gmra.mrb[64].mxu0 %v2907_v62  ;;  %v7537_v7 = vpop.eup %7536  ;;  %v2896_v29 = vmul.f32 %v7535_v8, %v9616_v11 }
 0x984   : > { %6834 = vmatprep.mubr.bf16.mxu0 %v2908_v33  ;;  %6847 = vmatpush3.bf16.msra.mxu0 %v7274_v52  ;;  %v2898_v1 = vmul.f32 %v7537_v7, %v9634_v34  ;;  %v7539_v44 = vpop.eup %7538 }
 0x985   : > { %6848 = vmatprep.subr.bf16.mxu0 %v7275_v31  ;;  %v2909_v13 = vpack.c.bf16 %v2897_v55, %v2896_v29  ;;  %v7541_v6 = vpop.eup %7540  ;;  %v2901_v23 = vmul.f32 %v7539_v44, %v9638_v59  ;;  %v11065_v44 = vld [vmem:[#allocation38_spill] sm:$0xff] }
 0x986   : > { %v2910_v57 = vpack.c.bf16 %v2899_v35, %v2898_v1  ;;  %v2900_v15 = vmul.f32 %v7541_v6, %v9632_v19  ;;  %v7543_v45 = vpop.eup %7542 }
 0x987   : > { %v2902_v19 = vmul.f32 %v7543_v45, %v9646_v63 }
 0x988   : > { %6849 = vmatpush3.bf16.msra.mxu0 %v7275_v31  ;;  %v2911_v51 = vpack.c.bf16 %v2901_v23, %v2900_v15 }
 0x98b   : > { %6835 = vmatmul.mubr.bf16.gmra.mrb[68].mxu0 %v2909_v13 }
 0x98c   : > { %6838 = vmatprep.mubr.bf16.mxu0 %v2910_v57 }
 0x993   : > { %6839 = vmatmul.mubr.bf16.gmra.mrb[72].mxu0 %v2911_v51 }
 0x9ab   : > { %v2869_v40 = vpop.xlane.xlu0 %2868  ;;  %v3414_v12 = vpop.xlane.xlu1 %3413 }
 0x9ac   : > { %7544 = vrcp.f32 %v2869_v40 }
 0x9ad   : > { %7546 = vrcp.f32 %v2871_v53 }
 0x9af   : > { %v2873_v11 = vpop.xlane.xlu0 %2872  ;;  %v9766_v34 = vpop.xlane.xlu1 %3433 }
 0x9b0   : > { %7548 = vrcp.f32 %v2873_v11 }
 0x9b3   : > { %v3406_v48 = vpop.xlane.xlu0 %3405  ;;  %v9768_v37 = vpop.permute.xlu1 %3557 }
 0x9b4   : > { %6898 = vmatprep.subr.bf16.mxu0 %v9768_v37  ;;  %v3437_v61 = vsub.f32 %v9674_v39, %v3406_v48  ;;  %v3441_v39 = vsub.f32 %v9658_v2, %v3414_v12 }
 0x9b6   : > { %v7545_v59 = vpop.eup %7544  ;;  %v3453_v14 = vmul.f32 1.442695, %v3437_v61  ;;  %v3461_v42 = vmul.f32 1.442695, %v3441_v39 }
 0x9b7   : > { %v3408_v3 = vpop.xlane.xlu0 %3407  ;;  %v2903_v47 = vmul.f32 %v7545_v59, %v9661_v32  ;;  %v7547_v22 = vpop.eup %7546 }
 0x9b8   : > { %v2904_v10 = vmul.f32 %v7547_v22, %v9640_v54  ;;  %v3438_v32 = vsub.f32 %v9680_v43, %v3408_v3  ;;  %v3560_v61 = vpop.permute.xlu1 %3559 }
 0x9b9   : > { %v2912_v16 = vpack.c.bf16 %v2903_v47, %v2902_v19 }
 0x9ba   : > { %v7549_v9 = vpop.eup %7548 }
 0x9bb   : > { %v3410_v53 = vpop.xlane.xlu0 %3409  ;;  %6842 = vmatprep.mubr.bf16.mxu0 %v2912_v16  ;;  %v2905_v28 = vmul.f32 %v7549_v9, %v9669_v60 }
 0x9bc   : > { %v3439_v20 = vsub.f32 %v9684_v58, %v3410_v53  ;;  %v3455_v58 = vmul.f32 1.442695, %v3438_v32 }
 0x9bd   : > { %v2913_v52 = vpack.c.bf16 %v2905_v28, %v2904_v10 }
 0x9be   : > { %v3457_v30 = vmul.f32 1.442695, %v3439_v20 }
 0x9bf   : > { %v3412_v26 = vpop.xlane.xlu0 %3411  ;;  %6843 = vmatmul.mubr.bf16.gmra.mrb[76].mxu0 %v2913_v52 }
 0x9c0   : > { %7550 = vpow2.f32 %v3457_v30  ;;  %v3440_v63 = vsub.f32 %v9689_v41, %v3412_v26  ;;  %v3564_v26 = vpop.permute.xlu1 %3563 }
 0x9c1   : > { %7552 = vpow2.f32 %v3453_v14 }
 0x9c2   : > { %v3459_v62 = vmul.f32 1.442695, %v3440_v63 }
 0x9c3   : > { %v3416_v46 = vpop.xlane.xlu0 %3415 }
 0x9c4   : > { %7554 = vpow2.f32 %v3459_v62  ;;  %v3442_v54 = vsub.f32 %v9697_v49, %v3416_v46  ;;  %v3566_v39 = vpop.permute.xlu1 %3565 }
 0x9c5   : > { %7556 = vpow2.f32 %v3455_v58 }
 0x9c6   : > { %v3463_v41 = vmul.f32 1.442695, %v3442_v54 }
 0x9c7   : > { %v3418_v31 = vpop.xlane.xlu0 %3417 }
 0x9c8   : > { %v3443_v60 = vsub.f32 %v9703_v36, %v3418_v31 }
 0x9ca   : > { %v9782_v25 = vpop.eup %7550  ;;  %v3465_v33 = vmul.f32 1.442695, %v3443_v60 }
 0x9cb   : > { %3489 = vadd.xlane.f32.xlu0 %v9782_v25  ;;  %v3420_v43 = vpop.xlane.xlu0 %3419  ;;  %v9786_v2 = vpop.eup %7552 }
 0x9cc   : > { %7558 = vpow2.f32 %v3465_v33  ;;  %v3444_v8 = vsub.f32 %v9710_v27, %v3420_v43 }
 0x9cd   : > { %7560 = vpow2.f32 %v3461_v42 }
 0x9ce   : > { %7562 = vpow2.f32 %v3463_v41  ;;  %v3467_v49 = vmul.f32 1.442695, %v3444_v8  ;;  %v9789_v36 = vpop.eup %7554 }
 0x9cf   : > { %3485 = vadd.xlane.f32.xlu0 %v9786_v2  ;;  %v9792_v7 = vpop.eup %7556  ;;  %v3422_v1 = vpop.xlane.xlu0 %3421 }
 0x9d0   : > { %7564 = vpow2.f32 %v3467_v49  ;;  %v3445_v23 = vsub.f32 %v9717_v24, %v3422_v1  ;;  %v3451_v24 = vsub.f32 %v9667_v38, %v9766_v34 }
 0x9d2   : > { %v3469_v51 = vmul.f32 1.442695, %v3445_v23 }
 0x9d3   : > { %3491 = vadd.xlane.f32.xlu0 %v9789_v36  ;;  %v3424_v13 = vpop.xlane.xlu0 %3423 }
 0x9d4   : > { %v3446_v12 = vsub.f32 %v9723_v50, %v3424_v13  ;;  %7566 = vpow2.f32 %v3469_v51 }
 0x9d6   : > { %v9794_v55 = vpop.eup %7558  ;;  %v3471_v45 = vmul.f32 1.442695, %v3446_v12  ;;  %v7276_v12 = vld [vmem:[%s8629_s7 + $0x30] sm:$0xff]  }
 0x9d7   : > { %3487 = vadd.xlane.f32.xlu0 %v9792_v7  ;;  %3497 = vadd.xlane.f32.xlu1 %v9794_v55  ;;  %v9798_v27 = vpop.eup %7560  ;;  %v3426_v57 = vpop.xlane.xlu0 %3425 }
 0x9d8   : > { %v9800_v35 = vpop.eup %7562  ;;  %v3447_v40 = vsub.f32 %v9727_v21, %v3426_v57 }
 0x9da   : > { %v9804_v29 = vpop.eup %7564  ;;  %v3473_v48 = vmul.f32 1.442695, %v3447_v40 }
 0x9db   : > { %3495 = vadd.xlane.f32.xlu0 %v9800_v35  ;;  %3493 = vadd.xlane.f32.xlu1 %v9798_v27  ;;  %v3428_v6 = vpop.xlane.xlu0 %3427 }
 0x9dc   : > { %7568 = vpow2.f32 %v3473_v48 }
 0x9dd   : > { %7570 = vpow2.f32 %v3471_v45 }
 0x9de   : > { %v9822_v22 = vpop.eup %7566 }
 0x9df   : > { %3499 = vadd.xlane.f32.xlu1 %v9804_v29  ;;  %v3430_v15 = vpop.xlane.xlu0 %3429 }
 0x9e0   : > { %v3449_v59 = vsub.f32 %v9737_v0, %v3430_v15 }
 0x9e2   : > { %v3477_v21 = vmul.f32 1.442695, %v3449_v59 }
 0x9e3   : > { %v3432_v11 = vpop.xlane.xlu0 %3431 }
 0x9e6   : > { %v9825_v16 = vpop.eup %7568 }
 0x9e7   : > { %v3436_v19 = vpop.xlane.xlu0 %3435  ;;  %v9828_v38 = vpop.eup %7570 }
 0x9e8   : > { %v3452_v47 = vsub.f32 %v9747_v17, %v3436_v19 }
 0x9ea   : > { %v3483_v0 = vmul.f32 1.442695, %v3452_v47 }
 0x9eb   : > { %v3562_v20 = vpop.permute.xlu0 %3561 }
 0x9f0   : > { %3569 = vrot.lane.b32.xlu1 %v11060_v18, %s8110_s11  ;;  %v3448_v18 = vsub.f32 %v9732_v56, %v3428_v6  ;;  %v3481_v56 = vmul.f32 1.442695, %v3451_v24 }
 0x9f1   : > { %3567 = vrot.lane.b32.xlu0 %v11065_v44, %s8110_s11 }
 0x9f2   : > { %v3475_v3 = vmul.f32 1.442695, %v3448_v18 }
 0x9f4   : > { %3571 = vrot.lane.b32.xlu1 %v11059_v4, %s8110_s11  ;;  %v3450_v4 = vsub.f32 %v9743_v5, %v3432_v11  ;;  %7572 = vpow2.f32 %v3475_v3 }
 0x9f5   : > { %7574 = vpow2.f32 %v3477_v21 }
 0x9f6   : > { %v3479_v50 = vmul.f32 1.442695, %v3450_v4 }
 0x9f8   : > { %7576 = vpow2.f32 %v3479_v50 }
 0x9f9   : > { %7578 = vpow2.f32 %v3481_v56 }
 0x9fa   : > { %7580 = vpow2.f32 %v3483_v0 }
 0x9fe   : > { %v9830_v5 = vpop.eup %7572 }
 0x9ff   : > { %v9834_v17 = vpop.eup %7574 }
 0xa02   : > { %v9836_v34 = vpop.eup %7576 }
 0xa03   : > { %v9840_v9 = vpop.eup %7578 }
 0xa04   : > { %v9842_v53 = vpop.eup %7580 }
 0xa10   : > { %3501 = vadd.xlane.f32.xlu0 %v9822_v22 }
 0xa14   : > { %3505 = vadd.xlane.f32.xlu0 %v9825_v16 }
 0xa18   : > { %3507 = vadd.xlane.f32.xlu0 %v9830_v5  ;;  %3503 = vadd.xlane.f32.xlu1 %v9828_v38 }
 0xa1c   : > { %3511 = vadd.xlane.f32.xlu0 %v9836_v34  ;;  %3509 = vadd.xlane.f32.xlu1 %v9834_v17 }
 0xa20   : > { %3515 = vadd.xlane.f32.xlu0 %v9842_v53  ;;  %3513 = vadd.xlane.f32.xlu1 %v9840_v9 }
 0xa56   : > { %v6832_v10 = vpop.f32.mrb[64].mxu0 }
 0xa57   : > { %v2972_v28 = vpop.f32.mrb[65].mxu0 }
 0xa58   : > { %v3490_v30 = vpop.xlane.xlu0 %3489  ;;  %v6833_v52 = vpop.f32.mrb[66].mxu0 }
 0xa59   : > { %v3036_v14 = vpack.c.bf16 %v6833_v52, %v6832_v10  ;;  %v2975_v63 = vpop.f32.mrb[67].mxu0  ;;  %v7277_v52 = vld [vmem:[%s8629_s7 + $0x38] sm:$0xff]   ;;  %s11067_s7 = sld [smem:[#allocation64_spill]] }
 0xa5a   : > { %v3035_v32 = vpack.c.bf16 %v2975_v63, %v2972_v28 }
 0xa5c   : > { %v3486_v46 = vpop.xlane.xlu0 %3485  ;;  %6850 = vmatprep.mubr.msk.bf16.mxu0 %vm1330_vm0, %v3035_v32 }
 0xa5d   : > { %6851 = vmatmul.mubr.msk.bf16.vlgmr.msra.gmra.mrb[48].mxu0 %vm1330_vm0, %v3036_v14 }
 0xa5e   : > { %6899 = vmatpush3.bf16.msra.mxu0 %v9768_v37  ;;  %v6836_v62 = vpop.f32.mrb[68].mxu0 }
 0xa5f   : > { %6900 = vmatprep.subr.bf16.mxu0 %v3560_v61  ;;  %v2988_v58 = vpop.f32.mrb[69].mxu0  ;;  %s11068_s30 = scalar_lea.vmem %s11067_s7, %s8641_s6 }
 0xa60   : > { %v3492_v31 = vpop.xlane.xlu0 %3491  ;;  %v6837_v54 = vpop.f32.mrb[70].mxu0 }
 0xa61   : > { %v3038_v60 = vpack.c.bf16 %v6837_v54, %v6836_v62  ;;  %v2991_v33 = vpop.f32.mrb[71].mxu0 }
 0xa62   : > { %v3037_v42 = vpack.c.bf16 %v2991_v33, %v2988_v58  ;;  %6901 = vmatpush3.bf16.msra.mxu0 %v3560_v61 }
 0xa63   : > { %6902 = vmatprep.subr.bf16.mxu0 %v3562_v20 }
 0xa64   : > { %v3488_v43 = vpop.xlane.xlu0 %3487  ;;  %6854 = vmatprep.mubr.msk.bf16.mxu0 %vm1330_vm0, %v3037_v42  ;;  %v3498_v41 = vpop.xlane.xlu1 %3497 }
 0xa65   : > { %6855 = vmatmul.mubr.msk.bf16.gmra.mrb[52].mxu0 %vm1330_vm0, %v3038_v60  ;;  %7582 = vrcp.f32 %v3488_v43 }
 0xa66   : > { %6903 = vmatpush3.bf16.msra.mxu0 %v3562_v20  ;;  %v6840_v8 = vpop.f32.mrb[72].mxu0  ;;  %7584 = vrcp.f32 %v3486_v46 }
 0xa67   : > { %6904 = vmatprep.subr.bf16.mxu0 %v3564_v26  ;;  %v3004_v37 = vpop.f32.mrb[73].mxu0  ;;  %7586 = vrcp.f32 %v3492_v31 }
 0xa68   : > { %v3496_v49 = vpop.xlane.xlu0 %3495  ;;  %v6841_v1 = vpop.f32.mrb[74].mxu0 }
 0xa69   : > { %v3040_v13 = vpack.c.bf16 %v6841_v1, %v6840_v8  ;;  %v3494_v44 = vpop.xlane.xlu1 %3493  ;;  %v3007_v57 = vpop.f32.mrb[75].mxu0  ;;  %7588 = vrcp.f32 %v3496_v49 }
 0xa6a   : > { %v3039_v6 = vpack.c.bf16 %v3007_v57, %v3004_v37  ;;  %6905 = vmatpush3.bf16.msra.mxu0 %v3564_v26  ;;  %7590 = vrcp.f32 %v3494_v44 }
 0xa6b   : > { %6906 = vmatprep.subr.bf16.mxu0 %v3566_v39  ;;  %7592 = vrcp.f32 %v3490_v30 }
 0xa6c   : > { %v3568_v23 = vpop.permute.xlu0 %3567  ;;  %6858 = vmatprep.mubr.msk.bf16.mxu0 %vm1330_vm0, %v3039_v6 }
 0xa6d   : > { %v3500_v15 = vpop.xlane.xlu1 %3499  ;;  %6859 = vmatmul.mubr.msk.bf16.gmra.mrb[56].mxu0 %vm1330_vm0, %v3040_v13 }
 0xa6e   : > { %6907 = vmatpush3.bf16.msra.mxu0 %v3566_v39  ;;  %7594 = vrcp.f32 %v3500_v15 }
 0xa6f   : > { %6908 = vmatprep.subr.bf16.mxu0 %v3568_v23  ;;  %v7583_v11 = vpop.eup %7582  ;;  %7596 = vrcp.f32 %v3498_v41 }
 0xa70   : > { %v7585_v18 = vpop.eup %7584  ;;  %v3534_v3 = vmul.f32 %v7583_v11, %v9792_v7 }
 0xa71   : > { %v3570_v51 = vpop.permute.xlu1 %3569  ;;  %v3533_v21 = vmul.f32 %v7585_v18, %v9786_v2  ;;  %v7587_v50 = vpop.eup %7586 }
 0xa72   : > { %6909 = vmatpush3.bf16.msra.mxu0 %v3568_v23  ;;  %v3536_v7 = vmul.f32 %v7587_v50, %v9789_v36 }
 0xa73   : > { %6910 = vmatprep.subr.bf16.mxu0 %v3570_v51  ;;  %v7589_v47 = vpop.eup %7588  ;;  %v3549_v56 = vpack.c.bf16 %v3534_v3, %v3533_v21 }
 0xa74   : > { %v7591_v0 = vpop.eup %7590  ;;  %v3538_v28 = vmul.f32 %v7589_v47, %v9800_v35 }
 0xa75   : > { %v3572_v40 = vpop.permute.xlu1 %3571  ;;  %v7593_v61 = vpop.eup %7592  ;;  %v3537_v10 = vmul.f32 %v7591_v0, %v9798_v27 }
 0xa76   : > { %6911 = vmatpush3.bf16.msra.mxu0 %v3570_v51  ;;  %v3535_v2 = vmul.f32 %v7593_v61, %v9782_v25 }
 0xa77   : > { %6912 = vmatprep.subr.bf16.mxu0 %v3572_v40  ;;  %v3551_v63 = vpack.c.bf16 %v3538_v28, %v3537_v10 }
 0xa78   : > { %v3550_v30 = vpack.c.bf16 %v3536_v7, %v3535_v2  ;;  %v7595_v26 = vpop.eup %7594  ;;  %v11066_v7 = vmov 0  }
 0xa79   : > { %v7597_v32 = vpop.eup %7596  ;;  %v3540_v46 = vmul.f32 %v7595_v26, %v9804_v29 }
 0xa7a   : > { %6913 = vmatpush3.bf16.msra.mxu0 %v3572_v40  ;;  %v3539_v35 = vmul.f32 %v7597_v32, %v9794_v55 }
 0xa7b   : > { %6930 = vmatprep.subr.bf16.mxu0 %v7276_v12 }
 0xa7c   : > { %v3552_v25 = vpack.c.bf16 %v3540_v46, %v3539_v35  ;;  %v7696_v35 = vld [vmem:[#allocation2 + $0x10] sm:$0xff] }
 0xa92   : > { %v6844_v48 = vpop.f32.mrb[76].mxu0 }
 0xa93   : > { %v3020_v45 = vpop.f32.mrb[77].mxu0 }
 0xa94   : > { %v6845_v59 = vpop.f32.mrb[78].mxu0 }
 0xa95   : > { %v3042_v4 = vpack.c.bf16 %v6845_v59, %v6844_v48  ;;  %v3023_v19 = vpop.f32.mrb[79].mxu0 }
 0xa96   : > { %v3041_v24 = vpack.c.bf16 %v3023_v19, %v3020_v45 }
 0xa98   : > { %6862 = vmatprep.mubr.msk.bf16.mxu0 %vm1330_vm0, %v3041_v24 }
 0xa99   : > { %6863 = vmatmul.mubr.msk.bf16.gmra.mrb[60].mxu0 %vm1330_vm0, %v3042_v4 }
 0xa9a   : > { %6914 = vmatprep.mubr.bf16.mxu0 %v3549_v56 }
 0xa9d   : > { %v3502_v20 = vpop.xlane.xlu0 %3501 }
 0xaa1   : > { %v3506_v14 = vpop.xlane.xlu0 %3505  ;;  %6915 = vmatmul.mubr.bf16.vlgmr.msra.gmra.mrb[80].mxu0 %v3550_v30 }
 0xaa2   : > { %6918 = vmatprep.mubr.bf16.mxu0 %v3551_v63  ;;  %6931 = vmatpush3.bf16.msra.mxu0 %v7276_v12  ;;  %7598 = vrcp.f32 %v3506_v14  ;;  %v7694_v14 = vld [vmem:[#allocation2] sm:$0xff] }
 0xaa3   : > { %6932 = vmatprep.subr.bf16.mxu0 %v7277_v52  ;;  %7600 = vrcp.f32 %v3502_v20  ;;  %v9887_v20 = vld [vmem:[%s11068_s30] ss:$0 sm:$0xff] }
 0xaa5   : > { %v3508_v36 = vpop.xlane.xlu0 %3507  ;;  %v3504_v27 = vpop.xlane.xlu1 %3503 }
 0xaa6   : > { %7602 = vrcp.f32 %v3508_v36  ;;  %6933 = vmatpush3.bf16.msra.mxu0 %v7277_v52  ;;  %v7695_v36 = vld [vmem:[#allocation2 + $0x8] sm:$0xff] }
 0xaa7   : > { %7604 = vrcp.f32 %v3504_v27 }
 0xaa9   : > { %v3512_v62 = vpop.xlane.xlu0 %3511  ;;  %v3510_v39 = vpop.xlane.xlu1 %3509  ;;  %6919 = vmatmul.mubr.bf16.gmra.mrb[84].mxu0 %v3552_v25 }
 0xaaa   : > { %7606 = vrcp.f32 %v3512_v62 }
 0xaab   : > { %7608 = vrcp.f32 %v3510_v39 }
 0xaac   : > { %v7599_v54 = vpop.eup %7598 }
 0xaad   : > { %v3516_v58 = vpop.xlane.xlu0 %3515  ;;  %v3514_v31 = vpop.xlane.xlu1 %3513  ;;  %v3543_v42 = vmul.f32 %v7599_v54, %v9825_v16 }
 0xaae   : > { %7610 = vrcp.f32 %v3516_v58  ;;  %v7601_v29 = vpop.eup %7600  ;;  %v7697_v58 = vld [vmem:[#allocation2 + $0x18] sm:$0xff] }
 0xaaf   : > { %7612 = vrcp.f32 %v3514_v31  ;;  %v3541_v43 = vmul.f32 %v7601_v29, %v9822_v22 }
 0xab0   : > { %v7603_v60 = vpop.eup %7602 }
 0xab1   : > { %v7605_v33 = vpop.eup %7604  ;;  %v3544_v55 = vmul.f32 %v7603_v60, %v9830_v5 }
 0xab2   : > { %v3542_v41 = vmul.f32 %v7605_v33, %v9828_v38 }
 0xab3   : > { %v3554_v8 = vpack.c.bf16 %v3544_v55, %v3543_v42  ;;  %v7698_v42 = vld [vmem:[#allocation2 + $0x20] sm:$0xff] }
 0xab4   : > { %v7607_v37 = vpop.eup %7606  ;;  %v3553_v49 = vpack.c.bf16 %v3542_v41, %v3541_v43 }
 0xab5   : > { %v7609_v1 = vpop.eup %7608  ;;  %v3546_v13 = vmul.f32 %v7607_v37, %v9836_v34 }
 0xab6   : > { %6922 = vmatprep.mubr.bf16.mxu0 %v3553_v49  ;;  %v3545_v44 = vmul.f32 %v7609_v1, %v9834_v17  ;;  %v7700_v49 = vld [vmem:[#allocation2 + $0x30] sm:$0xff] }
 0xab7   : > { %6923 = vmatmul.mubr.bf16.gmra.mrb[88].mxu0 %v3554_v8  ;;  %v7699_v8 = vld [vmem:[#allocation2 + $0x28] sm:$0xff] }
 0xab8   : > { %v7611_v57 = vpop.eup %7610  ;;  %v3555_v6 = vpack.c.bf16 %v3546_v13, %v3545_v44  ;;  %v7701_v13 = vld [vmem:[#allocation2 + $0x38] sm:$0xff] }
 0xab9   : > { %v7613_v23 = vpop.eup %7612  ;;  %v3548_v16 = vmul.f32 %v7611_v57, %v9842_v53 }
 0xaba   : > { %6926 = vmatprep.mubr.bf16.mxu0 %v3555_v6  ;;  %v3547_v22 = vmul.f32 %v7613_v23, %v9840_v9 }
 0xabc   : > { %v3556_v5 = vpack.c.bf16 %v3548_v16, %v3547_v22 }
 0xabf   : > { %6927 = vmatmul.mubr.bf16.gmra.mrb[92].mxu0 %v3556_v5 }
 0xb74   : > { %v6916_v38 = vpop.f32.mrb[80].mxu0 }
 0xb75   : > { %v3615_v15 = vpop.f32.mrb[81].mxu0 }
 0xb76   : > { %v6917_v51 = vpop.f32.mrb[82].mxu0 }
 0xb77   : > { %v3679_v40 = vpack.c.bf16 %v6917_v51, %v6916_v38  ;;  %v3618_v12 = vpop.f32.mrb[83].mxu0  ;;  %v7702_v38 = vld [vmem:[#allocation2 + $0x40] sm:$0xff] }
 0xb78   : > { %v3678_v34 = vpack.c.bf16 %v3618_v12, %v3615_v15  ;;  %v7703_v12 = vld [vmem:[#allocation2 + $0x48] sm:$0xff] }
 0xb7a   : > { %6934 = vmatprep.mubr.msk.bf16.mxu0 %vm1330_vm0, %v3678_v34 }
 0xb7b   : > { %6935 = vmatmul.mubr.msk.bf16.vlgmr.msra.gmra.mrb[48].mxu0 %vm1330_vm0, %v3679_v40 }
 0xb7c   : > { %v6920_v17 = vpop.f32.mrb[84].mxu0 }
 0xb7d   : > { %v3631_v11 = vpop.f32.mrb[85].mxu0 }
 0xb7e   : > { %v6921_v48 = vpop.f32.mrb[86].mxu0 }
 0xb7f   : > { %v3681_v18 = vpack.c.bf16 %v6921_v48, %v6920_v17  ;;  %v3634_v53 = vpop.f32.mrb[87].mxu0  ;;  %v7704_v17 = vld [vmem:[#allocation2 + $0x50] sm:$0xff] }
 0xb80   : > { %v3680_v45 = vpack.c.bf16 %v3634_v53, %v3631_v11  ;;  %v7705_v53 = vld [vmem:[#allocation2 + $0x58] sm:$0xff] }
 0xb82   : > { %6938 = vmatprep.mubr.msk.bf16.mxu0 %vm1330_vm0, %v3680_v45 }
 0xb83   : > { %6939 = vmatmul.mubr.msk.bf16.gmra.mrb[52].mxu0 %vm1330_vm0, %v3681_v18 }
 0xb8a   : > { %v6924_v9 = vpop.f32.mrb[88].mxu0 }
 0xb8b   : > { %v3647_v59 = vpop.f32.mrb[89].mxu0 }
 0xb8c   : > { %v6925_v3 = vpop.f32.mrb[90].mxu0 }
 0xb8d   : > { %v3683_v4 = vpack.c.bf16 %v6925_v3, %v6924_v9  ;;  %v3650_v19 = vpop.f32.mrb[91].mxu0 }
 0xb8e   : > { %v3682_v24 = vpack.c.bf16 %v3650_v19, %v3647_v59  ;;  %v7706_v19 = vld [vmem:[#allocation2 + $0x60] sm:$0xff] }
 0xb90   : > { %6942 = vmatprep.mubr.msk.bf16.mxu0 %vm1330_vm0, %v3682_v24 }
 0xb91   : > { %6943 = vmatmul.mubr.msk.bf16.gmra.mrb[56].mxu0 %vm1330_vm0, %v3683_v4 }
 0xb92   : > { %v6928_v21 = vpop.f32.mrb[92].mxu0 }
 0xb93   : > { %v3663_v50 = vpop.f32.mrb[93].mxu0 }
 0xb94   : > { %v6929_v47 = vpop.f32.mrb[94].mxu0 }
 0xb95   : > { %v3685_v56 = vpack.c.bf16 %v6929_v47, %v6928_v21  ;;  %v3666_v0 = vpop.f32.mrb[95].mxu0  ;;  %v7707_v47 = vld [vmem:[#allocation2 + $0x68] sm:$0xff] }
 0xb96   : > { %v3684_v61 = vpack.c.bf16 %v3666_v0, %v3663_v50  ;;  %v7708_v0 = vld [vmem:[#allocation2 + $0x70] sm:$0xff] }
 0xb98   : > { %6946 = vmatprep.mubr.msk.bf16.mxu0 %vm1330_vm0, %v3684_v61 }
 0xb99   : > { %6947 = vmatmul.mubr.msk.bf16.gmra.mrb[60].mxu0 %vm1330_vm0, %v3685_v56 }
 0xb9a   : > { %4468 = vmatprep.mubr.bf16.mxu0 %v11066_v7 }
 0xc4e   : > { %v6936_v10 = vpop.f32.mrb[48].mxu0 }
 0xc4f   : > { %v3760_v28 = vpop.f32.mrb[49].mxu0  ;;  %v3848_v26 = vadd.f32 %v6936_v10, %v9887_v20  ;;  %v7709_v10 = vld [vmem:[#allocation2 + $0x78] sm:$0xff] }
 0xc50   : > { %v3846_v2 = vadd.f32 %v9887_v20, %v3760_v28  ;;  %v6937_v30 = vpop.f32.mrb[50].mxu0 }
 0xc51   : > { %v3763_v52 = vpop.f32.mrb[51].mxu0  ;;  %v3849_v46 = vadd.f32 %v6937_v30, %v9887_v20  ;;  %v9898_v25 = vadd.f32 %v7696_v35, %v3848_v26  ;;  %v7281_v30 = vld [vmem:[%s8631_s0 + $0x8] ss:$16 sps:$4 sm:$0xff]   ;;  %v7286_v26 = vld [vmem:[%s8631_s0 + $0x24] ss:$16 sps:$4 sm:$0xff]  }
 0xc52   : > { %v9891_v63 = vadd.f32 %v7694_v14, %v3846_v2  ;;  %v3847_v32 = vadd.f32 %v9887_v20, %v3763_v52  ;;  %v7280_v2 = vld [vmem:[%s8631_s0 + $0x4] ss:$16 sps:$4 sm:$0xff]   ;;  %v7283_v52 = vld [vmem:[%s8631_s0 + $0xc] ss:$16 sps:$4 sm:$0xff]  }
 0xc53   : > { %v9901_v31 = vadd.f32 %v7697_v58, %v3849_v46  ;;  %4323 = vmatprep.subr.bf16.mxu1 %v7280_v2  ;;  %v7289_v14 = vld [vmem:[%s8631_s0 + $0x2c] ss:$16 sps:$4 sm:$0xff]   ;;  %4436 = vmatprep.subr.bf16.mxu0 %v7283_v52  ;;  %v7287_v46 = vld [vmem:[%s8631_s0 + $0x28] ss:$16 sps:$4 sm:$0xff]  }
 0xc54   : > { %v9895_v27 = vadd.f32 %v7695_v36, %v3847_v32  ;;  %3880 = vadd.xlane.f32.xlu1 %v9891_v63  ;;  %v7284_v32 = vld [vmem:[%s8631_s0 + $0x20] ss:$16 sps:$4 sm:$0xff]   ;;  %4437 = vmatpush1.bf16.msra.mxu0 %v7281_v30 }
 0xc55   : > { %4438 = vmatprep.subr.bf16.mxu0 %v7289_v14  ;;  %v7307_v14 = vld [vmem:[%s8631_s0 + $0x8c] ss:$16 sps:$4 sm:$0xff]  }
 0xc56   : > { %3882 = vadd.xlane.f32.xlu0 %v9895_v27  ;;  %v6940_v62 = vpop.f32.mrb[52].mxu0 }
 0xc57   : > { %v3776_v39 = vpop.f32.mrb[53].mxu0  ;;  %v3852_v33 = vadd.f32 %v6940_v62, %v9887_v20 }
 0xc58   : > { %v3850_v54 = vadd.f32 %v9887_v20, %v3776_v39  ;;  %3884 = vadd.xlane.f32.xlu1 %v9898_v25  ;;  %v6941_v29 = vpop.f32.mrb[54].mxu0  ;;  %4439 = vmatpush1.bf16.msra.mxu0 %v7287_v46  ;;  %v7302_v46 = vld [vmem:[%s8631_s0 + $0x80] ss:$16 sps:$4 sm:$0xff]  }
 0xc59   : > { %v3779_v60 = vpop.f32.mrb[55].mxu0  ;;  %v3853_v41 = vadd.f32 %v6941_v29, %v9887_v20  ;;  %v9914_v1 = vadd.f32 %v7700_v49, %v3852_v33 }
 0xc5a   : > { %v9906_v55 = vadd.f32 %v7698_v42, %v3850_v54  ;;  %v3851_v43 = vadd.f32 %v9887_v20, %v3779_v60  ;;  %3886 = vadd.xlane.f32.xlu0 %v9901_v31 }
 0xc5b   : > { %v9917_v44 = vadd.f32 %v7701_v13, %v3853_v41 }
 0xc5c   : > { %v9911_v37 = vadd.f32 %v7699_v8, %v3851_v43  ;;  %3888 = vadd.xlane.f32.xlu1 %v9906_v55 }
 0xc5e   : > { %3890 = vadd.xlane.f32.xlu0 %v9911_v37 }
 0xc60   : > { %3892 = vadd.xlane.f32.xlu1 %v9914_v1 }
 0xc62   : > { %3894 = vadd.xlane.f32.xlu0 %v9917_v44 }
 0xc64   : > { %v6944_v57 = vpop.f32.mrb[56].mxu0 }
 0xc65   : > { %v3792_v6 = vpop.f32.mrb[57].mxu0  ;;  %v3856_v5 = vadd.f32 %v6944_v57, %v9887_v20 }
 0xc66   : > { %v3854_v23 = vadd.f32 %v9887_v20, %v3792_v6  ;;  %v6945_v16 = vpop.f32.mrb[58].mxu0 }
 0xc67   : > { %v3795_v22 = vpop.f32.mrb[59].mxu0  ;;  %v3857_v40 = vadd.f32 %v6945_v16, %v9887_v20  ;;  %v9930_v11 = vadd.f32 %v7704_v17, %v3856_v5 }
 0xc68   : > { %v9923_v15 = vadd.f32 %v7702_v38, %v3854_v23  ;;  %v3855_v51 = vadd.f32 %v9887_v20, %v3795_v22 }
 0xc69   : > { %v9933_v45 = vadd.f32 %v7705_v53, %v3857_v40  ;;  %v7290_v53 = vld [vmem:[%s8631_s0 + $0x40] ss:$16 sps:$4 sm:$0xff]  }
 0xc6a   : > { %v9927_v34 = vadd.f32 %v7703_v12, %v3855_v51  ;;  %3896 = vadd.xlane.f32.xlu1 %v9923_v15 }
 0xc6c   : > { %3898 = vadd.xlane.f32.xlu0 %v9927_v34  ;;  %v6948_v48 = vpop.f32.mrb[60].mxu0 }
 0xc6d   : > { %v3808_v18 = vpop.f32.mrb[61].mxu0  ;;  %v3860_v4 = vadd.f32 %v6948_v48, %v9887_v20  ;;  %v7295_v48 = vld [vmem:[%s8631_s0 + $0x4c] ss:$16 sps:$4 sm:$0xff]  }
 0xc6e   : > { %v3858_v9 = vadd.f32 %v9887_v20, %v3808_v18  ;;  %3900 = vadd.xlane.f32.xlu1 %v9930_v11  ;;  %v6949_v59 = vpop.f32.mrb[62].mxu0  ;;  %4440 = vmatprep.subr.bf16.mxu0 %v7295_v48  ;;  %v7323_v48 = vld [vmem:[%s8631_s0 + $0xe8] ss:$16 sps:$4 sm:$0xff]  }
 0xc6f   : > { %v3811_v3 = vpop.f32.mrb[63].mxu0  ;;  %v3861_v50 = vadd.f32 %v6949_v59, %v9887_v20  ;;  %v9946_v61 = vadd.f32 %v7708_v0, %v3860_v4  ;;  %v7299_v0 = vld [vmem:[%s8631_s0 + $0x68] ss:$16 sps:$4 sm:$0xff]  }
 0xc70   : > { %v9938_v24 = vadd.f32 %v7706_v19, %v3858_v9  ;;  %v3859_v21 = vadd.f32 %v9887_v20, %v3811_v3  ;;  %3902 = vadd.xlane.f32.xlu0 %v9933_v45  ;;  %v7278_v20 = vld [vmem:[%s8631_s0] ss:$16 sps:$4 sm:$0xff]   ;;  %v7293_v9 = vld [vmem:[%s8631_s0 + $0x48] ss:$16 sps:$4 sm:$0xff]   ;;  %v7298_v19 = vld [vmem:[%s8631_s0 + $0x64] ss:$16 sps:$4 sm:$0xff]  }
 0xc71   : > { %v9949_v28 = vadd.f32 %v7709_v10, %v3861_v50  ;;  %4324 = vmatpush1.bf16.msra.mxu1 %v7278_v20  ;;  %4441 = vmatpush1.bf16.msra.mxu0 %v7293_v9 }
 0xc72   : > { %v9943_v56 = vadd.f32 %v7707_v47, %v3859_v21  ;;  %3904 = vadd.xlane.f32.xlu1 %v9938_v24  ;;  %4325 = vmatprep.subr.bf16.mxu1 %v7286_v26  ;;  %v7301_v21 = vld [vmem:[%s8631_s0 + $0x6c] ss:$16 sps:$4 sm:$0xff]   ;;  %v7296_v47 = vld [vmem:[%s8631_s0 + $0x60] ss:$16 sps:$4 sm:$0xff]  }
 0xc73   : > { %4442 = vmatprep.subr.bf16.mxu0 %v7301_v21 }
 0xc74   : > { %3906 = vadd.xlane.f32.xlu0 %v9943_v56 }
 0xc75   : > { %4326 = vmatpush1.bf16.msra.mxu1 %v7284_v32  ;;  %4443 = vmatpush1.bf16.msra.mxu0 %v7299_v0 }
 0xc76   : > { %3908 = vadd.xlane.f32.xlu1 %v9946_v61  ;;  %4444 = vmatprep.subr.bf16.mxu0 %v7307_v14 }
 0xc78   : > { %3910 = vadd.xlane.f32.xlu0 %v9949_v28 }
 0xce1   : > { %v3881_v36 = vpop.xlane.xlu1 %3880 }
 0xce2   : > { %v3913_v35 = vmul.f32 0.0078125, %v3881_v36  ;;  %v7305_v36 = vld [vmem:[%s8631_s0 + $0x88] ss:$16 sps:$4 sm:$0xff]  }
 0xce3   : > { %v3883_v62 = vpop.xlane.xlu0 %3882  ;;  %4445 = vmatpush1.bf16.msra.mxu0 %v7305_v36 }
 0xce4   : > { %v9962_v39 = vsub.f32 %v9891_v63, %v3913_v35  ;;  %v3914_v58 = vmul.f32 0.0078125, %v3883_v62 }
 0xce5   : > { %v3885_v54 = vpop.xlane.xlu1 %3884 }
 0xce6   : > { %v9965_v29 = vsub.f32 %v9895_v27, %v3914_v58  ;;  %v3915_v60 = vmul.f32 0.0078125, %v3885_v54  ;;  %v3945_v33 = vmul.f32 %v9962_v39, %v9962_v39 }
 0xce7   : > { %v3887_v42 = vpop.xlane.xlu0 %3886 }
 0xce8   : > { %v9970_v43 = vsub.f32 %v9898_v25, %v3915_v60  ;;  %v3916_v41 = vmul.f32 0.0078125, %v3887_v42  ;;  %3961 = vadd.xlane.f32.xlu1 %v3945_v33  ;;  %v3946_v8 = vmul.f32 %v9965_v29, %v9965_v29  ;;  %v7310_v33 = vld [vmem:[%s8631_s0 + $0xa4] ss:$16 sps:$4 sm:$0xff]   ;;  %v7313_v42 = vld [vmem:[%s8631_s0 + $0xac] ss:$16 sps:$4 sm:$0xff]  }
 0xce9   : > { %v3889_v63 = vpop.xlane.xlu1 %3888  ;;  %4446 = vmatprep.subr.bf16.mxu0 %v7313_v42 }
 0xcea   : > { %v9975_v49 = vsub.f32 %v9901_v31, %v3916_v41  ;;  %v3917_v13 = vmul.f32 0.0078125, %v3889_v63  ;;  %3963 = vadd.xlane.f32.xlu0 %v3946_v8  ;;  %v3947_v27 = vmul.f32 %v9970_v43, %v9970_v43  ;;  %v7308_v8 = vld [vmem:[%s8631_s0 + $0xa0] ss:$16 sps:$4 sm:$0xff]   ;;  %v7311_v63 = vld [vmem:[%s8631_s0 + $0xa8] ss:$16 sps:$4 sm:$0xff]  }
 0xceb   : > { %v3891_v57 = vpop.xlane.xlu0 %3890  ;;  %4447 = vmatpush1.bf16.msra.mxu0 %v7311_v63 }
 0xcec   : > { %v9980_v6 = vsub.f32 %v9906_v55, %v3917_v13  ;;  %v3918_v25 = vmul.f32 0.0078125, %v3891_v57  ;;  %3965 = vadd.xlane.f32.xlu1 %v3947_v27  ;;  %v3948_v23 = vmul.f32 %v9975_v49, %v9975_v49 }
 0xced   : > { %v3893_v16 = vpop.xlane.xlu1 %3892 }
 0xcee   : > { %v9985_v31 = vsub.f32 %v9911_v37, %v3918_v25  ;;  %v3919_v22 = vmul.f32 0.0078125, %v3893_v16  ;;  %3967 = vadd.xlane.f32.xlu0 %v3948_v23  ;;  %v3949_v5 = vmul.f32 %v9980_v6, %v9980_v6  ;;  %v7316_v16 = vld [vmem:[%s8631_s0 + $0xc4] ss:$16 sps:$4 sm:$0xff]  }
 0xcef   : > { %v3895_v55 = vpop.xlane.xlu0 %3894 }
 0xcf0   : > { %v9990_v38 = vsub.f32 %v9914_v1, %v3919_v22  ;;  %v3920_v51 = vmul.f32 0.0078125, %v3895_v55  ;;  %3969 = vadd.xlane.f32.xlu1 %v3949_v5  ;;  %v3950_v40 = vmul.f32 %v9985_v31, %v9985_v31  ;;  %v7292_v1 = vld [vmem:[%s8631_s0 + $0x44] ss:$16 sps:$4 sm:$0xff]   ;;  %v7319_v22 = vld [vmem:[%s8631_s0 + $0xcc] ss:$16 sps:$4 sm:$0xff]  }
 0xcf1   : > { %4327 = vmatprep.subr.bf16.mxu1 %v7292_v1  ;;  %v7314_v5 = vld [vmem:[%s8631_s0 + $0xc0] ss:$16 sps:$4 sm:$0xff]   ;;  %v7317_v55 = vld [vmem:[%s8631_s0 + $0xc8] ss:$16 sps:$4 sm:$0xff]   ;;  %4448 = vmatprep.subr.bf16.mxu0 %v7319_v22 }
 0xcf2   : > { %v9995_v12 = vsub.f32 %v9917_v44, %v3920_v51  ;;  %3971 = vadd.xlane.f32.xlu0 %v3950_v40  ;;  %v3951_v37 = vmul.f32 %v9990_v38, %v9990_v38  ;;  %4328 = vmatpush1.bf16.msra.mxu1 %v7290_v53  ;;  %v7320_v1 = vld [vmem:[%s8631_s0 + $0xe0] ss:$16 sps:$4 sm:$0xff]  }
 0xcf3   : > { %4329 = vmatprep.subr.bf16.mxu1 %v7298_v19  ;;  %4449 = vmatpush1.bf16.msra.mxu0 %v7317_v55 }
 0xcf4   : > { %3973 = vadd.xlane.f32.xlu1 %v3951_v37  ;;  %v3952_v17 = vmul.f32 %v9995_v12, %v9995_v12  ;;  %v7322_v37 = vld [vmem:[%s8631_s0 + $0xe4] ss:$16 sps:$4 sm:$0xff]  }
 0xcf6   : > { %3975 = vadd.xlane.f32.xlu0 %v3952_v17  ;;  %4330 = vmatpush1.bf16.msra.mxu1 %v7296_v47  ;;  %v7325_v17 = vld [vmem:[%s8631_s0 + $0xec] ss:$16 sps:$4 sm:$0xff]  }
 0xcf7   : > { %v3897_v18 = vpop.xlane.xlu1 %3896  ;;  %4450 = vmatprep.subr.bf16.mxu0 %v7325_v17  ;;  %v7329_v17 = vld [vmem:[%s8633_s4 + $0x80] sm:$0xff]  }
 0xcf8   : > { %v3921_v44 = vmul.f32 0.0078125, %v3897_v18  ;;  %4451 = vmatpush1.bf16.msra.mxu0 %v7323_v48  ;;  %v7328_v18 = vld [vmem:[%s8633_s4 + $0xc0] sm:$0xff]  }
 0xcf9   : > { %v3899_v59 = vpop.xlane.xlu0 %3898  ;;  %6502 = vmatprep.subr.bf16.mxu0 %v7328_v18  ;;  %v7332_v18 = vld [vmem:[%s8633_s4 + $0xc8] sm:$0xff]  }
 0xcfa   : > { %v10006_v3 = vsub.f32 %v9923_v15, %v3921_v44  ;;  %v3922_v4 = vmul.f32 0.0078125, %v3899_v59 }
 0xcfb   : > { %v3901_v50 = vpop.xlane.xlu1 %3900 }
 0xcfc   : > { %v10013_v10 = vsub.f32 %v9927_v34, %v3922_v4  ;;  %v3923_v20 = vmul.f32 0.0078125, %v3901_v50  ;;  %v3953_v2 = vmul.f32 %v10006_v3, %v10006_v3  ;;  %v7304_v34 = vld [vmem:[%s8631_s0 + $0x84] ss:$16 sps:$4 sm:$0xff]  }
 0xcfd   : > { %v3903_v15 = vpop.xlane.xlu0 %3902  ;;  %4331 = vmatprep.subr.bf16.mxu1 %v7304_v34 }
 0xcfe   : > { %v10018_v30 = vsub.f32 %v9930_v11, %v3923_v20  ;;  %v3924_v52 = vmul.f32 0.0078125, %v3903_v15  ;;  %3977 = vadd.xlane.f32.xlu1 %v3953_v2  ;;  %v3954_v26 = vmul.f32 %v10013_v10, %v10013_v10  ;;  %4332 = vmatpush1.bf16.msra.mxu1 %v7302_v46 }
 0xcff   : > { %v3905_v32 = vpop.xlane.xlu1 %3904  ;;  %4333 = vmatprep.subr.bf16.mxu1 %v7310_v33 }
 0xd00   : > { %v10027_v35 = vsub.f32 %v9933_v45, %v3924_v52  ;;  %v3925_v62 = vmul.f32 0.0078125, %v3905_v32  ;;  %3979 = vadd.xlane.f32.xlu0 %v3954_v26  ;;  %v3955_v11 = vmul.f32 %v10018_v30, %v10018_v30 }
 0xd01   : > { %v3907_v58 = vpop.xlane.xlu0 %3906 }
 0xd02   : > { %v10032_v54 = vsub.f32 %v9938_v24, %v3925_v62  ;;  %v3926_v60 = vmul.f32 0.0078125, %v3907_v58  ;;  %3981 = vadd.xlane.f32.xlu1 %v3955_v11  ;;  %v3956_v45 = vmul.f32 %v10027_v35, %v10027_v35  ;;  %4334 = vmatpush1.bf16.msra.mxu1 %v7308_v8  ;;  %v10072_v11 = vld [vmem:[%s11070_s8] ss:$0 sm:$0xff] }
 0xd03   : > { %v3909_v41 = vpop.xlane.xlu1 %3908  ;;  %4335 = vmatprep.subr.bf16.mxu1 %v7316_v16 }
 0xd04   : > { %v10041_v13 = vsub.f32 %v9943_v56, %v3926_v60  ;;  %v3927_v24 = vmul.f32 0.0078125, %v3909_v41  ;;  %3983 = vadd.xlane.f32.xlu0 %v3956_v45  ;;  %v3957_v27 = vmul.f32 %v10032_v54, %v10032_v54 }
 0xd05   : > { %v3911_v57 = vpop.xlane.xlu0 %3910 }
 0xd06   : > { %v10046_v25 = vsub.f32 %v9946_v61, %v3927_v24  ;;  %v3928_v23 = vmul.f32 0.0078125, %v3911_v57  ;;  %3985 = vadd.xlane.f32.xlu1 %v3957_v27  ;;  %v3958_v56 = vmul.f32 %v10041_v13, %v10041_v13  ;;  %4336 = vmatpush1.bf16.msra.mxu1 %v7314_v5  ;;  %v10082_v24 = vld [vmem:[%s844_s5] ss:$0 sm:$0xff] }
 0xd07   : > { %4337 = vmatprep.subr.bf16.mxu1 %v7322_v37  ;;  %v7327_v37 = vld [vmem:[%s8633_s4] sm:$0xff]  }
 0xd08   : > { %v10055_v51 = vsub.f32 %v9949_v28, %v3928_v23  ;;  %3987 = vadd.xlane.f32.xlu0 %v3958_v56  ;;  %v3959_v61 = vmul.f32 %v10046_v25, %v10046_v25  ;;  %v7326_v28 = vld [vmem:[%s8633_s4 + $0x40] sm:$0xff]  }
 0xd0a   : > { %3989 = vadd.xlane.f32.xlu1 %v3959_v61  ;;  %v3960_v40 = vmul.f32 %v10055_v51, %v10055_v51  ;;  %4338 = vmatpush1.bf16.msra.mxu1 %v7320_v1 }
 0xd0b   : > { %6438 = vmatprep.subr.bf16.mxu1 %v7326_v28  ;;  %v7330_v28 = vld [vmem:[%s8633_s4 + $0x48] sm:$0xff]  }
 0xd0c   : > { %3991 = vadd.xlane.f32.xlu0 %v3960_v40 }
 0xd75   : > { %v3962_v53 = vpop.xlane.xlu1 %3961 }
 0xd76   : > { %v3993_v9 = vmul.f32 0.0078125, %v3962_v53 }
 0xd77   : > { %v3964_v44 = vpop.xlane.xlu0 %3963 }
 0xd78   : > { %v4009_v59 = vadd.f32 1e-05, %v3993_v9  ;;  %v3994_v4 = vmul.f32 0.0078125, %v3964_v44 }
 0xd79   : > { %v3966_v19 = vpop.xlane.xlu1 %3965 }
 0xd7a   : > { %7614 = vrsqrt.f32 %v4009_v59  ;;  %v4010_v21 = vadd.f32 1e-05, %v3994_v4  ;;  %v3995_v50 = vmul.f32 0.0078125, %v3966_v19  ;;  %v7331_v4 = vld [vmem:[%s8633_s4 + $0x8] sm:$0xff]  }
 0xd7b   : > { %v3968_v47 = vpop.xlane.xlu0 %3967  ;;  %v7333_v19 = vld [vmem:[%s8633_s4 + $0x88] sm:$0xff]  }
 0xd7c   : > { %7616 = vrsqrt.f32 %v4010_v21  ;;  %v4011_v0 = vadd.f32 1e-05, %v3995_v50  ;;  %v3996_v20 = vmul.f32 0.0078125, %v3968_v47  ;;  %v7334_v50 = vld [vmem:[%s8633_s4 + $0x50] sm:$0xff]  }
 0xd7d   : > { %v3970_v2 = vpop.xlane.xlu1 %3969  ;;  %v7336_v47 = vld [vmem:[%s8633_s4 + $0xd0] sm:$0xff]  }
 0xd7e   : > { %7618 = vrsqrt.f32 %v4011_v0  ;;  %v4012_v15 = vadd.f32 1e-05, %v3996_v20  ;;  %v3997_v52 = vmul.f32 0.0078125, %v3970_v2 }
 0xd7f   : > { %v3972_v26 = vpop.xlane.xlu0 %3971 }
 0xd80   : > { %7620 = vrsqrt.f32 %v4012_v15  ;;  %v3998_v34 = vmul.f32 0.0078125, %v3972_v26  ;;  %v4013_v14 = vadd.f32 1e-05, %v3997_v52  ;;  %v7335_v26 = vld [vmem:[%s8633_s4 + $0x10] sm:$0xff]  }
 0xd81   : > { %v3974_v46 = vpop.xlane.xlu1 %3973 }
 0xd82   : > { %v4014_v32 = vadd.f32 1e-05, %v3998_v34  ;;  %v3999_v33 = vmul.f32 0.0078125, %v3974_v46  ;;  %v7337_v34 = vld [vmem:[%s8633_s4 + $0x90] sm:$0xff]   ;;  %v7338_v46 = vld [vmem:[%s8633_s4 + $0x58] sm:$0xff]  }
 0xd83   : > { %v3976_v36 = vpop.xlane.xlu0 %3975 }
 0xd84   : > { %v7615_v62 = vpop.eup %7614  ;;  %7622 = vrsqrt.f32 %v4014_v32  ;;  %v4000_v58 = vmul.f32 0.0078125, %v3976_v36  ;;  %v4015_v57 = vadd.f32 1e-05, %v3999_v33 }
 0xd85   : > { %v4041_v60 = vmul.f32 %v7615_v62, %v9962_v39  ;;  %7624 = vrsqrt.f32 %v4013_v14 }
 0xd86   : > { %v7617_v45 = vpop.eup %7616  ;;  %v4016_v63 = vadd.f32 1e-05, %v4000_v58 }
 0xd87   : > { %v4063_v42 = vmul.f32 %v10072_v11, %v4041_v60  ;;  %v4042_v41 = vmul.f32 %v7617_v45, %v9965_v29 }
 0xd88   : > { %v7619_v8 = vpop.eup %7618  ;;  %7626 = vrsqrt.f32 %v4016_v63  ;;  %v7342_v63 = vld [vmem:[%s8633_s4 + $0x60] sm:$0xff]  }
 0xd89   : > { %v4064_v27 = vmul.f32 %v10072_v11, %v4042_v41  ;;  %v10086_v56 = vadd.f32 %v10082_v24, %v4063_v42  ;;  %v4043_v16 = vmul.f32 %v7619_v8, %v9970_v43  ;;  %7628 = vrsqrt.f32 %v4015_v57  ;;  %v7339_v42 = vld [vmem:[%s8633_s4 + $0x18] sm:$0xff]  }
 0xd8a   : > { %v7621_v39 = vpop.eup %7620  ;;  %v7341_v41 = vld [vmem:[%s8633_s4 + $0x98] sm:$0xff]  }
 0xd8b   : > { %v3978_v23 = vpop.xlane.xlu1 %3977  ;;  %v10089_v29 = vadd.f32 %v10082_v24, %v4064_v27  ;;  %v4044_v22 = vmul.f32 %v7621_v39, %v9975_v49  ;;  %v4065_v43 = vmul.f32 %v10072_v11, %v4043_v16  ;;  %v7344_v27 = vld [vmem:[%s8633_s4 + $0xe0] sm:$0xff]  }
 0xd8c   : > { %v4001_v48 = vmul.f32 0.0078125, %v3978_v23 }
 0xd8d   : > { %v3980_v5 = vpop.xlane.xlu0 %3979  ;;  %v4101_v61 = vpack.c.bf16 %v10089_v29, %v10086_v56  ;;  %v4066_v40 = vmul.f32 %v10072_v11, %v4044_v22  ;;  %v10112_v20 = vadd.f32 %v10082_v24, %v4065_v43 }
 0xd8e   : > { %v4002_v55 = vmul.f32 0.0078125, %v3980_v5  ;;  %v7623_v1 = vpop.eup %7622  ;;  %v4017_v21 = vadd.f32 1e-05, %v4001_v48  ;;  %v7343_v5 = vld [vmem:[%s8633_s4 + $0x20] sm:$0xff]  }
 0xd8f   : > { %4356 = vmatmul.mubr.bf16.vlgmr.msra.gmra.mrb[96].mxu1 %v4101_v61  ;;  %4469 = vmatmul.mubr.bf16.vlgmr.msra.gmra.mrb[96].mxu0 %v4101_v61  ;;  %v7625_v49 = vpop.eup %7624  ;;  %v10104_v44 = vadd.f32 %v10082_v24, %v4066_v40  ;;  %v4046_v59 = vmul.f32 %v7623_v1, %v9985_v31  ;;  %v3982_v0 = vpop.xlane.xlu1 %3981 }
 0xd90   : > { %v4018_v53 = vadd.f32 1e-05, %v4002_v55  ;;  %4365 = vmatprep.mubr.bf16.mxu1 %v11066_v7  ;;  %4478 = vmatprep.mubr.bf16.mxu0 %v11066_v7  ;;  %v4045_v2 = vmul.f32 %v7625_v49, %v9980_v6  ;;  %v4003_v32 = vmul.f32 0.0078125, %v3982_v0  ;;  %v7340_v6 = vld [vmem:[%s8633_s4 + $0xd8] sm:$0xff]   ;;  %v7345_v55 = vld [vmem:[%s8633_s4 + $0xa0] sm:$0xff]   ;;  %v7347_v49 = vld [vmem:[%s8633_s4 + $0x28] sm:$0xff]  }
 0xd91   : > { %v3984_v9 = vpop.xlane.xlu0 %3983  ;;  %6439 = vmatpush3.bf16.msra.mxu1 %v7327_v37  ;;  %6503 = vmatpush3.bf16.msra.mxu0 %v7329_v17  ;;  %v4102_v15 = vpack.c.bf16 %v10104_v44, %v10112_v20  ;;  %v4068_v52 = vmul.f32 %v10072_v11, %v4046_v59  ;;  %v7348_v17 = vld [vmem:[%s8633_s4 + $0xe8] sm:$0xff]   ;;  %v7350_v59 = vld [vmem:[%s8633_s4 + $0x70] sm:$0xff]  }
 0xd92   : > { %6440 = vmatprep.subr.bf16.mxu1 %v7330_v28  ;;  %6504 = vmatprep.subr.bf16.mxu0 %v7332_v18  ;;  %7630 = vrsqrt.f32 %v4018_v53  ;;  %v4004_v31 = vmul.f32 0.0078125, %v3984_v9  ;;  %v7627_v14 = vpop.eup %7626  ;;  %v4067_v36 = vmul.f32 %v10072_v11, %v4045_v2  ;;  %v4019_v8 = vadd.f32 1e-05, %v4003_v32  ;;  %v7349_v53 = vld [vmem:[%s8633_s4 + $0xa8] sm:$0xff]   ;;  %v7351_v0 = vld [vmem:[%s8633_s4 + $0x30] sm:$0xff]  }
 0xd93   : > { %7632 = vrsqrt.f32 %v4017_v21  ;;  %v7629_v62 = vpop.eup %7628  ;;  %v10126_v45 = vadd.f32 %v10082_v24, %v4068_v52  ;;  %v4048_v33 = vmul.f32 %v7627_v14, %v9995_v12  ;;  %v3986_v39 = vpop.xlane.xlu1 %3985  ;;  %v7352_v2 = vld [vmem:[%s8633_s4 + $0xf0] sm:$0xff]  }
 0xd94   : > { %v4020_v58 = vadd.f32 1e-05, %v4004_v31  ;;  %v10134_v57 = vadd.f32 %v10082_v24, %v4067_v36  ;;  %v4047_v23 = vmul.f32 %v7629_v62, %v9990_v38  ;;  %v4005_v40 = vmul.f32 0.0078125, %v3986_v39  ;;  %v7346_v38 = vld [vmem:[%s8633_s4 + $0x68] sm:$0xff]   ;;  %v7353_v52 = vld [vmem:[%s8633_s4 + $0xb0] sm:$0xff]  }
 0xd95   : > { %6441 = vmatpush3.bf16.msra.mxu1 %v7331_v4  ;;  %6505 = vmatpush3.bf16.msra.mxu0 %v7333_v19  ;;  %v3988_v60 = vpop.xlane.xlu0 %3987  ;;  %v4070_v22 = vmul.f32 %v10072_v11, %v4048_v33 }
 0xd96   : > { %6442 = vmatprep.subr.bf16.mxu1 %v7334_v50  ;;  %6506 = vmatprep.subr.bf16.mxu0 %v7336_v47  ;;  %7634 = vrsqrt.f32 %v4020_v58  ;;  %v4006_v12 = vmul.f32 0.0078125, %v3988_v60  ;;  %v4103_v16 = vpack.c.bf16 %v10126_v45, %v10134_v57  ;;  %v4069_v37 = vmul.f32 %v10072_v11, %v4047_v23 }
 0xd97   : > { %4366 = vmatmul.mubr.bf16.gmra.mrb[100].mxu1 %v4102_v15  ;;  %4479 = vmatmul.mubr.bf16.gmra.mrb[100].mxu0 %v4102_v15  ;;  %7636 = vrsqrt.f32 %v4019_v8  ;;  %v10148_v18 = vadd.f32 %v10082_v24, %v4070_v22  ;;  %v4021_v9 = vadd.f32 1e-05, %v4005_v40  ;;  %v3990_v4 = vpop.xlane.xlu1 %3989 }
 0xd98   : > { %4375 = vmatprep.mubr.bf16.mxu1 %v11066_v7  ;;  %4488 = vmatprep.mubr.bf16.mxu0 %v11066_v7  ;;  %v4022_v48 = vadd.f32 1e-05, %v4006_v12  ;;  %v10155_v19 = vadd.f32 %v10082_v24, %v4069_v37  ;;  %v4007_v15 = vmul.f32 0.0078125, %v3990_v4  ;;  %v7356_v37 = vld [vmem:[%s8633_s4 + $0xf8] sm:$0xff]  }
 0xd99   : > { %6443 = vmatpush3.bf16.msra.mxu1 %v7335_v26  ;;  %6507 = vmatpush3.bf16.msra.mxu0 %v7337_v34  ;;  %v3992_v28 = vpop.xlane.xlu0 %3991 }
 0xd9a   : > { %6444 = vmatprep.subr.bf16.mxu1 %v7338_v46  ;;  %6508 = vmatprep.subr.bf16.mxu0 %v7340_v6  ;;  %7638 = vrsqrt.f32 %v4022_v48  ;;  %v4008_v50 = vmul.f32 0.0078125, %v3992_v28  ;;  %v4023_v46 = vadd.f32 1e-05, %v4007_v15 }
 0xd9b   : > { %7640 = vrsqrt.f32 %v4021_v9 }
 0xd9c   : > { %v7631_v61 = vpop.eup %7630  ;;  %v4024_v34 = vadd.f32 1e-05, %v4008_v50 }
 0xd9d   : > { %6445 = vmatpush3.bf16.msra.mxu1 %v7339_v42  ;;  %6509 = vmatpush3.bf16.msra.mxu0 %v7341_v41  ;;  %v7633_v1 = vpop.eup %7632  ;;  %v4050_v43 = vmul.f32 %v7631_v61, %v10013_v10  ;;  %v4104_v10 = vpack.c.bf16 %v10148_v18, %v10155_v19 }
 0xd9e   : > { %6446 = vmatprep.subr.bf16.mxu1 %v7342_v63  ;;  %6510 = vmatprep.subr.bf16.mxu0 %v7344_v27  ;;  %v4049_v21 = vmul.f32 %v7633_v1, %v10006_v3  ;;  %7642 = vrsqrt.f32 %v4024_v34 }
 0xd9f   : > { %4376 = vmatmul.mubr.bf16.gmra.mrb[104].mxu1 %v4103_v16  ;;  %4489 = vmatmul.mubr.bf16.gmra.mrb[104].mxu0 %v4103_v16  ;;  %v4072_v47 = vmul.f32 %v10072_v11, %v4050_v43  ;;  %7644 = vrsqrt.f32 %v4023_v46 }
 0xda0   : > { %4385 = vmatprep.mubr.bf16.mxu1 %v11066_v7  ;;  %4498 = vmatprep.mubr.bf16.mxu0 %v11066_v7  ;;  %v7635_v31 = vpop.eup %7634  ;;  %v4071_v3 = vmul.f32 %v10072_v11, %v4049_v21 }
 0xda1   : > { %6447 = vmatpush3.bf16.msra.mxu1 %v7343_v5  ;;  %6511 = vmatpush3.bf16.msra.mxu0 %v7345_v55  ;;  %v7637_v26 = vpop.eup %7636  ;;  %v10168_v14 = vadd.f32 %v10082_v24, %v4072_v47  ;;  %v4052_v32 = vmul.f32 %v7635_v31, %v10027_v35 }
 0xda2   : > { %6448 = vmatprep.subr.bf16.mxu1 %v7346_v38  ;;  %6512 = vmatprep.subr.bf16.mxu0 %v7348_v17  ;;  %v10172_v6 = vadd.f32 %v10082_v24, %v4071_v3  ;;  %v4051_v36 = vmul.f32 %v7637_v26, %v10018_v30  ;;  %v7354_v38 = vld [vmem:[%s8633_s4 + $0x78] sm:$0xff]  }
 0xda3   : > { %v4074_v58 = vmul.f32 %v10072_v11, %v4052_v32  ;;  %v7355_v17 = vld [vmem:[%s8633_s4 + $0x38] sm:$0xff]  }
 0xda4   : > { %v4105_v62 = vpack.c.bf16 %v10168_v14, %v10172_v6  ;;  %v7639_v60 = vpop.eup %7638  ;;  %v4073_v35 = vmul.f32 %v10072_v11, %v4051_v36 }
 0xda5   : > { %6449 = vmatpush3.bf16.msra.mxu1 %v7347_v49  ;;  %6513 = vmatpush3.bf16.msra.mxu0 %v7349_v53  ;;  %v7641_v33 = vpop.eup %7640  ;;  %v10182_v42 = vadd.f32 %v10082_v24, %v4074_v58  ;;  %v4054_v30 = vmul.f32 %v7639_v60, %v10041_v13 }
 0xda6   : > { %6450 = vmatprep.subr.bf16.mxu1 %v7350_v59  ;;  %6514 = vmatprep.subr.bf16.mxu0 %v7352_v2  ;;  %v10186_v41 = vadd.f32 %v10082_v24, %v4073_v35  ;;  %v4053_v8 = vmul.f32 %v7641_v33, %v10032_v54 }
 0xda7   : > { %4386 = vmatmul.mubr.bf16.gmra.mrb[108].mxu1 %v4104_v10  ;;  %4499 = vmatmul.mubr.bf16.gmra.mrb[108].mxu0 %v4104_v10  ;;  %v4076_v27 = vmul.f32 %v10072_v11, %v4054_v30 }
 0xda8   : > { %4395 = vmatprep.mubr.bf16.mxu1 %v11066_v7  ;;  %4508 = vmatprep.mubr.bf16.mxu0 %v11066_v7  ;;  %v4106_v63 = vpack.c.bf16 %v10182_v42, %v10186_v41  ;;  %v7643_v39 = vpop.eup %7642  ;;  %v4075_v23 = vmul.f32 %v10072_v11, %v4053_v8 }
 0xda9   : > { %6451 = vmatpush3.bf16.msra.mxu1 %v7351_v0  ;;  %6515 = vmatpush3.bf16.msra.mxu0 %v7353_v52  ;;  %v7645_v12 = vpop.eup %7644  ;;  %v10196_v13 = vadd.f32 %v10082_v24, %v4076_v27  ;;  %v4056_v54 = vmul.f32 %v7643_v39, %v10055_v51 }
 0xdaa   : > { %v10200_v16 = vadd.f32 %v10082_v24, %v4075_v23  ;;  %v4055_v22 = vmul.f32 %v7645_v12, %v10046_v25  ;;  %6452 = vmatprep.subr.bf16.mxu1 %v7354_v38  ;;  %6516 = vmatprep.subr.bf16.mxu0 %v7356_v37 }
 0xdab   : > { %v4078_v55 = vmul.f32 %v10072_v11, %v4056_v54 }
 0xdac   : > { %v4107_v5 = vpack.c.bf16 %v10196_v13, %v10200_v16  ;;  %v4077_v61 = vmul.f32 %v10072_v11, %v4055_v22  ;;  %v7357_v11 = vld [vmem:[%s8633_s4 + $0xb8] sm:$0xff]  }
 0xdad   : > { %v10210_v51 = vadd.f32 %v10082_v24, %v4078_v55  ;;  %6453 = vmatpush3.bf16.msra.mxu1 %v7355_v17  ;;  %6517 = vmatpush3.bf16.msra.mxu0 %v7357_v11 }
 0xdae   : > { %v10213_v40 = vadd.f32 %v10082_v24, %v4077_v61  ;;  %v4141_v24 = vld [vmem:[%s8659_s10] sm:$0xf] }
 0xdaf   : > { %4396 = vmatmul.mubr.bf16.gmra.mrb[112].mxu1 %v4105_v62  ;;  %4509 = vmatmul.mubr.bf16.gmra.mrb[112].mxu0 %v4105_v62 }
 0xdb0   : > { %4405 = vmatprep.mubr.bf16.mxu1 %v11066_v7  ;;  %4518 = vmatprep.mubr.bf16.mxu0 %v11066_v7  ;;  %v4108_v25 = vpack.c.bf16 %v10210_v51, %v10213_v40 }
 0xdb7   : > { %4406 = vmatmul.mubr.bf16.gmra.mrb[116].mxu1 %v4106_v63  ;;  %4519 = vmatmul.mubr.bf16.gmra.mrb[116].mxu0 %v4106_v63 }
 0xdb8   : > { %4415 = vmatprep.mubr.bf16.mxu1 %v11066_v7  ;;  %4528 = vmatprep.mubr.bf16.mxu0 %v11066_v7 }
 0xdbf   : > { %4416 = vmatmul.mubr.bf16.gmra.mrb[120].mxu1 %v4107_v5  ;;  %4529 = vmatmul.mubr.bf16.gmra.mrb[120].mxu0 %v4107_v5 }
 0xdc0   : > { %4425 = vmatprep.mubr.bf16.mxu1 %v11066_v7  ;;  %4538 = vmatprep.mubr.bf16.mxu0 %v11066_v7  ;;  %v4143_v7 = vlaneseq }
 0xdc2   : > { %v4144_v1 = vshrl.u32 %v4143_v7, 7 }
 0xdc4   : > { %v4145_v48 = vsub.s32 0, %v4144_v1  ;;  %v4153_v28 = vsub.s32 2, %v4144_v1  ;;  %v4149_v43 = vsub.s32 1, %v4144_v1  ;;  %v4157_v49 = vsub.s32 3, %v4144_v1 }
 0xdc6   : > { %v10222_v53 = vrot.slane %v4141_v24, %v4145_v48  ;;  %v10224_v9 = vrot.slane %v4141_v24, %v4153_v28  ;;  %v10226_v59 = vrot.slane %v4141_v24, %v4149_v43  ;;  %v10228_v4 = vrot.slane %v4141_v24, %v4157_v49 }
 0xdc7   : > { %4426 = vmatmul.mubr.bf16.gmra.mrb[124].mxu1 %v4108_v25  ;;  %4539 = vmatmul.mubr.bf16.gmra.mrb[124].mxu0 %v4108_v25 }
 0xe62   : > { %v4357_v21 = vpop.f32.mrb[96].mxu1  ;;  %v4470_v50 = vpop.f32.mrb[96].mxu0 }
 0xe63   : > { %v4358_v10 = vadd.f32 %v4357_v21, %v10222_v53  ;;  %v4471_v47 = vadd.f32 %v4470_v50, %v10224_v9  ;;  %v4359_v0 = vpop.f32.mrb[97].mxu1  ;;  %v4472_v2 = vpop.f32.mrb[97].mxu0 }
 0xe64   : > { %v4360_v31 = vadd.f32 %v4359_v0, %v10226_v59  ;;  %v4473_v15 = vadd.f32 %v4472_v2, %v10228_v4  ;;  %v4361_v52 = vpop.f32.mrb[98].mxu1  ;;  %v4474_v3 = vpop.f32.mrb[98].mxu0 }
 0xe65   : > { %v4362_v26 = vadd.f32 %v4361_v52, %v10222_v53  ;;  %v4475_v34 = vadd.f32 %v4474_v3, %v10224_v9  ;;  %v4363_v32 = vpop.f32.mrb[99].mxu1  ;;  %v4476_v46 = vpop.f32.mrb[99].mxu0  ;;  %v4549_v58 = vmax.f32 %v4358_v10, 0.0  ;;  %v4551_v60 = vmax.f32 %v4471_v47, 0.0 }
 0xe66   : > { %v4364_v36 = vadd.f32 %v4363_v32, %v10226_v59  ;;  %v4477_v62 = vadd.f32 %v4476_v46, %v10228_v4  ;;  %v4550_v30 = vmax.f32 %v4360_v31, 0.0  ;;  %v4552_v8 = vmax.f32 %v4473_v15, 0.0 }
 0xe67   : > { %v4553_v35 = vmax.f32 %v4362_v26, 0.0  ;;  %v4555_v33 = vmax.f32 %v4475_v34, 0.0 }
 0xe68   : > { %v4554_v63 = vmax.f32 %v4364_v36, 0.0  ;;  %v4556_v27 = vmax.f32 %v4477_v62, 0.0 }
 0xe69   : > { %v4613_v39 = vpack.c.bf16 %v4553_v35, %v4549_v58  ;;  %v4615_v23 = vpack.c.bf16 %v4555_v33, %v4551_v60 }
 0xe6a   : > { %v4614_v12 = vpack.c.bf16 %v4554_v63, %v4550_v30  ;;  %v4616_v54 = vpack.c.bf16 %v4556_v27, %v4552_v8  ;;  %v4367_v22 = vpop.f32.mrb[100].mxu1  ;;  %v4480_v5 = vpop.f32.mrb[100].mxu0 }
 0xe6b   : > { %v4368_v55 = vadd.f32 %v4367_v22, %v10222_v53  ;;  %v4481_v61 = vadd.f32 %v4480_v5, %v10224_v9  ;;  %v4369_v25 = vpop.f32.mrb[101].mxu1  ;;  %v4482_v38 = vpop.f32.mrb[101].mxu0 }
 0xe6c   : > { %v4370_v37 = vadd.f32 %v4369_v25, %v10226_v59  ;;  %v4483_v17 = vadd.f32 %v4482_v38, %v10228_v4  ;;  %v4371_v11 = vpop.f32.mrb[102].mxu1  ;;  %v4484_v7 = vpop.f32.mrb[102].mxu0  ;;  %4940 = vmatprep.mubr.bf16.mxu1 %v4614_v12  ;;  %5037 = vmatprep.mubr.bf16.mxu0 %v4616_v54 }
 0xe6d   : > { %v4372_v1 = vadd.f32 %v4371_v11, %v10222_v53  ;;  %v4485_v48 = vadd.f32 %v4484_v7, %v10224_v9  ;;  %v4373_v28 = vpop.f32.mrb[103].mxu1  ;;  %v4486_v24 = vpop.f32.mrb[103].mxu0  ;;  %4941 = vmatmul.mubr.bf16.vlgmr.msra.gmra.mrb[128].mxu1 %v4613_v39  ;;  %5038 = vmatmul.mubr.bf16.vlgmr.msra.gmra.mrb[128].mxu0 %v4615_v23  ;;  %v4557_v21 = vmax.f32 %v4368_v55, 0.0  ;;  %v4559_v50 = vmax.f32 %v4481_v61, 0.0 }
 0xe6e   : > { %v4374_v43 = vadd.f32 %v4373_v28, %v10226_v59  ;;  %v4487_v49 = vadd.f32 %v4486_v24, %v10228_v4  ;;  %v4558_v0 = vmax.f32 %v4370_v37, 0.0  ;;  %v4560_v2 = vmax.f32 %v4483_v17, 0.0 }
 0xe6f   : > { %v4561_v10 = vmax.f32 %v4372_v1, 0.0  ;;  %v4563_v47 = vmax.f32 %v4485_v48, 0.0 }
 0xe70   : > { %v4562_v31 = vmax.f32 %v4374_v43, 0.0  ;;  %v4564_v15 = vmax.f32 %v4487_v49, 0.0 }
 0xe71   : > { %v4617_v52 = vpack.c.bf16 %v4561_v10, %v4557_v21  ;;  %v4619_v3 = vpack.c.bf16 %v4563_v47, %v4559_v50 }
 0xe72   : > { %v4618_v26 = vpack.c.bf16 %v4562_v31, %v4558_v0  ;;  %v4620_v34 = vpack.c.bf16 %v4564_v15, %v4560_v2  ;;  %v4377_v32 = vpop.f32.mrb[104].mxu1  ;;  %v4490_v46 = vpop.f32.mrb[104].mxu0 }
 0xe73   : > { %v4378_v36 = vadd.f32 %v4377_v32, %v10222_v53  ;;  %v4491_v62 = vadd.f32 %v4490_v46, %v10224_v9  ;;  %v4379_v58 = vpop.f32.mrb[105].mxu1  ;;  %v4492_v60 = vpop.f32.mrb[105].mxu0 }
 0xe74   : > { %v4380_v35 = vadd.f32 %v4379_v58, %v10226_v59  ;;  %v4493_v33 = vadd.f32 %v4492_v60, %v10228_v4  ;;  %v4381_v30 = vpop.f32.mrb[106].mxu1  ;;  %v4494_v8 = vpop.f32.mrb[106].mxu0  ;;  %4948 = vmatprep.mubr.bf16.mxu1 %v4618_v26  ;;  %5045 = vmatprep.mubr.bf16.mxu0 %v4620_v34 }
 0xe75   : > { %v4382_v63 = vadd.f32 %v4381_v30, %v10222_v53  ;;  %v4495_v27 = vadd.f32 %v4494_v8, %v10224_v9  ;;  %v4383_v39 = vpop.f32.mrb[107].mxu1  ;;  %v4496_v23 = vpop.f32.mrb[107].mxu0  ;;  %4949 = vmatmul.mubr.bf16.gmra.mrb[132].mxu1 %v4617_v52  ;;  %5046 = vmatmul.mubr.bf16.gmra.mrb[132].mxu0 %v4619_v3  ;;  %v4565_v22 = vmax.f32 %v4378_v36, 0.0  ;;  %v4567_v5 = vmax.f32 %v4491_v62, 0.0 }
 0xe76   : > { %v4384_v12 = vadd.f32 %v4383_v39, %v10226_v59  ;;  %v4497_v54 = vadd.f32 %v4496_v23, %v10228_v4  ;;  %v4566_v25 = vmax.f32 %v4380_v35, 0.0  ;;  %v4568_v38 = vmax.f32 %v4493_v33, 0.0 }
 0xe77   : > { %v4569_v55 = vmax.f32 %v4382_v63, 0.0  ;;  %v4571_v61 = vmax.f32 %v4495_v27, 0.0 }
 0xe78   : > { %v4570_v37 = vmax.f32 %v4384_v12, 0.0  ;;  %v4572_v17 = vmax.f32 %v4497_v54, 0.0 }
 0xe79   : > { %v4621_v11 = vpack.c.bf16 %v4569_v55, %v4565_v22  ;;  %v4623_v7 = vpack.c.bf16 %v4571_v61, %v4567_v5 }
 0xe7a   : > { %v4622_v1 = vpack.c.bf16 %v4570_v37, %v4566_v25  ;;  %v4624_v48 = vpack.c.bf16 %v4572_v17, %v4568_v38  ;;  %v4387_v28 = vpop.f32.mrb[108].mxu1  ;;  %v4500_v24 = vpop.f32.mrb[108].mxu0 }
 0xe7b   : > { %v4388_v43 = vadd.f32 %v4387_v28, %v10222_v53  ;;  %v4501_v49 = vadd.f32 %v4500_v24, %v10224_v9  ;;  %v4389_v21 = vpop.f32.mrb[109].mxu1  ;;  %v4502_v50 = vpop.f32.mrb[109].mxu0 }
 0xe7c   : > { %v4390_v10 = vadd.f32 %v4389_v21, %v10226_v59  ;;  %v4503_v47 = vadd.f32 %v4502_v50, %v10228_v4  ;;  %v4391_v0 = vpop.f32.mrb[110].mxu1  ;;  %v4504_v2 = vpop.f32.mrb[110].mxu0  ;;  %4956 = vmatprep.mubr.bf16.mxu1 %v4622_v1  ;;  %5053 = vmatprep.mubr.bf16.mxu0 %v4624_v48 }
 0xe7d   : > { %v4392_v31 = vadd.f32 %v4391_v0, %v10222_v53  ;;  %v4505_v15 = vadd.f32 %v4504_v2, %v10224_v9  ;;  %v4393_v52 = vpop.f32.mrb[111].mxu1  ;;  %v4506_v3 = vpop.f32.mrb[111].mxu0  ;;  %4957 = vmatmul.mubr.bf16.gmra.mrb[136].mxu1 %v4621_v11  ;;  %5054 = vmatmul.mubr.bf16.gmra.mrb[136].mxu0 %v4623_v7  ;;  %v4573_v32 = vmax.f32 %v4388_v43, 0.0  ;;  %v4575_v46 = vmax.f32 %v4501_v49, 0.0 }
 0xe7e   : > { %v4394_v26 = vadd.f32 %v4393_v52, %v10226_v59  ;;  %v4507_v34 = vadd.f32 %v4506_v3, %v10228_v4  ;;  %v4574_v58 = vmax.f32 %v4390_v10, 0.0  ;;  %v4576_v60 = vmax.f32 %v4503_v47, 0.0 }
 0xe7f   : > { %v4577_v36 = vmax.f32 %v4392_v31, 0.0  ;;  %v4579_v62 = vmax.f32 %v4505_v15, 0.0 }
 0xe80   : > { %v4578_v35 = vmax.f32 %v4394_v26, 0.0  ;;  %v4580_v33 = vmax.f32 %v4507_v34, 0.0 }
 0xe81   : > { %v4625_v30 = vpack.c.bf16 %v4577_v36, %v4573_v32  ;;  %v4627_v8 = vpack.c.bf16 %v4579_v62, %v4575_v46 }
 0xe82   : > { %v4626_v63 = vpack.c.bf16 %v4578_v35, %v4574_v58  ;;  %v4628_v27 = vpack.c.bf16 %v4580_v33, %v4576_v60  ;;  %v4397_v39 = vpop.f32.mrb[112].mxu1  ;;  %v4510_v23 = vpop.f32.mrb[112].mxu0 }
 0xe83   : > { %v4398_v12 = vadd.f32 %v4397_v39, %v10222_v53  ;;  %v4511_v54 = vadd.f32 %v4510_v23, %v10224_v9  ;;  %v4399_v22 = vpop.f32.mrb[113].mxu1  ;;  %v4512_v5 = vpop.f32.mrb[113].mxu0 }
 0xe84   : > { %v4400_v55 = vadd.f32 %v4399_v22, %v10226_v59  ;;  %v4513_v61 = vadd.f32 %v4512_v5, %v10228_v4  ;;  %v4401_v25 = vpop.f32.mrb[114].mxu1  ;;  %v4514_v38 = vpop.f32.mrb[114].mxu0  ;;  %4964 = vmatprep.mubr.bf16.mxu1 %v4626_v63  ;;  %5061 = vmatprep.mubr.bf16.mxu0 %v4628_v27 }
 0xe85   : > { %v4402_v37 = vadd.f32 %v4401_v25, %v10222_v53  ;;  %v4515_v17 = vadd.f32 %v4514_v38, %v10224_v9  ;;  %v4403_v11 = vpop.f32.mrb[115].mxu1  ;;  %v4516_v7 = vpop.f32.mrb[115].mxu0  ;;  %4965 = vmatmul.mubr.bf16.gmra.mrb[140].mxu1 %v4625_v30  ;;  %5062 = vmatmul.mubr.bf16.gmra.mrb[140].mxu0 %v4627_v8  ;;  %v4581_v28 = vmax.f32 %v4398_v12, 0.0  ;;  %v4583_v24 = vmax.f32 %v4511_v54, 0.0 }
 0xe86   : > { %v4404_v1 = vadd.f32 %v4403_v11, %v10226_v59  ;;  %v4517_v48 = vadd.f32 %v4516_v7, %v10228_v4  ;;  %v4582_v21 = vmax.f32 %v4400_v55, 0.0  ;;  %v4584_v50 = vmax.f32 %v4513_v61, 0.0 }
 0xe87   : > { %v4585_v43 = vmax.f32 %v4402_v37, 0.0  ;;  %v4587_v49 = vmax.f32 %v4515_v17, 0.0 }
 0xe88   : > { %v4586_v10 = vmax.f32 %v4404_v1, 0.0  ;;  %v4588_v47 = vmax.f32 %v4517_v48, 0.0 }
 0xe89   : > { %v4629_v0 = vpack.c.bf16 %v4585_v43, %v4581_v28  ;;  %v4631_v2 = vpack.c.bf16 %v4587_v49, %v4583_v24 }
 0xe8a   : > { %v4630_v31 = vpack.c.bf16 %v4586_v10, %v4582_v21  ;;  %v4632_v15 = vpack.c.bf16 %v4588_v47, %v4584_v50  ;;  %v4407_v52 = vpop.f32.mrb[116].mxu1  ;;  %v4520_v3 = vpop.f32.mrb[116].mxu0 }
 0xe8b   : > { %v4408_v26 = vadd.f32 %v4407_v52, %v10222_v53  ;;  %v4521_v34 = vadd.f32 %v4520_v3, %v10224_v9  ;;  %v4409_v32 = vpop.f32.mrb[117].mxu1  ;;  %v4522_v46 = vpop.f32.mrb[117].mxu0 }
 0xe8c   : > { %v4410_v36 = vadd.f32 %v4409_v32, %v10226_v59  ;;  %v4523_v62 = vadd.f32 %v4522_v46, %v10228_v4  ;;  %v4411_v58 = vpop.f32.mrb[118].mxu1  ;;  %v4524_v60 = vpop.f32.mrb[118].mxu0  ;;  %4972 = vmatprep.mubr.bf16.mxu1 %v4630_v31  ;;  %5069 = vmatprep.mubr.bf16.mxu0 %v4632_v15 }
 0xe8d   : > { %v4412_v35 = vadd.f32 %v4411_v58, %v10222_v53  ;;  %v4525_v33 = vadd.f32 %v4524_v60, %v10224_v9  ;;  %v4413_v30 = vpop.f32.mrb[119].mxu1  ;;  %v4526_v8 = vpop.f32.mrb[119].mxu0  ;;  %4973 = vmatmul.mubr.bf16.gmra.mrb[144].mxu1 %v4629_v0  ;;  %5070 = vmatmul.mubr.bf16.gmra.mrb[144].mxu0 %v4631_v2  ;;  %v4589_v39 = vmax.f32 %v4408_v26, 0.0  ;;  %v4591_v23 = vmax.f32 %v4521_v34, 0.0 }
 0xe8e   : > { %v4414_v63 = vadd.f32 %v4413_v30, %v10226_v59  ;;  %v4527_v27 = vadd.f32 %v4526_v8, %v10228_v4  ;;  %v4590_v22 = vmax.f32 %v4410_v36, 0.0  ;;  %v4592_v5 = vmax.f32 %v4523_v62, 0.0 }
 0xe8f   : > { %v4593_v12 = vmax.f32 %v4412_v35, 0.0  ;;  %v4595_v54 = vmax.f32 %v4525_v33, 0.0 }
 0xe90   : > { %v4594_v55 = vmax.f32 %v4414_v63, 0.0  ;;  %v4596_v61 = vmax.f32 %v4527_v27, 0.0 }
 0xe91   : > { %v4633_v25 = vpack.c.bf16 %v4593_v12, %v4589_v39  ;;  %v4635_v38 = vpack.c.bf16 %v4595_v54, %v4591_v23 }
 0xe92   : > { %v4634_v37 = vpack.c.bf16 %v4594_v55, %v4590_v22  ;;  %v4636_v17 = vpack.c.bf16 %v4596_v61, %v4592_v5  ;;  %v4417_v11 = vpop.f32.mrb[120].mxu1  ;;  %v4530_v7 = vpop.f32.mrb[120].mxu0 }
 0xe93   : > { %v4418_v1 = vadd.f32 %v4417_v11, %v10222_v53  ;;  %v4531_v48 = vadd.f32 %v4530_v7, %v10224_v9  ;;  %v4419_v28 = vpop.f32.mrb[121].mxu1  ;;  %v4532_v24 = vpop.f32.mrb[121].mxu0 }
 0xe94   : > { %v4420_v43 = vadd.f32 %v4419_v28, %v10226_v59  ;;  %v4533_v49 = vadd.f32 %v4532_v24, %v10228_v4  ;;  %v4421_v21 = vpop.f32.mrb[122].mxu1  ;;  %v4534_v50 = vpop.f32.mrb[122].mxu0  ;;  %4980 = vmatprep.mubr.bf16.mxu1 %v4634_v37  ;;  %5077 = vmatprep.mubr.bf16.mxu0 %v4636_v17 }
 0xe95   : > { %v4422_v10 = vadd.f32 %v4421_v21, %v10222_v53  ;;  %v4535_v47 = vadd.f32 %v4534_v50, %v10224_v9  ;;  %v4423_v0 = vpop.f32.mrb[123].mxu1  ;;  %v4536_v2 = vpop.f32.mrb[123].mxu0  ;;  %4981 = vmatmul.mubr.bf16.gmra.mrb[148].mxu1 %v4633_v25  ;;  %5078 = vmatmul.mubr.bf16.gmra.mrb[148].mxu0 %v4635_v38  ;;  %v4597_v52 = vmax.f32 %v4418_v1, 0.0  ;;  %v4599_v3 = vmax.f32 %v4531_v48, 0.0 }
 0xe96   : > { %v4424_v31 = vadd.f32 %v4423_v0, %v10226_v59  ;;  %v4537_v15 = vadd.f32 %v4536_v2, %v10228_v4  ;;  %v4598_v32 = vmax.f32 %v4420_v43, 0.0  ;;  %v4600_v46 = vmax.f32 %v4533_v49, 0.0 }
 0xe97   : > { %v4601_v26 = vmax.f32 %v4422_v10, 0.0  ;;  %v4603_v34 = vmax.f32 %v4535_v47, 0.0 }
 0xe98   : > { %v4602_v36 = vmax.f32 %v4424_v31, 0.0  ;;  %v4604_v62 = vmax.f32 %v4537_v15, 0.0 }
 0xe99   : > { %v4637_v58 = vpack.c.bf16 %v4601_v26, %v4597_v52  ;;  %v4639_v60 = vpack.c.bf16 %v4603_v34, %v4599_v3 }
 0xe9a   : > { %v4638_v35 = vpack.c.bf16 %v4602_v36, %v4598_v32  ;;  %v4640_v33 = vpack.c.bf16 %v4604_v62, %v4600_v46  ;;  %v4427_v30 = vpop.f32.mrb[124].mxu1  ;;  %v4540_v8 = vpop.f32.mrb[124].mxu0 }
 0xe9b   : > { %v4428_v63 = vadd.f32 %v4427_v30, %v10222_v53  ;;  %v4541_v27 = vadd.f32 %v4540_v8, %v10224_v9  ;;  %v4429_v39 = vpop.f32.mrb[125].mxu1  ;;  %v4542_v23 = vpop.f32.mrb[125].mxu0 }
 0xe9c   : > { %v4430_v12 = vadd.f32 %v4429_v39, %v10226_v59  ;;  %v4543_v54 = vadd.f32 %v4542_v23, %v10228_v4  ;;  %v4431_v22 = vpop.f32.mrb[126].mxu1  ;;  %v4544_v5 = vpop.f32.mrb[126].mxu0  ;;  %4988 = vmatprep.mubr.bf16.mxu1 %v4638_v35  ;;  %5085 = vmatprep.mubr.bf16.mxu0 %v4640_v33 }
 0xe9d   : > { %v4432_v55 = vadd.f32 %v4431_v22, %v10222_v53  ;;  %v4545_v61 = vadd.f32 %v4544_v5, %v10224_v9  ;;  %v4433_v25 = vpop.f32.mrb[127].mxu1  ;;  %v4546_v38 = vpop.f32.mrb[127].mxu0  ;;  %4989 = vmatmul.mubr.bf16.gmra.mrb[152].mxu1 %v4637_v58  ;;  %5086 = vmatmul.mubr.bf16.gmra.mrb[152].mxu0 %v4639_v60  ;;  %v4605_v11 = vmax.f32 %v4428_v63, 0.0  ;;  %v4607_v7 = vmax.f32 %v4541_v27, 0.0 }
 0xe9e   : > { %v4434_v37 = vadd.f32 %v4433_v25, %v10226_v59  ;;  %v4547_v17 = vadd.f32 %v4546_v38, %v10228_v4  ;;  %v4606_v28 = vmax.f32 %v4430_v12, 0.0  ;;  %v4608_v24 = vmax.f32 %v4543_v54, 0.0  ;;  %v10299_v4 = vld [vmem:[%s851_s9] ss:$0 sm:$0xff] }
 0xe9f   : > { %v4609_v1 = vmax.f32 %v4432_v55, 0.0  ;;  %v4611_v48 = vmax.f32 %v4545_v61, 0.0 }
 0xea0   : > { %v4610_v43 = vmax.f32 %v4434_v37, 0.0  ;;  %v4612_v49 = vmax.f32 %v4547_v17, 0.0 }
 0xea1   : > { %v4641_v53 = vpack.c.bf16 %v4609_v1, %v4605_v11  ;;  %v4643_v21 = vpack.c.bf16 %v4611_v48, %v4607_v7 }
 0xea2   : > { %v4642_v9 = vpack.c.bf16 %v4610_v43, %v4606_v28  ;;  %v4644_v50 = vpack.c.bf16 %v4612_v49, %v4608_v24 }
 0xea4   : > { %4996 = vmatprep.mubr.bf16.mxu1 %v4642_v9  ;;  %5093 = vmatprep.mubr.bf16.mxu0 %v4644_v50 }
 0xea5   : > { %4997 = vmatmul.mubr.bf16.gmra.mrb[156].mxu1 %v4641_v53  ;;  %5094 = vmatmul.mubr.bf16.gmra.mrb[156].mxu0 %v4643_v21 }
 0xf40   : > { %v6454_v59 = vpop.f32.mrb[128].mxu1  ;;  %v6518_v10 = vpop.f32.mrb[128].mxu0 }
 0xf41   : > { %v6455_v47 = vpop.f32.mrb[129].mxu1  ;;  %v6519_v0 = vpop.f32.mrb[129].mxu0 }
 0xf42   : > { %v6456_v2 = vadd.f32 %v6455_v47, %v6454_v59  ;;  %v6520_v31 = vadd.f32 %v6519_v0, %v6518_v10  ;;  %v6457_v15 = vpop.f32.mrb[130].mxu1  ;;  %v6521_v52 = vpop.f32.mrb[130].mxu0 }
 0xf43   : > { %v6458_v3 = vpop.f32.mrb[131].mxu1  ;;  %v6522_v26 = vpop.f32.mrb[131].mxu0 }
 0xf44   : > { %v4943_v34 = vadd.f32 %v6456_v2, %v10299_v4  ;;  %v6459_v32 = vadd.f32 %v6458_v3, %v6457_v15  ;;  %v6523_v46 = vadd.f32 %v6522_v26, %v6521_v52 }
 0xf46   : > { %v5040_v36 = vadd.f32 %v6520_v31, %v4943_v34  ;;  %v4946_v62 = vadd.f32 %v6459_v32, %v10299_v4 }
 0xf48   : > { %v5043_v58 = vadd.f32 %v6523_v46, %v4946_v62  ;;  %v6460_v60 = vpop.f32.mrb[132].mxu1  ;;  %v6524_v35 = vpop.f32.mrb[132].mxu0  ;;  %v10304_v33 = vadd.f32 %v5040_v36, %v10086_v56 }
 0xf49   : > { %v6461_v30 = vpop.f32.mrb[133].mxu1  ;;  %v6525_v8 = vpop.f32.mrb[133].mxu0 }
 0xf4a   : > { %v6462_v63 = vadd.f32 %v6461_v30, %v6460_v60  ;;  %v6526_v27 = vadd.f32 %v6525_v8, %v6524_v35  ;;  %v6463_v39 = vpop.f32.mrb[134].mxu1  ;;  %v6527_v23 = vpop.f32.mrb[134].mxu0  ;;  %5120 = vadd.xlane.f32.xlu1 %v10304_v33  ;;  %v10308_v12 = vadd.f32 %v5043_v58, %v10089_v29 }
 0xf4b   : > { %v6464_v54 = vpop.f32.mrb[135].mxu1  ;;  %v6528_v22 = vpop.f32.mrb[135].mxu0 }
 0xf4c   : > { %v4951_v5 = vadd.f32 %v6462_v63, %v10299_v4  ;;  %v6465_v55 = vadd.f32 %v6464_v54, %v6463_v39  ;;  %v6529_v61 = vadd.f32 %v6528_v22, %v6527_v23  ;;  %5122 = vadd.xlane.f32.xlu0 %v10308_v12 }
 0xf4e   : > { %v5048_v56 = vadd.f32 %v6526_v27, %v4951_v5  ;;  %v4954_v25 = vadd.f32 %v6465_v55, %v10299_v4 }
 0xf50   : > { %v5051_v38 = vadd.f32 %v6529_v61, %v4954_v25  ;;  %v6466_v37 = vpop.f32.mrb[136].mxu1  ;;  %v6530_v17 = vpop.f32.mrb[136].mxu0  ;;  %v10314_v11 = vadd.f32 %v5048_v56, %v10112_v20 }
 0xf51   : > { %v6467_v7 = vpop.f32.mrb[137].mxu1  ;;  %v6531_v29 = vpop.f32.mrb[137].mxu0 }
 0xf52   : > { %v6468_v1 = vadd.f32 %v6467_v7, %v6466_v37  ;;  %v6532_v48 = vadd.f32 %v6531_v29, %v6530_v17  ;;  %v6469_v28 = vpop.f32.mrb[138].mxu1  ;;  %v6533_v24 = vpop.f32.mrb[138].mxu0  ;;  %5124 = vadd.xlane.f32.xlu1 %v10314_v11  ;;  %v10318_v43 = vadd.f32 %v5051_v38, %v10104_v44 }
 0xf53   : > { %v6470_v49 = vpop.f32.mrb[139].mxu1  ;;  %v6534_v53 = vpop.f32.mrb[139].mxu0 }
 0xf54   : > { %v4959_v21 = vadd.f32 %v6468_v1, %v10299_v4  ;;  %v6471_v9 = vadd.f32 %v6470_v49, %v6469_v28  ;;  %v6535_v50 = vadd.f32 %v6534_v53, %v6533_v24  ;;  %5126 = vadd.xlane.f32.xlu0 %v10318_v43 }
 0xf56   : > { %v5056_v20 = vadd.f32 %v6532_v48, %v4959_v21  ;;  %v4962_v59 = vadd.f32 %v6471_v9, %v10299_v4 }
 0xf58   : > { %v5059_v10 = vadd.f32 %v6535_v50, %v4962_v59  ;;  %v6472_v47 = vpop.f32.mrb[140].mxu1  ;;  %v6536_v0 = vpop.f32.mrb[140].mxu0  ;;  %v10324_v2 = vadd.f32 %v5056_v20, %v10134_v57 }
 0xf59   : > { %v6473_v31 = vpop.f32.mrb[141].mxu1  ;;  %v6537_v44 = vpop.f32.mrb[141].mxu0 }
 0xf5a   : > { %v6474_v15 = vadd.f32 %v6473_v31, %v6472_v47  ;;  %v6538_v52 = vadd.f32 %v6537_v44, %v6536_v0  ;;  %v6475_v3 = vpop.f32.mrb[142].mxu1  ;;  %v6539_v26 = vpop.f32.mrb[142].mxu0  ;;  %5128 = vadd.xlane.f32.xlu1 %v10324_v2  ;;  %v10328_v34 = vadd.f32 %v5059_v10, %v10126_v45 }
 0xf5b   : > { %v6476_v32 = vpop.f32.mrb[143].mxu1  ;;  %v6540_v46 = vpop.f32.mrb[143].mxu0 }
 0xf5c   : > { %v4967_v36 = vadd.f32 %v6474_v15, %v10299_v4  ;;  %v6477_v62 = vadd.f32 %v6476_v32, %v6475_v3  ;;  %v6541_v58 = vadd.f32 %v6540_v46, %v6539_v26  ;;  %5130 = vadd.xlane.f32.xlu0 %v10328_v34 }
 0xf5e   : > { %v5064_v57 = vadd.f32 %v6538_v52, %v4967_v36  ;;  %v4970_v60 = vadd.f32 %v6477_v62, %v10299_v4 }
 0xf60   : > { %v5067_v35 = vadd.f32 %v6541_v58, %v4970_v60  ;;  %v6478_v30 = vpop.f32.mrb[144].mxu1  ;;  %v6542_v8 = vpop.f32.mrb[144].mxu0  ;;  %v10334_v63 = vadd.f32 %v5064_v57, %v10155_v19 }
 0xf61   : > { %v6479_v27 = vpop.f32.mrb[145].mxu1  ;;  %v6543_v45 = vpop.f32.mrb[145].mxu0 }
 0xf62   : > { %v6480_v39 = vadd.f32 %v6479_v27, %v6478_v30  ;;  %v6544_v23 = vadd.f32 %v6543_v45, %v6542_v8  ;;  %v6481_v54 = vpop.f32.mrb[146].mxu1  ;;  %v6545_v22 = vpop.f32.mrb[146].mxu0  ;;  %5132 = vadd.xlane.f32.xlu1 %v10334_v63  ;;  %v10338_v5 = vadd.f32 %v5067_v35, %v10148_v18 }
 0xf63   : > { %v6482_v55 = vpop.f32.mrb[147].mxu1  ;;  %v6546_v61 = vpop.f32.mrb[147].mxu0 }
 0xf64   : > { %v4975_v56 = vadd.f32 %v6480_v39, %v10299_v4  ;;  %v6483_v25 = vadd.f32 %v6482_v55, %v6481_v54  ;;  %v6547_v38 = vadd.f32 %v6546_v61, %v6545_v22  ;;  %5134 = vadd.xlane.f32.xlu0 %v10338_v5 }
 0xf66   : > { %v5072_v19 = vadd.f32 %v6544_v23, %v4975_v56  ;;  %v4978_v37 = vadd.f32 %v6483_v25, %v10299_v4 }
 0xf68   : > { %v5075_v17 = vadd.f32 %v6547_v38, %v4978_v37  ;;  %v6484_v7 = vpop.f32.mrb[148].mxu1  ;;  %v6548_v29 = vpop.f32.mrb[148].mxu0  ;;  %v10344_v1 = vadd.f32 %v5072_v19, %v10172_v6 }
 0xf69   : > { %v6485_v48 = vpop.f32.mrb[149].mxu1  ;;  %v6549_v18 = vpop.f32.mrb[149].mxu0 }
 0xf6a   : > { %v6486_v28 = vadd.f32 %v6485_v48, %v6484_v7  ;;  %v6550_v24 = vadd.f32 %v6549_v18, %v6548_v29  ;;  %v6487_v49 = vpop.f32.mrb[150].mxu1  ;;  %v6551_v53 = vpop.f32.mrb[150].mxu0  ;;  %5136 = vadd.xlane.f32.xlu1 %v10344_v1  ;;  %v10348_v21 = vadd.f32 %v5075_v17, %v10168_v14 }
 0xf6b   : > { %v6488_v9 = vpop.f32.mrb[151].mxu1  ;;  %v6552_v50 = vpop.f32.mrb[151].mxu0 }
 0xf6c   : > { %v4983_v20 = vadd.f32 %v6486_v28, %v10299_v4  ;;  %v6489_v59 = vadd.f32 %v6488_v9, %v6487_v49  ;;  %v6553_v10 = vadd.f32 %v6552_v50, %v6551_v53  ;;  %5138 = vadd.xlane.f32.xlu0 %v10348_v21 }
 0xf6e   : > { %v5080_v6 = vadd.f32 %v6550_v24, %v4983_v20  ;;  %v4986_v47 = vadd.f32 %v6489_v59, %v10299_v4 }
 0xf70   : > { %v5083_v0 = vadd.f32 %v6553_v10, %v4986_v47  ;;  %v6490_v31 = vpop.f32.mrb[152].mxu1  ;;  %v6554_v44 = vpop.f32.mrb[152].mxu0  ;;  %v10354_v15 = vadd.f32 %v5080_v6, %v10186_v41 }
 0xf71   : > { %v6491_v52 = vpop.f32.mrb[153].mxu1  ;;  %v6555_v14 = vpop.f32.mrb[153].mxu0 }
 0xf72   : > { %v6492_v3 = vadd.f32 %v6491_v52, %v6490_v31  ;;  %v6556_v26 = vadd.f32 %v6555_v14, %v6554_v44  ;;  %v6493_v32 = vpop.f32.mrb[154].mxu1  ;;  %v6557_v46 = vpop.f32.mrb[154].mxu0  ;;  %5140 = vadd.xlane.f32.xlu1 %v10354_v15  ;;  %v10358_v36 = vadd.f32 %v5083_v0, %v10182_v42 }
 0xf73   : > { %v6494_v62 = vpop.f32.mrb[155].mxu1  ;;  %v6558_v58 = vpop.f32.mrb[155].mxu0 }
 0xf74   : > { %v4991_v57 = vadd.f32 %v6492_v3, %v10299_v4  ;;  %v6495_v60 = vadd.f32 %v6494_v62, %v6493_v32  ;;  %v6559_v35 = vadd.f32 %v6558_v58, %v6557_v46  ;;  %5142 = vadd.xlane.f32.xlu0 %v10358_v36 }
 0xf76   : > { %v5088_v41 = vadd.f32 %v6556_v26, %v4991_v57  ;;  %v4994_v30 = vadd.f32 %v6495_v60, %v10299_v4 }
 0xf78   : > { %v5091_v8 = vadd.f32 %v6559_v35, %v4994_v30  ;;  %v6496_v27 = vpop.f32.mrb[156].mxu1  ;;  %v6560_v45 = vpop.f32.mrb[156].mxu0  ;;  %v10364_v39 = vadd.f32 %v5088_v41, %v10200_v16 }
 0xf79   : > { %v6497_v23 = vpop.f32.mrb[157].mxu1  ;;  %v6561_v42 = vpop.f32.mrb[157].mxu0 }
 0xf7a   : > { %v6498_v54 = vadd.f32 %v6497_v23, %v6496_v27  ;;  %v6562_v22 = vadd.f32 %v6561_v42, %v6560_v45  ;;  %v6563_v55 = vpop.f32.mrb[158].mxu0  ;;  %5144 = vadd.xlane.f32.xlu1 %v10364_v39  ;;  %v6499_v61 = vpop.f32.mrb[158].mxu1  ;;  %v10368_v56 = vadd.f32 %v5091_v8, %v10196_v13 }
 0xf7b   : > { %v6500_v25 = vpop.f32.mrb[159].mxu1  ;;  %v6564_v38 = vpop.f32.mrb[159].mxu0 }
 0xf7c   : > { %v4999_v19 = vadd.f32 %v6498_v54, %v10299_v4  ;;  %v6501_v37 = vadd.f32 %v6500_v25, %v6499_v61  ;;  %v6565_v17 = vadd.f32 %v6564_v38, %v6563_v55  ;;  %5146 = vadd.xlane.f32.xlu0 %v10368_v56 }
 0xf7e   : > { %v5096_v16 = vadd.f32 %v6562_v22, %v4999_v19  ;;  %v5002_v7 = vadd.f32 %v6501_v37, %v10299_v4 }
 0xf80   : > { %v5099_v29 = vadd.f32 %v6565_v17, %v5002_v7  ;;  %v10374_v48 = vadd.f32 %v5096_v16, %v10213_v40 }
 0xf82   : > { %5148 = vadd.xlane.f32.xlu1 %v10374_v48  ;;  %v10378_v13 = vadd.f32 %v5099_v29, %v10210_v51 }
 0xf84   : > { %5150 = vadd.xlane.f32.xlu0 %v10378_v13 }
 0xfd7   : > { %v5121_v18 = vpop.xlane.xlu1 %5120 }
 0xfd8   : > { %v5152_v28 = vmul.f32 0.0078125, %v5121_v18 }
 0xfd9   : > { %v5123_v24 = vpop.xlane.xlu0 %5122 }
 0xfda   : > { %v10382_v49 = vsub.f32 %v10304_v33, %v5152_v28  ;;  %v5153_v53 = vmul.f32 0.0078125, %v5123_v24 }
 0xfdc   : > { %v10385_v4 = vsub.f32 %v10308_v12, %v5153_v53  ;;  %v5184_v40 = vmul.f32 %v10382_v49, %v10382_v49 }
 0xfde   : > { %5200 = vadd.xlane.f32.xlu1 %v5184_v40  ;;  %v5185_v51 = vmul.f32 %v10385_v4, %v10385_v4 }
 0xfdf   : > { %v5125_v9 = vpop.xlane.xlu1 %5124 }
 0xfe0   : > { %v5154_v50 = vmul.f32 0.0078125, %v5125_v9  ;;  %5202 = vadd.xlane.f32.xlu0 %v5185_v51 }
 0xfe1   : > { %v5127_v20 = vpop.xlane.xlu0 %5126 }
 0xfe2   : > { %v10392_v59 = vsub.f32 %v10314_v11, %v5154_v50  ;;  %v5155_v33 = vmul.f32 0.0078125, %v5127_v20 }
 0xfe4   : > { %v10395_v10 = vsub.f32 %v10318_v43, %v5155_v33  ;;  %v5186_v12 = vmul.f32 %v10392_v59, %v10392_v59 }
 0xfe6   : > { %5204 = vadd.xlane.f32.xlu1 %v5186_v12  ;;  %v5187_v6 = vmul.f32 %v10395_v10, %v10395_v10 }
 0xfe7   : > { %v5129_v47 = vpop.xlane.xlu1 %5128 }
 0xfe8   : > { %v5156_v0 = vmul.f32 0.0078125, %v5129_v47  ;;  %5206 = vadd.xlane.f32.xlu0 %v5187_v6 }
 0xfe9   : > { %v5131_v31 = vpop.xlane.xlu0 %5130 }
 0xfea   : > { %v10402_v44 = vsub.f32 %v10324_v2, %v5156_v0  ;;  %v5157_v11 = vmul.f32 0.0078125, %v5131_v31  ;;  %v10466_v0 = vld [vmem:[%s854_s18] ss:$0 sm:$0xff]  ;;  %s11075_s18 = sld [smem:[#allocation22_spill]] }
 0xfec   : > { %v10405_v52 = vsub.f32 %v10328_v34, %v5157_v11  ;;  %v5188_v43 = vmul.f32 %v10402_v44, %v10402_v44 }
 0xfee   : > { %5208 = vadd.xlane.f32.xlu1 %v5188_v43  ;;  %v5189_v14 = vmul.f32 %v10405_v52, %v10405_v52 }
 0xfef   : > { %v5133_v3 = vpop.xlane.xlu1 %5132 }
 0xff0   : > { %v5158_v26 = vmul.f32 0.0078125, %v5133_v3  ;;  %5210 = vadd.xlane.f32.xlu0 %v5189_v14  ;;  %v10474_v14 = vld [vmem:[%s857_s29] ss:$0 sm:$0xff]  ;;  %p6232_p5 = scmp.ne.s32.totalorder %s11075_s18, 1 }
 0xff1   : > { %v5135_v32 = vpop.xlane.xlu0 %5134  ;;  %s11076_s22 = sld [smem:[#allocation73_spill]] (!%p6232_p5)  ;;  %s11077_s23 = sld [smem:[#allocation74_spill]] (!%p6232_p5) }
 0xff2   : > { %v10412_v46 = vsub.f32 %v10334_v63, %v5158_v26  ;;  %v5159_v2 = vmul.f32 0.0078125, %v5135_v32  ;;  %s11078_s1 = sld [smem:[#allocation76_spill]] (!%p6232_p5) }
 0xff4   : > { %v10415_v62 = vsub.f32 %v10338_v5, %v5159_v2  ;;  %v5190_v34 = vmul.f32 %v10412_v46, %v10412_v46 }
 0xff6   : > { %5212 = vadd.xlane.f32.xlu1 %v5190_v34  ;;  %v5191_v58 = vmul.f32 %v10415_v62, %v10415_v62 }
 0xff7   : > { %v5137_v57 = vpop.xlane.xlu1 %5136 }
 0xff8   : > { %v5160_v60 = vmul.f32 0.0078125, %v5137_v57  ;;  %5214 = vadd.xlane.f32.xlu0 %v5191_v58 }
 0xff9   : > { %v5139_v35 = vpop.xlane.xlu0 %5138 }
 0xffa   : > { %v10422_v41 = vsub.f32 %v10344_v1, %v5160_v60  ;;  %v5161_v63 = vmul.f32 0.0078125, %v5139_v35 }
 0xffc   : > { %v10425_v30 = vsub.f32 %v10348_v21, %v5161_v63  ;;  %v5192_v5 = vmul.f32 %v10422_v41, %v10422_v41 }
 0xffe   : > { %5216 = vadd.xlane.f32.xlu1 %v5192_v5  ;;  %v5193_v8 = vmul.f32 %v10425_v30, %v10425_v30 }
 0xfff   : > { %v5141_v27 = vpop.xlane.xlu1 %5140 }
0x1000   : > { %v5162_v45 = vmul.f32 0.0078125, %v5141_v27  ;;  %5218 = vadd.xlane.f32.xlu0 %v5193_v8 }
0x1001   : > { %v5143_v23 = vpop.xlane.xlu0 %5142 }
0x1002   : > { %v10432_v42 = vsub.f32 %v10354_v15, %v5162_v45  ;;  %v5163_v1 = vmul.f32 0.0078125, %v5143_v23 }
0x1004   : > { %v10435_v54 = vsub.f32 %v10358_v36, %v5163_v1  ;;  %v5194_v21 = vmul.f32 %v10432_v42, %v10432_v42 }
0x1006   : > { %5220 = vadd.xlane.f32.xlu1 %v5194_v21  ;;  %v5195_v22 = vmul.f32 %v10435_v54, %v10435_v54 }
0x1007   : > { %v5145_v55 = vpop.xlane.xlu1 %5144 }
0x1008   : > { %v5164_v61 = vmul.f32 0.0078125, %v5145_v55  ;;  %5222 = vadd.xlane.f32.xlu0 %v5195_v22 }
0x1009   : > { %v5147_v25 = vpop.xlane.xlu0 %5146 }
0x100a   : > { %v10442_v38 = vsub.f32 %v10364_v39, %v5164_v61  ;;  %v5165_v15 = vmul.f32 0.0078125, %v5147_v25 }
0x100c   : > { %v10445_v19 = vsub.f32 %v10368_v56, %v5165_v15  ;;  %v5196_v36 = vmul.f32 %v10442_v38, %v10442_v38 }
0x100e   : > { %5224 = vadd.xlane.f32.xlu1 %v5196_v36  ;;  %v5197_v37 = vmul.f32 %v10445_v19, %v10445_v19 }
0x100f   : > { %v5149_v17 = vpop.xlane.xlu1 %5148 }
0x1010   : > { %v5166_v16 = vmul.f32 0.0078125, %v5149_v17  ;;  %5226 = vadd.xlane.f32.xlu0 %v5197_v37 }
0x1011   : > { %v5151_v7 = vpop.xlane.xlu0 %5150 }
0x1012   : > { %v10452_v29 = vsub.f32 %v10374_v48, %v5166_v16  ;;  %v5167_v39 = vmul.f32 0.0078125, %v5151_v7 }
0x1014   : > { %v10455_v18 = vsub.f32 %v10378_v13, %v5167_v39  ;;  %v5198_v56 = vmul.f32 %v10452_v29, %v10452_v29 }
0x1016   : > { %5228 = vadd.xlane.f32.xlu1 %v5198_v56  ;;  %v5199_v28 = vmul.f32 %v10455_v18, %v10455_v18 }
0x1018   : > { %5230 = vadd.xlane.f32.xlu0 %v5199_v28 }
0x106b   : > { %v5201_v24 = vpop.xlane.xlu1 %5200 }
0x106c   : > { %v5232_v53 = vmul.f32 0.0078125, %v5201_v24 }
0x106d   : > { %v5203_v40 = vpop.xlane.xlu0 %5202 }
0x106e   : > { %v5248_v51 = vadd.f32 1e-05, %v5232_v53  ;;  %v5233_v9 = vmul.f32 0.0078125, %v5203_v40 }
0x1070   : > { %7646 = vrsqrt.f32 %v5248_v51  ;;  %v5249_v48 = vadd.f32 1e-05, %v5233_v9 }
0x1072   : > { %7648 = vrsqrt.f32 %v5249_v48 }
0x1073   : > { %v5205_v13 = vpop.xlane.xlu1 %5204 }
0x1074   : > { %v5234_v50 = vmul.f32 0.0078125, %v5205_v13 }
0x1075   : > { %v5207_v20 = vpop.xlane.xlu0 %5206 }
0x1076   : > { %v5250_v33 = vadd.f32 1e-05, %v5234_v50  ;;  %v5235_v12 = vmul.f32 0.0078125, %v5207_v20 }
0x1078   : > { %7650 = vrsqrt.f32 %v5250_v33  ;;  %v5251_v6 = vadd.f32 1e-05, %v5235_v12 }
0x107a   : > { %v7647_v47 = vpop.eup %7646  ;;  %7652 = vrsqrt.f32 %v5251_v6 }
0x107b   : > { %v5280_v31 = vmul.f32 %v7647_v47, %v10382_v49  ;;  %v5209_v11 = vpop.xlane.xlu1 %5208 }
0x107c   : > { %v7649_v43 = vpop.eup %7648  ;;  %v5236_v3 = vmul.f32 0.0078125, %v5209_v11 }
0x107d   : > { %v5302_v26 = vmul.f32 %v10466_v0, %v5280_v31  ;;  %v5281_v32 = vmul.f32 %v7649_v43, %v10385_v4  ;;  %v5211_v2 = vpop.xlane.xlu0 %5210 }
0x107e   : > { %v5252_v34 = vadd.f32 1e-05, %v5236_v3  ;;  %v5237_v58 = vmul.f32 0.0078125, %v5211_v2 }
0x107f   : > { %v10479_v57 = vadd.f32 %v10474_v14, %v5302_v26  ;;  %v5303_v49 = vmul.f32 %v10466_v0, %v5281_v32 }
0x1080   : > { %7654 = vrsqrt.f32 %v5252_v34  ;;  %v5253_v60 = vadd.f32 1e-05, %v5237_v58 }
0x1081   : > { %5340 = vst [vmem:[#allocation2] sm:$0xff] %v10479_v57  ;;  %v10484_v35 = vadd.f32 %v10474_v14, %v5303_v49  ;;  %5362 = vadd.xlane.f32.xlu0 (!%p6232_p5), %v10479_v57 }
0x1082   : > { %v7651_v63 = vpop.eup %7650  ;;  %7656 = vrsqrt.f32 %v5253_v60 }
0x1083   : > { %5341 = vst [vmem:[#allocation2 + $0x8] sm:$0xff] %v10484_v35  ;;  %v5282_v4 = vmul.f32 %v7651_v63, %v10392_v59  ;;  %v5213_v5 = vpop.xlane.xlu1 %5212 }
0x1084   : > { %v7653_v8 = vpop.eup %7652  ;;  %v5238_v27 = vmul.f32 0.0078125, %v5213_v5 }
0x1085   : > { %v5304_v45 = vmul.f32 %v10466_v0, %v5282_v4  ;;  %v5283_v23 = vmul.f32 %v7653_v8, %v10395_v10  ;;  %v5215_v1 = vpop.xlane.xlu0 %5214  ;;  %5364 = vadd.xlane.f32.xlu0 (!%p6232_p5), %v10484_v35 }
0x1086   : > { %v5254_v21 = vadd.f32 1e-05, %v5238_v27  ;;  %v5239_v22 = vmul.f32 0.0078125, %v5215_v1 }
0x1087   : > { %v10491_v55 = vadd.f32 %v10474_v14, %v5304_v45  ;;  %v5305_v61 = vmul.f32 %v10466_v0, %v5283_v23 }
0x1088   : > { %7658 = vrsqrt.f32 %v5254_v21  ;;  %v5255_v25 = vadd.f32 1e-05, %v5239_v22 }
0x1089   : > { %5342 = vst [vmem:[#allocation2 + $0x10] sm:$0xff] %v10491_v55  ;;  %v10496_v59 = vadd.f32 %v10474_v14, %v5305_v61  ;;  %5366 = vadd.xlane.f32.xlu0 (!%p6232_p5), %v10491_v55 }
0x108a   : > { %v7655_v15 = vpop.eup %7654  ;;  %7660 = vrsqrt.f32 %v5255_v25 }
0x108b   : > { %5343 = vst [vmem:[#allocation2 + $0x18] sm:$0xff] %v10496_v59  ;;  %v5284_v10 = vmul.f32 %v7655_v15, %v10402_v44  ;;  %v5217_v36 = vpop.xlane.xlu1 %5216 }
0x108c   : > { %v7657_v37 = vpop.eup %7656  ;;  %v5240_v17 = vmul.f32 0.0078125, %v5217_v36 }
0x108d   : > { %v5306_v16 = vmul.f32 %v10466_v0, %v5284_v10  ;;  %v5285_v7 = vmul.f32 %v7657_v37, %v10405_v52  ;;  %v5219_v39 = vpop.xlane.xlu0 %5218 }
0x108e   : > { %v5256_v56 = vadd.f32 1e-05, %v5240_v17  ;;  %v5241_v28 = vmul.f32 0.0078125, %v5219_v39 }
0x108f   : > { %v10503_v24 = vadd.f32 %v10474_v14, %v5306_v16  ;;  %v5307_v53 = vmul.f32 %v10466_v0, %v5285_v7 }
0x1090   : > { %7662 = vrsqrt.f32 %v5256_v56  ;;  %v5257_v40 = vadd.f32 1e-05, %v5241_v28 }
0x1091   : > { %5344 = vst [vmem:[#allocation2 + $0x20] sm:$0xff] %v10503_v24  ;;  %v10508_v44 = vadd.f32 %v10474_v14, %v5307_v53 }
0x1092   : > { %v7659_v51 = vpop.eup %7658  ;;  %7664 = vrsqrt.f32 %v5257_v40 }
0x1093   : > { %5345 = vst [vmem:[#allocation2 + $0x28] sm:$0xff] %v10508_v44  ;;  %v5286_v52 = vmul.f32 %v7659_v51, %v10412_v46  ;;  %v5221_v9 = vpop.xlane.xlu1 %5220 }
0x1094   : > { %v7661_v48 = vpop.eup %7660  ;;  %v5242_v13 = vmul.f32 0.0078125, %v5221_v9 }
0x1095   : > { %v5308_v50 = vmul.f32 %v10466_v0, %v5286_v52  ;;  %v5287_v20 = vmul.f32 %v7661_v48, %v10415_v62  ;;  %v5223_v33 = vpop.xlane.xlu0 %5222 }
0x1096   : > { %v5258_v12 = vadd.f32 1e-05, %v5242_v13  ;;  %v5243_v6 = vmul.f32 0.0078125, %v5223_v33 }
0x1097   : > { %v10515_v47 = vadd.f32 %v10474_v14, %v5308_v50  ;;  %v5309_v31 = vmul.f32 %v10466_v0, %v5287_v20 }
0x1098   : > { %7666 = vrsqrt.f32 %v5258_v12  ;;  %v5259_v11 = vadd.f32 1e-05, %v5243_v6 }
0x1099   : > { %5346 = vst [vmem:[#allocation2 + $0x30] sm:$0xff] %v10515_v47  ;;  %v10520_v46 = vadd.f32 %v10474_v14, %v5309_v31 }
0x109a   : > { %v7663_v43 = vpop.eup %7662  ;;  %7668 = vrsqrt.f32 %v5259_v11 }
0x109b   : > { %5347 = vst [vmem:[#allocation2 + $0x38] sm:$0xff] %v10520_v46  ;;  %v5288_v62 = vmul.f32 %v7663_v43, %v10422_v41  ;;  %v5225_v3 = vpop.xlane.xlu1 %5224 }
0x109c   : > { %v7665_v26 = vpop.eup %7664  ;;  %v5244_v32 = vmul.f32 0.0078125, %v5225_v3 }
0x109d   : > { %v5310_v2 = vmul.f32 %v10466_v0, %v5288_v62  ;;  %v5289_v34 = vmul.f32 %v7665_v26, %v10425_v30  ;;  %v5227_v58 = vpop.xlane.xlu0 %5226 }
0x109e   : > { %v5260_v49 = vadd.f32 1e-05, %v5244_v32  ;;  %v5245_v60 = vmul.f32 0.0078125, %v5227_v58 }
0x109f   : > { %v10527_v63 = vadd.f32 %v10474_v14, %v5310_v2  ;;  %v5311_v4 = vmul.f32 %v10466_v0, %v5289_v34 }
0x10a0   : > { %7670 = vrsqrt.f32 %v5260_v49  ;;  %v5261_v5 = vadd.f32 1e-05, %v5245_v60 }
0x10a1   : > { %5348 = vst [vmem:[#allocation2 + $0x40] sm:$0xff] %v10527_v63  ;;  %v10532_v41 = vadd.f32 %v10474_v14, %v5311_v4  ;;  %5378 = vadd.xlane.f32.xlu1 (!%p6232_p5), %v10527_v63 }
0x10a2   : > { %v7667_v8 = vpop.eup %7666  ;;  %7672 = vrsqrt.f32 %v5261_v5 }
0x10a3   : > { %5349 = vst [vmem:[#allocation2 + $0x48] sm:$0xff] %v10532_v41  ;;  %v5290_v30 = vmul.f32 %v7667_v8, %v10432_v42  ;;  %v5229_v27 = vpop.xlane.xlu1 %5228 }
0x10a4   : > { %v7669_v45 = vpop.eup %7668  ;;  %v5246_v23 = vmul.f32 0.0078125, %v5229_v27 }
0x10a5   : > { %v5312_v1 = vmul.f32 %v10466_v0, %v5290_v30  ;;  %v5291_v21 = vmul.f32 %v7669_v45, %v10435_v54  ;;  %v5231_v22 = vpop.xlane.xlu0 %5230  ;;  %5380 = vadd.xlane.f32.xlu1 (!%p6232_p5), %v10532_v41 }
0x10a6   : > { %v5262_v61 = vadd.f32 1e-05, %v5246_v23  ;;  %v5247_v25 = vmul.f32 0.0078125, %v5231_v22 }
0x10a7   : > { %v10539_v15 = vadd.f32 %v10474_v14, %v5312_v1  ;;  %v5313_v10 = vmul.f32 %v10466_v0, %v5291_v21 }
0x10a8   : > { %7674 = vrsqrt.f32 %v5262_v61  ;;  %v5263_v36 = vadd.f32 1e-05, %v5247_v25 }
0x10a9   : > { %5350 = vst [vmem:[#allocation2 + $0x50] sm:$0xff] %v10539_v15  ;;  %v10544_v42 = vadd.f32 %v10474_v14, %v5313_v10  ;;  %5368 = vadd.xlane.f32.xlu1 (!%p6232_p5), %v10496_v59  ;;  %5382 = vadd.xlane.f32.xlu0 (!%p6232_p5), %v10539_v15 }
0x10aa   : > { %v7671_v37 = vpop.eup %7670  ;;  %7676 = vrsqrt.f32 %v5263_v36 }
0x10ab   : > { %5351 = vst [vmem:[#allocation2 + $0x58] sm:$0xff] %v10544_v42  ;;  %v5292_v54 = vmul.f32 %v7671_v37, %v10442_v38  ;;  %v7710_v37 = vld [vmem:[#allocation12] sm:$0xff] (!%p6232_p5)  }
0x10ac   : > { %v7673_v17 = vpop.eup %7672  ;;  %6950 = vmatprep.subr.bf16.mxu0 (!%p6232_p5), %v7710_v37  ;;  %7030 = vmatprep.subr.bf16.mxu1 (!%p6232_p5), %v7710_v37 }
0x10ad   : > { %v5314_v16 = vmul.f32 %v10466_v0, %v5292_v54  ;;  %v5293_v7 = vmul.f32 %v7673_v17, %v10445_v19  ;;  %5384 = vadd.xlane.f32.xlu1 (!%p6232_p5), %v10544_v42  ;;  %5370 = vadd.xlane.f32.xlu0 (!%p6232_p5), %v10503_v24 }
0x10ae   : > { %6951 = vmatpush3.bf16.msra.mxu0 (!%p6232_p5), %v7710_v37  ;;  %7038 = vmatpush3.bf16.msra.mxu1 (!%p6232_p5), %v7710_v37 }
0x10af   : > { %v10551_v39 = vadd.f32 %v10474_v14, %v5314_v16  ;;  %v5315_v56 = vmul.f32 %v10466_v0, %v5293_v7 }
0x10b1   : > { %5352 = vst [vmem:[#allocation2 + $0x60] sm:$0xff] %v10551_v39  ;;  %v10556_v28 = vadd.f32 %v10474_v14, %v5315_v56  ;;  %5372 = vadd.xlane.f32.xlu1 (!%p6232_p5), %v10508_v44  ;;  %5386 = vadd.xlane.f32.xlu0 (!%p6232_p5), %v10551_v39 }
0x10b2   : > { %v7675_v53 = vpop.eup %7674 }
0x10b3   : > { %5353 = vst [vmem:[#allocation2 + $0x68] sm:$0xff] %v10556_v28  ;;  %v5294_v38 = vmul.f32 %v7675_v53, %v10452_v29 }
0x10b4   : > { %v7677_v40 = vpop.eup %7676 }
0x10b5   : > { %v5316_v51 = vmul.f32 %v10466_v0, %v5294_v38  ;;  %v5295_v19 = vmul.f32 %v7677_v40, %v10455_v18  ;;  %5359 = sbr.rel (%p6232_p5) target bundleno = 4816 (0x12d0), region = 124  ;;  %5388 = vadd.xlane.f32.xlu1 (!%p6232_p5), %v10556_v28  ;;  %5374 = vadd.xlane.f32.xlu0 (!%p6232_p5), %v10515_v47  ;;  %v7711_v38 = vld [vmem:[#allocation12 + $0x8] sm:$0xff] (!%p6232_p5)  }
0x10b6   : > { %6952 = vmatprep.subr.bf16.mxu0 (!%p6232_p5), %v7711_v38  ;;  %7031 = vmatprep.subr.bf16.mxu1 (!%p6232_p5), %v7711_v38 }
0x10b7   : > { %v10563_v52 = vadd.f32 %v10474_v14, %v5316_v51  ;;  %v5317_v9 = vmul.f32 %v10466_v0, %v5295_v19  ;;  %6953 = vmatpush3.bf16.msra.mxu0 (!%p6232_p5), %v7711_v38  ;;  %7039 = vmatpush3.bf16.msra.mxu1 (!%p6232_p5), %v7711_v38 }
0x10b9   : > { %5354 = vst [vmem:[#allocation2 + $0x70] sm:$0xff] %v10563_v52  ;;  %v10568_v48 = vadd.f32 %v10474_v14, %v5317_v9  ;;  %5376 = vadd.xlane.f32.xlu1 (!%p6232_p5), %v10520_v46  ;;  %5390 = vadd.xlane.f32.xlu0 (!%p6232_p5), %v10563_v52 }
0x10bb   : > { %5355 = vst [vmem:[#allocation2 + $0x78] sm:$0xff] %v10568_v48 }
0x10bd   : > { %5392 = vadd.xlane.f32.xlu1 %v10568_v48 }
0x110e   : > { %v5363_v29 = vpop.xlane.xlu0 %5362 }
0x110f   : > { %v5394_v0 = vmul.f32 0.0078125, %v5363_v29 }
0x1111   : > { %v10589_v13 = vsub.f32 %v10479_v57, %v5394_v0  ;;  %v7712_v0 = vld [vmem:[#allocation12 + $0x10] sm:$0xff]  }
0x1112   : > { %v5365_v20 = vpop.xlane.xlu0 %5364  ;;  %6954 = vmatprep.subr.bf16.mxu0 %v7712_v0  ;;  %7032 = vmatprep.subr.bf16.mxu1 %v7712_v0 }
0x1113   : > { %v5395_v12 = vmul.f32 0.0078125, %v5365_v20  ;;  %v5426_v6 = vmul.f32 %v10589_v13, %v10589_v13  ;;  %6955 = vmatpush3.bf16.msra.mxu0 %v7712_v0  ;;  %7040 = vmatpush3.bf16.msra.mxu1 %v7712_v0  ;;  %v7713_v20 = vld [vmem:[#allocation12 + $0x18] sm:$0xff]  }
0x1114   : > { %6956 = vmatprep.subr.bf16.mxu0 %v7713_v20  ;;  %7033 = vmatprep.subr.bf16.mxu1 %v7713_v20 }
0x1115   : > { %v10597_v11 = vsub.f32 %v10484_v35, %v5395_v12  ;;  %5442 = vadd.xlane.f32.xlu0 %v5426_v6  ;;  %v7716_v12 = vld [vmem:[#allocation12 + $0x30] sm:$0xff]   ;;  %v7717_v6 = vld [vmem:[#allocation12 + $0x38] sm:$0xff]  }
0x1116   : > { %v5367_v62 = vpop.xlane.xlu0 %5366 }
0x1117   : > { %v5396_v26 = vmul.f32 0.0078125, %v5367_v62  ;;  %v5427_v32 = vmul.f32 %v10597_v11, %v10597_v11  ;;  %6957 = vmatpush3.bf16.msra.mxu0 %v7713_v20  ;;  %7041 = vmatpush3.bf16.msra.mxu1 %v7713_v20 }
0x1119   : > { %v10607_v34 = vsub.f32 %v10491_v55, %v5396_v26  ;;  %5444 = vadd.xlane.f32.xlu1 %v5427_v32 }
0x111b   : > { %v5428_v4 = vmul.f32 %v10607_v34, %v10607_v34 }
0x112e   : > { %v5379_v18 = vpop.xlane.xlu1 %5378 }
0x112f   : > { %v5402_v14 = vmul.f32 0.0078125, %v5379_v18 }
0x1131   : > { %v10592_v50 = vsub.f32 %v10527_v63, %v5402_v14 }
0x1132   : > { %v5381_v33 = vpop.xlane.xlu1 %5380 }
0x1133   : > { %v5403_v31 = vmul.f32 0.0078125, %v5381_v33  ;;  %v5434_v57 = vmul.f32 %v10592_v50, %v10592_v50  ;;  %v7715_v33 = vld [vmem:[#allocation12 + $0x28] sm:$0xff]  }
0x1135   : > { %v10600_v43 = vsub.f32 %v10532_v41, %v5403_v31  ;;  %5458 = vadd.xlane.f32.xlu0 %v5434_v57 }
0x1136   : > { %v5369_v3 = vpop.xlane.xlu1 %5368  ;;  %v5383_v49 = vpop.xlane.xlu0 %5382 }
0x1137   : > { %v5397_v2 = vmul.f32 0.0078125, %v5369_v3  ;;  %v5435_v58 = vmul.f32 %v10600_v43, %v10600_v43  ;;  %v5404_v63 = vmul.f32 0.0078125, %v5383_v49 }
0x1139   : > { %v10610_v35 = vsub.f32 %v10496_v59, %v5397_v2  ;;  %v10617_v41 = vsub.f32 %v10539_v15, %v5404_v63  ;;  %5460 = vadd.xlane.f32.xlu1 %v5435_v58  ;;  %5446 = vadd.xlane.f32.xlu0 %v5428_v4 }
0x113a   : > { %v5385_v60 = vpop.xlane.xlu1 %5384  ;;  %v5371_v8 = vpop.xlane.xlu0 %5370 }
0x113b   : > { %v5405_v5 = vmul.f32 0.0078125, %v5385_v60  ;;  %v5429_v59 = vmul.f32 %v10610_v35, %v10610_v35  ;;  %v5398_v27 = vmul.f32 0.0078125, %v5371_v8  ;;  %v5436_v45 = vmul.f32 %v10617_v41, %v10617_v41 }
0x113d   : > { %v10620_v55 = vsub.f32 %v10544_v42, %v5405_v5  ;;  %v10627_v1 = vsub.f32 %v10503_v24, %v5398_v27  ;;  %5448 = vadd.xlane.f32.xlu1 %v5429_v59  ;;  %5462 = vadd.xlane.f32.xlu0 %v5436_v45 }
0x113e   : > { %v5373_v30 = vpop.xlane.xlu1 %5372  ;;  %v5387_v61 = vpop.xlane.xlu0 %5386 }
0x113f   : > { %v5399_v23 = vmul.f32 0.0078125, %v5373_v30  ;;  %v5437_v22 = vmul.f32 %v10620_v55, %v10620_v55  ;;  %v5406_v15 = vmul.f32 0.0078125, %v5387_v61  ;;  %v5430_v10 = vmul.f32 %v10627_v1, %v10627_v1 }
0x1141   : > { %v10630_v21 = vsub.f32 %v10508_v44, %v5399_v23  ;;  %v10637_v42 = vsub.f32 %v10551_v39, %v5406_v15  ;;  %5464 = vadd.xlane.f32.xlu1 %v5437_v22  ;;  %5450 = vadd.xlane.f32.xlu0 %v5430_v10 }
0x1142   : > { %v5389_v25 = vpop.xlane.xlu1 %5388  ;;  %v5375_v54 = vpop.xlane.xlu0 %5374 }
0x1143   : > { %v5407_v36 = vmul.f32 0.0078125, %v5389_v25  ;;  %v5431_v44 = vmul.f32 %v10630_v21, %v10630_v21  ;;  %v5400_v16 = vmul.f32 0.0078125, %v5375_v54  ;;  %v5438_v7 = vmul.f32 %v10637_v42, %v10637_v42  ;;  %v10672_v54 = vld [vmem:[%s11076_s22] ss:$0 sm:$0xff] }
0x1145   : > { %v10640_v24 = vsub.f32 %v10556_v28, %v5407_v36  ;;  %v10647_v39 = vsub.f32 %v10515_v47, %v5400_v16  ;;  %5452 = vadd.xlane.f32.xlu1 %v5431_v44  ;;  %5466 = vadd.xlane.f32.xlu0 %v5438_v7 }
0x1146   : > { %v5377_v17 = vpop.xlane.xlu1 %5376  ;;  %v5391_v40 = vpop.xlane.xlu0 %5390 }
0x1147   : > { %v5401_v56 = vmul.f32 0.0078125, %v5377_v17  ;;  %v5439_v53 = vmul.f32 %v10640_v24, %v10640_v24  ;;  %v5408_v19 = vmul.f32 0.0078125, %v5391_v40  ;;  %v5432_v9 = vmul.f32 %v10647_v39, %v10647_v39 }
0x1149   : > { %v10650_v28 = vsub.f32 %v10520_v46, %v5401_v56  ;;  %v10657_v47 = vsub.f32 %v10563_v52, %v5408_v19  ;;  %5468 = vadd.xlane.f32.xlu1 %v5439_v53  ;;  %5454 = vadd.xlane.f32.xlu0 %v5432_v9  ;;  %v10679_v9 = vld [vmem:[%s11077_s23] ss:$0 sm:$0xff] }
0x114a   : > { %v5393_v51 = vpop.xlane.xlu1 %5392 }
0x114b   : > { %v5409_v29 = vmul.f32 0.0078125, %v5393_v51  ;;  %v5433_v18 = vmul.f32 %v10650_v28, %v10650_v28  ;;  %v5440_v14 = vmul.f32 %v10657_v47, %v10657_v47 }
0x114d   : > { %v10660_v46 = vsub.f32 %v10568_v48, %v5409_v29  ;;  %5456 = vadd.xlane.f32.xlu1 %v5433_v18  ;;  %5470 = vadd.xlane.f32.xlu0 %v5440_v14  ;;  %v7714_v48 = vld [vmem:[#allocation12 + $0x20] sm:$0xff]  }
0x114e   : > { %6958 = vmatprep.subr.bf16.mxu0 %v7714_v48  ;;  %7034 = vmatprep.subr.bf16.mxu1 %v7714_v48 }
0x114f   : > { %v5441_v52 = vmul.f32 %v10660_v46, %v10660_v46  ;;  %6959 = vmatpush3.bf16.msra.mxu0 %v7714_v48  ;;  %7042 = vmatpush3.bf16.msra.mxu1 %v7714_v48 }
0x1150   : > { %6960 = vmatprep.subr.bf16.mxu0 %v7715_v33  ;;  %7035 = vmatprep.subr.bf16.mxu1 %v7715_v33 }
0x1151   : > { %5472 = vadd.xlane.f32.xlu1 %v5441_v52 }
0x1153   : > { %6961 = vmatpush3.bf16.msra.mxu0 %v7715_v33  ;;  %7043 = vmatpush3.bf16.msra.mxu1 %v7715_v33 }
0x1154   : > { %6962 = vmatprep.subr.bf16.mxu0 %v7716_v12  ;;  %7036 = vmatprep.subr.bf16.mxu1 %v7716_v12 }
0x1157   : > { %6963 = vmatpush3.bf16.msra.mxu0 %v7716_v12  ;;  %7044 = vmatpush3.bf16.msra.mxu1 %v7716_v12 }
0x1158   : > { %6964 = vmatprep.subr.bf16.mxu0 %v7717_v6  ;;  %7037 = vmatprep.subr.bf16.mxu1 %v7717_v6 }
0x115b   : > { %6965 = vmatpush3.bf16.msra.mxu0 %v7717_v6  ;;  %7045 = vmatpush3.bf16.msra.mxu1 %v7717_v6 }
0x11a2   : > { %v5443_v31 = vpop.xlane.xlu0 %5442 }
0x11a3   : > { %v5474_v57 = vmul.f32 0.0078125, %v5443_v31 }
0x11a5   : > { %v5490_v62 = vadd.f32 1e-05, %v5474_v57 }
0x11a6   : > { %v5445_v3 = vpop.xlane.xlu1 %5444 }
0x11a7   : > { %7718 = vrsqrt.f32 %v5490_v62  ;;  %v5475_v32 = vmul.f32 0.0078125, %v5445_v3 }
0x11a9   : > { %v5491_v58 = vadd.f32 1e-05, %v5475_v32 }
0x11ab   : > { %7720 = vrsqrt.f32 %v5491_v58 }
0x11b1   : > { %v7719_v22 = vpop.eup %7718 }
0x11b2   : > { %v5522_v36 = vmul.f32 %v7719_v22, %v10589_v13 }
0x11b4   : > { %v5544_v51 = vmul.f32 %v10672_v54, %v5522_v36 }
0x11b5   : > { %v7721_v17 = vpop.eup %7720 }
0x11b6   : > { %v5523_v40 = vmul.f32 %v7721_v17, %v10597_v11  ;;  %v5566_v33 = vadd.f32 %v10679_v9, %v5544_v51 }
0x11b8   : > { %v5545_v18 = vmul.f32 %v10672_v54, %v5523_v40 }
0x11ba   : > { %v5567_v12 = vadd.f32 %v10679_v9, %v5545_v18 }
0x11bc   : > { %v5582_v62 = vpack.c.bf16 %v5567_v12, %v5566_v33 }
0x11be   : > { %6966 = vmatprep.mubr.bf16.mxu0 %v5582_v62 }
0x11c2   : > { %v5459_v26 = vpop.xlane.xlu0 %5458 }
0x11c3   : > { %v5482_v2 = vmul.f32 0.0078125, %v5459_v26 }
0x11c5   : > { %v5498_v49 = vadd.f32 1e-05, %v5482_v2 }
0x11c6   : > { %v5461_v60 = vpop.xlane.xlu1 %5460  ;;  %v5447_v63 = vpop.xlane.xlu0 %5446 }
0x11c7   : > { %v5483_v4 = vmul.f32 0.0078125, %v5461_v60  ;;  %v5476_v5 = vmul.f32 0.0078125, %v5447_v63  ;;  %7722 = vrsqrt.f32 %v5498_v49 }
0x11c9   : > { %v5499_v59 = vadd.f32 1e-05, %v5483_v4  ;;  %v5492_v8 = vadd.f32 1e-05, %v5476_v5 }
0x11ca   : > { %v5449_v30 = vpop.xlane.xlu1 %5448  ;;  %v5463_v27 = vpop.xlane.xlu0 %5462 }
0x11cb   : > { %7724 = vrsqrt.f32 %v5499_v59  ;;  %v5477_v45 = vmul.f32 0.0078125, %v5449_v30  ;;  %v5484_v23 = vmul.f32 0.0078125, %v5463_v27 }
0x11cc   : > { %7726 = vrsqrt.f32 %v5492_v8 }
0x11cd   : > { %v5493_v61 = vadd.f32 1e-05, %v5477_v45  ;;  %v5500_v25 = vadd.f32 1e-05, %v5484_v23 }
0x11ce   : > { %v5465_v15 = vpop.xlane.xlu1 %5464  ;;  %v5451_v10 = vpop.xlane.xlu0 %5450 }
0x11cf   : > { %7728 = vrsqrt.f32 %v5493_v61  ;;  %v5485_v44 = vmul.f32 0.0078125, %v5465_v15  ;;  %v5478_v37 = vmul.f32 0.0078125, %v5451_v10 }
0x11d0   : > { %7730 = vrsqrt.f32 %v5500_v25 }
0x11d1   : > { %v5501_v16 = vadd.f32 1e-05, %v5485_v44  ;;  %v5494_v7 = vadd.f32 1e-05, %v5478_v37  ;;  %v7723_v56 = vpop.eup %7722 }
0x11d2   : > { %v5453_v53 = vpop.xlane.xlu1 %5452  ;;  %v5467_v38 = vpop.xlane.xlu0 %5466  ;;  %v5530_v29 = vmul.f32 %v7723_v56, %v10592_v50 }
0x11d3   : > { %7732 = vrsqrt.f32 %v5501_v16  ;;  %v5479_v13 = vmul.f32 0.0078125, %v5453_v53  ;;  %v5486_v19 = vmul.f32 0.0078125, %v5467_v38 }
0x11d4   : > { %7734 = vrsqrt.f32 %v5494_v7  ;;  %v5552_v31 = vmul.f32 %v10672_v54, %v5530_v29 }
0x11d5   : > { %v7725_v0 = vpop.eup %7724  ;;  %v5495_v14 = vadd.f32 1e-05, %v5479_v13  ;;  %v5502_v52 = vadd.f32 1e-05, %v5486_v19 }
0x11d6   : > { %v7727_v20 = vpop.eup %7726  ;;  %v5469_v11 = vpop.xlane.xlu1 %5468  ;;  %v5531_v6 = vmul.f32 %v7725_v0, %v10600_v43  ;;  %v5574_v43 = vadd.f32 %v10679_v9, %v5552_v31 }
0x11d7   : > { %v5455_v48 = vpop.xlane.xlu0 %5454  ;;  %7736 = vrsqrt.f32 %v5495_v14  ;;  %v5487_v57 = vmul.f32 0.0078125, %v5469_v11  ;;  %v5524_v26 = vmul.f32 %v7727_v20, %v10607_v34 }
0x11d8   : > { %v5480_v50 = vmul.f32 0.0078125, %v5455_v48  ;;  %7738 = vrsqrt.f32 %v5502_v52  ;;  %v5553_v3 = vmul.f32 %v10672_v54, %v5531_v6 }
0x11d9   : > { %v7729_v32 = vpop.eup %7728  ;;  %v5503_v2 = vadd.f32 1e-05, %v5487_v57  ;;  %v5546_v59 = vmul.f32 %v10672_v54, %v5524_v26 }
0x11da   : > { %v5496_v58 = vadd.f32 1e-05, %v5480_v50  ;;  %v7731_v49 = vpop.eup %7730  ;;  %v5457_v60 = vpop.xlane.xlu1 %5456  ;;  %v5575_v4 = vadd.f32 %v10679_v9, %v5553_v3  ;;  %v5525_v5 = vmul.f32 %v7729_v32, %v10610_v35 }
0x11db   : > { %v5471_v63 = vpop.xlane.xlu0 %5470  ;;  %7740 = vrsqrt.f32 %v5503_v2  ;;  %v5481_v8 = vmul.f32 0.0078125, %v5457_v60  ;;  %v5532_v34 = vmul.f32 %v7731_v49, %v10617_v41  ;;  %v5568_v10 = vadd.f32 %v10679_v9, %v5546_v59 }
0x11dc   : > { %v5488_v30 = vmul.f32 0.0078125, %v5471_v63  ;;  %7742 = vrsqrt.f32 %v5496_v58  ;;  %v5586_v27 = vpack.c.bf16 %v5575_v4, %v5574_v43  ;;  %v5547_v45 = vmul.f32 %v10672_v54, %v5525_v5  ;;  %v6235_v63 = vld [vmem:[%s11078_s1] ss:$0 sm:$0xff] }
0x11dd   : > { %v7733_v23 = vpop.eup %7732  ;;  %v5497_v22 = vadd.f32 1e-05, %v5481_v8  ;;  %v5554_v44 = vmul.f32 %v10672_v54, %v5532_v34 }
0x11de   : > { %v5504_v61 = vadd.f32 1e-05, %v5488_v30  ;;  %v7735_v25 = vpop.eup %7734  ;;  %v5473_v15 = vpop.xlane.xlu1 %5472  ;;  %6974 = vmatprep.mubr.bf16.mxu1 %v5586_v27  ;;  %v5569_v35 = vadd.f32 %v10679_v9, %v5547_v45  ;;  %v5533_v36 = vmul.f32 %v7733_v23, %v10620_v55 }
0x11df   : > { %7744 = vrsqrt.f32 %v5497_v22  ;;  %v5489_v41 = vmul.f32 0.0078125, %v5473_v15  ;;  %v5526_v37 = vmul.f32 %v7735_v25, %v10627_v1  ;;  %v5576_v38 = vadd.f32 %v10679_v9, %v5554_v44 }
0x11e0   : > { %7746 = vrsqrt.f32 %v5504_v61  ;;  %v5583_v17 = vpack.c.bf16 %v5569_v35, %v5568_v10  ;;  %v5555_v16 = vmul.f32 %v10672_v54, %v5533_v36 }
0x11e1   : > { %v7737_v7 = vpop.eup %7736  ;;  %v5505_v56 = vadd.f32 1e-05, %v5489_v41  ;;  %v5548_v51 = vmul.f32 %v10672_v54, %v5526_v37 }
0x11e2   : > { %v7739_v53 = vpop.eup %7738  ;;  %6967 = vmatmul.mubr.bf16.vlgmr.msra.gmra.mrb[0].mxu0 %v5583_v17  ;;  %v5577_v40 = vadd.f32 %v10679_v9, %v5555_v16  ;;  %v5527_v55 = vmul.f32 %v7737_v7, %v10630_v21 }
0x11e3   : > { %7748 = vrsqrt.f32 %v5505_v56  ;;  %v5534_v13 = vmul.f32 %v7739_v53, %v10637_v42  ;;  %v5570_v0 = vadd.f32 %v10679_v9, %v5548_v51 }
0x11e4   : > { %v5587_v1 = vpack.c.bf16 %v5577_v40, %v5576_v38  ;;  %v5549_v19 = vmul.f32 %v10672_v54, %v5527_v55 }
0x11e5   : > { %v7741_v29 = vpop.eup %7740  ;;  %v5556_v20 = vmul.f32 %v10672_v54, %v5534_v13 }
0x11e6   : > { %v7743_v18 = vpop.eup %7742  ;;  %6975 = vmatmul.mubr.bf16.vlgmr.msra.gmra.mrb[0].mxu1 %v5587_v1  ;;  %v5571_v14 = vadd.f32 %v10679_v9, %v5549_v19  ;;  %v5535_v52 = vmul.f32 %v7741_v29, %v10640_v24 }
0x11e7   : > { %v5528_v21 = vmul.f32 %v7743_v18, %v10647_v39  ;;  %v5578_v12 = vadd.f32 %v10679_v9, %v5556_v20 }
0x11e8   : > { %v5584_v11 = vpack.c.bf16 %v5571_v14, %v5570_v0  ;;  %v5557_v48 = vmul.f32 %v10672_v54, %v5535_v52 }
0x11e9   : > { %v7745_v42 = vpop.eup %7744  ;;  %v5550_v57 = vmul.f32 %v10672_v54, %v5528_v21 }
0x11ea   : > { %v7747_v33 = vpop.eup %7746  ;;  %6970 = vmatprep.mubr.bf16.mxu0 %v5584_v11  ;;  %v5579_v6 = vadd.f32 %v10679_v9, %v5557_v48  ;;  %v5529_v31 = vmul.f32 %v7745_v42, %v10650_v28 }
0x11eb   : > { %v5536_v24 = vmul.f32 %v7747_v33, %v10657_v47  ;;  %v5572_v3 = vadd.f32 %v10679_v9, %v5550_v57 }
0x11ec   : > { %v5588_v50 = vpack.c.bf16 %v5579_v6, %v5578_v12  ;;  %v5551_v62 = vmul.f32 %v10672_v54, %v5529_v31 }
0x11ed   : > { %v7749_v39 = vpop.eup %7748  ;;  %v5558_v2 = vmul.f32 %v10672_v54, %v5536_v24 }
0x11ee   : > { %6978 = vmatprep.mubr.bf16.mxu1 %v5588_v50  ;;  %v5573_v26 = vadd.f32 %v10679_v9, %v5551_v62  ;;  %v5537_v32 = vmul.f32 %v7749_v39, %v10660_v46 }
0x11ef   : > { %v5580_v47 = vadd.f32 %v10679_v9, %v5558_v2 }
0x11f0   : > { %v5585_v58 = vpack.c.bf16 %v5573_v26, %v5572_v3  ;;  %v5559_v28 = vmul.f32 %v10672_v54, %v5537_v32 }
0x11f2   : > { %6971 = vmatmul.mubr.bf16.gmra.mrb[4].mxu0 %v5585_v58  ;;  %v5581_v49 = vadd.f32 %v10679_v9, %v5559_v28 }
0x11f4   : > { %v5589_v60 = vpack.c.bf16 %v5581_v49, %v5580_v47 }
0x11f6   : > { %6979 = vmatmul.mubr.bf16.gmra.mrb[4].mxu1 %v5589_v60 }
0x12b5   : > { %v6968_v46 = vpop.f32.mrb[0].mxu0 }
0x12b6   : > { %v5704_v43 = vadd.f32 %v6968_v46, %v6235_v63  ;;  %v5695_v4 = vpop.f32.mrb[1].mxu0 }
0x12b7   : > { %v5696_v5 = vadd.f32 %v6235_v63, %v5695_v4  ;;  %v6969_v59 = vpop.f32.mrb[2].mxu0 }
0x12b8   : > { %5760 = vst [vmem:[%s8674_s26 + $0x10] sm:$0xff] %v5704_v43  ;;  %v5707_v54 = vadd.f32 %v6969_v59, %v6235_v63  ;;  %v5698_v8 = vpop.f32.mrb[3].mxu0 }
0x12b9   : > { %5758 = vst [vmem:[%s8674_s26] sm:$0xff] %v5696_v5  ;;  %v5699_v9 = vadd.f32 %v6235_v63, %v5698_v8  ;;  %v6976_v30 = vpop.f32.mrb[0].mxu1 }
0x12ba   : > { %5761 = vst [vmem:[%s8674_s26 + $0x18] sm:$0xff] %v5707_v54  ;;  %v5736_v34 = vadd.f32 %v6976_v30, %v6235_v63  ;;  %v5727_v27 = vpop.f32.mrb[1].mxu1 }
0x12bb   : > { %5759 = vst [vmem:[%s8674_s26 + $0x8] sm:$0xff] %v5699_v9  ;;  %v5728_v45 = vadd.f32 %v6235_v63, %v5727_v27  ;;  %v6977_v23 = vpop.f32.mrb[2].mxu1 }
0x12bc   : > { %5768 = vst [vmem:[%s8674_s26 + $0x50] sm:$0xff] %v5736_v34  ;;  %v5739_v22 = vadd.f32 %v6977_v23, %v6235_v63  ;;  %v5730_v61 = vpop.f32.mrb[3].mxu1 }
0x12bd   : > { %5766 = vst [vmem:[%s8674_s26 + $0x40] sm:$0xff] %v5728_v45  ;;  %v5731_v25 = vadd.f32 %v6235_v63, %v5730_v61 }
0x12be   : > { %5769 = vst [vmem:[%s8674_s26 + $0x58] sm:$0xff] %v5739_v22 }
0x12bf   : > { %5767 = vst [vmem:[%s8674_s26 + $0x48] sm:$0xff] %v5731_v25 }
0x12c5   : > { %v6972_v15 = vpop.f32.mrb[4].mxu0 }
0x12c6   : > { %v5720_v10 = vadd.f32 %v6972_v15, %v6235_v63  ;;  %v5711_v35 = vpop.f32.mrb[5].mxu0 }
0x12c7   : > { %v5712_v36 = vadd.f32 %v6235_v63, %v5711_v35  ;;  %v6973_v44 = vpop.f32.mrb[6].mxu0 }
0x12c8   : > { %5764 = vst [vmem:[%s8674_s26 + $0x30] sm:$0xff] %v5720_v10  ;;  %v5723_v41 = vadd.f32 %v6973_v44, %v6235_v63  ;;  %v5714_v37 = vpop.f32.mrb[7].mxu0 }
0x12c9   : > { %5762 = vst [vmem:[%s8674_s26 + $0x20] sm:$0xff] %v5712_v36  ;;  %v5715_v17 = vadd.f32 %v6235_v63, %v5714_v37  ;;  %v6980_v16 = vpop.f32.mrb[4].mxu1 }
0x12ca   : > { %5765 = vst [vmem:[%s8674_s26 + $0x38] sm:$0xff] %v5723_v41  ;;  %v5752_v7 = vadd.f32 %v6980_v16, %v6235_v63  ;;  %v5743_v56 = vpop.f32.mrb[5].mxu1 }
0x12cb   : > { %5763 = vst [vmem:[%s8674_s26 + $0x28] sm:$0xff] %v5715_v17  ;;  %v5744_v53 = vadd.f32 %v6235_v63, %v5743_v56  ;;  %v6981_v38 = vpop.f32.mrb[6].mxu1 }
0x12cc   : > { %5772 = vst [vmem:[%s8674_s26 + $0x70] sm:$0xff] %v5752_v7  ;;  %v5755_v40 = vadd.f32 %v6981_v38, %v6235_v63  ;;  %v5746_v55 = vpop.f32.mrb[7].mxu1 }
0x12cd   : > { %5770 = vst [vmem:[%s8674_s26 + $0x60] sm:$0xff] %v5744_v53  ;;  %v5747_v51 = vadd.f32 %v6235_v63, %v5746_v55 }
0x12ce   : > { %5773 = vst [vmem:[%s8674_s26 + $0x78] sm:$0xff] %v5755_v40 }
0x12cf   : > { %5771 = vst [vmem:[%s8674_s26 + $0x68] sm:$0xff] %v5747_v51 }
0x12d0 PF: > { %s11079_s7 = sld [smem:[#allocation23_spill]]  ;;  %s11080_s30 = sld [smem:[#allocation32_spill]] }
0x12d1   : > { %s11081_s8 = sld [smem:[#allocation77_spill]]  ;;  %s5788_s20 = sshll.u32 %s8674_s26, 4  ;;  %s10752_s20 = int_to_ptr.vmem [resolvable:$true] %s5788_s20 }
0x12d2   : > { %s11082_s14 = sand.u32 1, %s8066_s28   ;;  %s7956_s5 = scalar_lea.vmem %s10752_s20, 2048 }
0x12d3   : > { %s10756_s4 = scalar_lea.sflag [#allocation5], %s11082_s14  ;;  %p7957_p4 = scmp.ne.s32.totalorder %s10752_s20, %s7956_s5 }
0x12d4   : > { %s8111_s2 = smov [#allocation13]  }
0x12d5   : > { %s7960_s9 = sshll.u32 %s8111_s2, 4  ;;  %s7961_s9 = int_to_ptr.vmem [resolvable:$false] %s7960_s9 }
0x12d6   : > { %s6253_s0 = sshll.u32 %s11079_s7, 11  ;;  %p11083_p8 = scmp.ne.s32.totalorder %s11080_s30, 0 }
0x12d7   : > { %s10749_s13 = scalar_lea.hbm %s11081_s8, %s6253_s0  ;;  %s7962_s10 = scalar_lea.vmem %s7961_s9, 4096 }
0x12d8   : > { %p7958_p1 = pnand %p7957_p4, %p11083_p8  ;;  %p7963_p12 = scmp.lt.s32.totalorder %s10752_s20, %s7961_s9 }
0x12d9   : > { %p7964_p6 = scmp.lt.s32.totalorder %s7962_s10, %s7956_s5 }
0x12da   : > { %p7959_p3 = pneg %p7958_p1 }
0x12db   : > { %p7965_p10 = por %p7964_p6, %p7963_p12 }
0x12dd   : > { %p7966_p11 = pnand %p7965_p10, %p7959_p3 }
0x12df   : > { %7969 = shalt.err (!%p7966_p11)
}
0x12e0   : > { %s7970_s26 = scalar_lea.hbm %s10749_s13, 2048  ;;  %s7974_s24 = scalar_lea.hbm %s11081_s8, 4096 }
0x12e1   : > { %p7971_p2 = scmp.ne.s32.totalorder %s10749_s13, %s7970_s26  ;;  %p7975_p7 = scmp.lt.u32.totalorder %s10749_s13, %s11081_s8 }
0x12e2   : > { %p7976_p13 = scmp.lt.u32.totalorder %s7974_s24, %s7970_s26  ;;  %p7978_p4 = scmp.lt.u32.totalorder %s7970_s26, %s10749_s13 }
0x12e3   : > { %p7972_p0 = pnand %p7971_p2, %p11083_p8 }
0x12e4   : > { %p7977_p5 = por %p7976_p13, %p7975_p7 }
0x12e5   : > { %p7973_p9 = pneg %p7972_p0 }
0x12e6   : > { %p7979_p1 = por %p7978_p4, %p7977_p5 }
0x12e8   : > { %p7980_p3 = pnand %p7979_p1, %p7973_p9 }
0x12ea   : > { %7983 = shalt.err (!%p7980_p3)
}
0x12eb   : > { %s8112_s6 = smov 128   ;;  %s8113_s29 = smov 8  }
0x12ec   : > { %7099 = dma.vmem_to_hbm [thread:$0]  (%p11083_p8), %s10752_s20, 2048, %s10749_s13, %s10756_s4, %s8112_s6, %s8112_s6, %s8113_s29  }
0x12ed PF: > { %s11084_s22 = sld [smem:[#allocation26_spill]]  ;;  %s11085_s21 = sld [smem:[#allocation20_spill]] }
0x12ee   : > { %s11086_s15 = sld [smem:[#allocation33_spill]] }
0x12f3   : > { %p7133_p12 = scmp.ge.s32.totalorder %s11084_s22, 2  ;;  %s5803_s23 = sand.u32 1, %s11085_s21  }
0x12f4   : > { %p11087_p6 = scmp.ne.s32.totalorder %s11086_s15, 0  ;;  %s5804_s11 = scalar_lea.sflag [#allocation5], %s5803_s23 }
0x12f6   : > { %p7125_p10 = pnand %p7133_p12, %p11087_p6 }
0x12f8   : > { %8045 = dma.done.wait (!%p7125_p10), %s5804_s11, 2048  }
0x12f9   : > { %8047 = vsyncadd (!%p7125_p10), %s5804_s11, 4294965248  ;;  %s34_s1 = sadd.s32 1, %s11084_s22   ;;  %s11088_s12 = sld [smem:[#allocation19_spill]] }
0x12fa   : > { %p31_p11 = scmp.ge.s32.totalorder %s34_s1, 6   ;;  %s11089_s26 = sld [smem:[#allocation30_spill]] }
0x12fb   : > { %s11090_s7 = sld [smem:[#allocation21_spill]]  ;;  %s11091_s29 = sld [smem:[#allocation29_spill]] }
0x12fc   : > { %s11092_s0 = sld [smem:[#allocation24_spill]]  ;;  %s11093_s30 = sld [smem:[#allocation25_spill]] }
0x12fd   : > { %s11094_s18 = sld [smem:[#allocation27_spill]]  ;;  %s11095_s19 = sld [smem:[#allocation28_spill]] }
0x12fe   : > { %s11096_s24 = smov %s8054_s25  ;;  %s11098_s27 = smov %s8066_s28 }
0x12ff   : > { %s11097_s25 = smov %s11088_s12  ;;  %33 = sbr.rel (!%p31_p11) target bundleno = 29 (0x1d), region = 214 }
0x1301   : > { %s11099_s28 = smov %s11090_s7 }
0x1306   :  { %5809 = vsyncpa [#allocation4], 1 }
0x1307   :  { %5811 = vsyncpa [#allocation4 + $0x1], 1 }
0x1308   :  { %5812 = vsyncpa [#allocation7], 1 }
0x1309   :  { %5813 = vsyncpa [#allocation5], 1 }
0x130a   :  { %5815 = vsyncpa [#allocation5 + $0x1], 1 }

</bundles_post_ra>
